<compile_context>
chip_gen: v5e
topology: v5e:2x2
jax: 0.10.0
libtpu: 0.0.40
codegen_flags: <defaults>
</compile_context>

<pallas_src>
import jax
import jax.numpy as jnp
from jax.experimental import pallas as pl
from jax.experimental.pallas import tpu as pltpu


def _choose_point_tile(n):
    """Return (tile_n, padded_n).

    Small point clouds run as a single full-N tile (block dim == full array dim,
    no padding, VMEM bounded).  Larger ones use a 128-aligned tile, preferring
    the largest tile whose edge-padding waste is < 1/8 of N, so pipelining and
    MXU fill/drain amortization are preserved without a giant-tile VMEM blowup.
    """
    if n <= 2048:
        return n, n
    best_tn, best_pad = None, None
    for tn in (2048, 1024, 512):
        padded = pl.cdiv(n, tn) * tn
        if (padded - n) * 8 <= n:
            return tn, padded
        if best_pad is None or padded < best_pad:
            best_tn, best_pad = tn, padded
    return best_tn, best_pad


def _tnet_kernel(x_ref, w1_ref, b1_ref, w2_ref, b2_ref, w3_ref, b3_ref,
                 w4_ref, b4_ref, w5_ref, b5_ref, w6_ref, b6_ref,
                 o_ref, acc_ref):
    """Shared MLP + running max over points, with the FC head fused on the last tile."""
    n = pl.program_id(1)

    @pl.when(n == 0)
    def _():
        acc_ref[...] = jnp.full_like(acc_ref, -jnp.inf)

    # ---- Layer 1 (k -> 64) on the VPU.  k is tiny (3/4): unrolled broadcast
    # FMAs instead of a K=k MXU contraction (which would waste full systolic
    # passes and force a (k, TN) operand repack).  One small XLU transpose of
    # the (k, TN) tile brings the point axis onto sublanes.
    xt = x_ref[0].T                                       # (TN, k) f32
    w1f = w1_ref[...].astype(jnp.float32)                 # (k, 64)
    kk = w1f.shape[0]
    h = xt[:, 0:1] * w1f[0:1, :]                          # (TN, 64)
    for ki in range(1, kk):
        h = h + xt[:, ki:ki + 1] * w1f[ki:ki + 1, :]
    h = jnp.maximum(h + b1_ref[...], 0.0)                 # (TN, 64)

    # ---- Layers 2/3 (64 -> 128 -> 1024) on the MXU, bf16 operands / f32 acc.
    h = jnp.dot(h.astype(jnp.bfloat16), w2_ref[...],
                preferred_element_type=jnp.float32) + b2_ref[...]
    h = jnp.maximum(h, 0.0)                               # (TN, 128)

    h = jnp.dot(h.astype(jnp.bfloat16), w3_ref[...],
                preferred_element_type=jnp.float32) + b3_ref[...]
    h = jnp.maximum(h, 0.0)                               # (TN, 1024)

    # ---- MaxPool1d(n_points): running max across N tiles.
    acc_ref[...] = jnp.maximum(acc_ref[...], jnp.max(h, axis=0, keepdims=True))

    # ---- FC head fused into the last-N-tile epilogue (M=1 matmuls; head is
    #      ~0.5% of FLOPs so MXU shape efficiency is irrelevant here).
    @pl.when(n == pl.num_programs(1) - 1)
    def _():
        f = acc_ref[...].astype(jnp.bfloat16)                             # (1, 1024)
        g = jnp.dot(f, w4_ref[...], preferred_element_type=jnp.float32) + b4_ref[...]
        g = jnp.maximum(g, 0.0)                                           # (1, 512)
        g = jnp.dot(g.astype(jnp.bfloat16), w5_ref[...],
                    preferred_element_type=jnp.float32) + b5_ref[...]
        g = jnp.maximum(g, 0.0)                                           # (1, 256)
        g = jnp.dot(g.astype(jnp.bfloat16), w6_ref[...],
                    preferred_element_type=jnp.float32) + b6_ref[...]     # (1, k*k)
        o_ref[0] = g


def tnet_forward(x, params, k):
    """x: (B, k, N) float32.  Returns (B, k, k) float32."""
    B, C, N = x.shape
    assert C == k
    (w1, b1, w2, b2, w3, b3, w4, b4, w5, b5, w6, b6) = params

    tn, n_pad = _choose_point_tile(N)
    if n_pad != N:
        # Pad with duplicated edge points: duplicates cannot change the max-pool.
        x = jnp.pad(x, ((0, 0), (0, 0), (0, n_pad - N)), mode="edge")
    num_tiles = n_pad // tn

    def const(a):   # grid-invariant 2-D weight/bias, resident in VMEM
        return pl.BlockSpec(a.shape, lambda b, n: (0, 0))

    out = pl.pallas_call(
        _tnet_kernel,
        out_shape=jax.ShapeDtypeStruct((B, 1, k * k), jnp.float32),
        grid_spec=pltpu.PrefetchScalarGridSpec(
            num_scalar_prefetch=0,
            grid=(B, num_tiles),
            in_specs=[pl.BlockSpec((1, C, tn), lambda b, n: (b, 0, n)),
                      const(w1), const(b1),
                      const(w2), const(b2),
                      const(w3), const(b3),
                      const(w4), const(b4),
                      const(w5), const(b5),
                      const(w6), const(b6)],
            out_specs=pl.BlockSpec((1, 1, k * k), lambda b, n: (b, 0, 0)),
            scratch_shapes=[pltpu.VMEM((1, 1024), jnp.float32)],
        ),
        compiler_params=pltpu.CompilerParams(
            dimension_semantics=("parallel", "arbitrary"),
            vmem_limit_bytes=32 * 1024 * 1024,
        ),
    )(x, w1, b1, w2, b2, w3, b3, w4, b4, w5, b5, w6, b6)

    # view(-1, k, k) + identity: pure glue (hoisted out of the kernel).
    return out.reshape(B, k, k) + jnp.eye(k, dtype=jnp.float32)[None]


def init_tnet_params(key, k):
    """Deterministic init. Weights pre-transposed (C_in, C_out), stored bf16; biases f32."""
    dims = [(k, 64), (64, 128), (128, 1024), (1024, 512), (512, 256), (256, k * k)]
    params = []
    for cin, cout in dims:
        key, kw, kb = jax.random.split(key, 3)
        bound = 1.0 / float(cin) ** 0.5
        w = jax.random.uniform(kw, (cin, cout), jnp.float32, -bound, bound)
        b = jax.random.uniform(kb, (1, cout), jnp.float32, -bound, bound)
        params += [w.astype(jnp.bfloat16), b]
    return tuple(params)


def tnet_reference(x, params, k):
    """Pure-JAX f32 reference of the PyTorch forward (bn=False)."""
    (w1, b1, w2, b2, w3, b3, w4, b4, w5, b5, w6, b6) = params
    f32 = lambda a: a.astype(jnp.float32)
    B = x.shape[0]
    xt = jnp.transpose(x, (0, 2, 1))                       # (B, N, k)
    h = jax.nn.relu(xt @ f32(w1) + b1)                     # (B, N, 64)
    h = jax.nn.relu(h @ f32(w2) + b2)                      # (B, N, 128)
    h = jax.nn.relu(h @ f32(w3) + b3)                      # (B, N, 1024)
    feat = jnp.max(h, axis=1)                              # (B, 1024)
    f = jax.nn.relu(feat @ f32(w4) + b4[0])
    f = jax.nn.relu(f @ f32(w5) + b5[0])
    f = f @ f32(w6) + b6[0]                                # (B, k*k)
    return f.reshape(B, k, k) + jnp.eye(k, dtype=jnp.float32)[None]


if __name__ == "__main__":
    K = 4          # number of input channels / transform size
    B = 2          # batch
    N = 16         # number of points

    key = jax.random.PRNGKey(0)
    key, kx = jax.random.split(key)
    x = jax.random.normal(kx, (B, K, N), dtype=jnp.float32)

    params = init_tnet_params(jax.random.PRNGKey(1), K)

    out = jax.block_until_ready(tnet_forward(x, params, K))
    ref = tnet_reference(x, params, K)

    assert out.shape == (B, K, K)
    # bf16 MXU matmuls (f32 accumulation) vs. the f32 reference: tolerance reflects
    # the deliberate accuracy/speed tradeoff from the perf review.
    assert jnp.allclose(out, ref, atol=3e-2, rtol=3e-2), "mismatch vs reference"

    print("KERNEL_OK")
</pallas_src>

<mosaic_0001>
module attributes {stable_mosaic.version = 11 : i64} {
  func.func @_tnet_kernel(%arg0: i32, %arg1: i32, %arg2: memref<1x4x16xf32, #tpu.memory_space<vmem>>, %arg3: memref<4x64xbf16, #tpu.memory_space<vmem>>, %arg4: memref<1x64xf32, #tpu.memory_space<vmem>>, %arg5: memref<64x128xbf16, #tpu.memory_space<vmem>>, %arg6: memref<1x128xf32, #tpu.memory_space<vmem>>, %arg7: memref<128x1024xbf16, #tpu.memory_space<vmem>>, %arg8: memref<1x1024xf32, #tpu.memory_space<vmem>>, %arg9: memref<1024x512xbf16, #tpu.memory_space<vmem>>, %arg10: memref<1x512xf32, #tpu.memory_space<vmem>>, %arg11: memref<512x256xbf16, #tpu.memory_space<vmem>>, %arg12: memref<1x256xf32, #tpu.memory_space<vmem>>, %arg13: memref<256x16xbf16, #tpu.memory_space<vmem>>, %arg14: memref<1x16xf32, #tpu.memory_space<vmem>>, %arg15: memref<1x1x16xf32, #tpu.memory_space<vmem>>, %arg16: memref<1x1024xf32, #tpu.memory_space<vmem>>) attributes {dimension_semantics = [#tpu.dimension_semantics<parallel>, #tpu.dimension_semantics<arbitrary>], iteration_bounds = array<i64: 2, 1>, scalar_prefetch = 0 : i64, scratch_operands = 1 : i64, tpu.core_type = #tpu.core_type<tc>, window_params = [{transform_indices = @transform_0, window_bounds = array<i64: 1, 4, 16>}, {pipeline_mode = #tpu.pipeline_mode<synchronous>, transform_indices = @transform_1, window_bounds = array<i64: 4, 64>}, {pipeline_mode = #tpu.pipeline_mode<synchronous>, transform_indices = @transform_2, window_bounds = array<i64: 1, 64>}, {pipeline_mode = #tpu.pipeline_mode<synchronous>, transform_indices = @transform_3, window_bounds = array<i64: 64, 128>}, {pipeline_mode = #tpu.pipeline_mode<synchronous>, transform_indices = @transform_4, window_bounds = array<i64: 1, 128>}, {pipeline_mode = #tpu.pipeline_mode<synchronous>, transform_indices = @transform_5, window_bounds = array<i64: 128, 1024>}, {pipeline_mode = #tpu.pipeline_mode<synchronous>, transform_indices = @transform_6, window_bounds = array<i64: 1, 1024>}, {pipeline_mode = #tpu.pipeline_mode<synchronous>, transform_indices = @transform_7, window_bounds = array<i64: 1024, 512>}, {pipeline_mode = #tpu.pipeline_mode<synchronous>, transform_indices = @transform_8, window_bounds = array<i64: 1, 512>}, {pipeline_mode = #tpu.pipeline_mode<synchronous>, transform_indices = @transform_9, window_bounds = array<i64: 512, 256>}, {pipeline_mode = #tpu.pipeline_mode<synchronous>, transform_indices = @transform_10, window_bounds = array<i64: 1, 256>}, {pipeline_mode = #tpu.pipeline_mode<synchronous>, transform_indices = @transform_11, window_bounds = array<i64: 256, 16>}, {pipeline_mode = #tpu.pipeline_mode<synchronous>, transform_indices = @transform_12, window_bounds = array<i64: 1, 16>}, {transform_indices = @transform_13, window_bounds = array<i64: 1, 1, 16>}]} {
    %c0_i32 = arith.constant 0 : i32
    %0 = arith.cmpi eq, %arg1, %c0_i32 : i32
    %1 = arith.extui %0 : i1 to i32
    %c0_i32_0 = arith.constant 0 : i32
    %2 = arith.cmpi ne, %1, %c0_i32_0 : i32
    scf.if %2 {
      %cst_26 = arith.constant 0xFF800000 : f32
      %60 = vector.broadcast %cst_26 : f32 to vector<1x1024xf32>
      %c0_27 = arith.constant 0 : index
      %c0_28 = arith.constant 0 : index
      %61 = vector.load %arg16[%c0_27, %c0_28] : memref<1x1024xf32, #tpu.memory_space<vmem>>, vector<1x1024xf32>
      tpu.vector_store %arg16[%c0_27, %c0_28], %60 {strides = array<i32>} : memref<1x1024xf32, #tpu.memory_space<vmem>>, vector<1x1024xf32>,
    } else {
    }
    %c0 = arith.constant 0 : index
    %c0_1 = arith.constant 0 : index
    %c0_2 = arith.constant 0 : index
    %3 = vector.load %arg2[%c0, %c0_1, %c0_2] : memref<1x4x16xf32, #tpu.memory_space<vmem>>, vector<1x4x16xf32>
    %4 = vector.shape_cast %3 : vector<1x4x16xf32> to vector<4x16xf32>
    %5 = tpu.transpose %4, [1, 0] : vector<4x16xf32> -> vector<16x4xf32>
    %c0_3 = arith.constant 0 : index
    %c0_4 = arith.constant 0 : index
    %6 = vector.load %arg3[%c0_3, %c0_4] : memref<4x64xbf16, #tpu.memory_space<vmem>>, vector<4x64xbf16>
    %7 = arith.extf %6 : vector<4x64xbf16> to vector<4x64xf32>
    %8 = vector.extract_strided_slice %5 {offsets = [0, 0], sizes = [16, 1], strides = [1, 1]} : vector<16x4xf32> to vector<16x1xf32>
    %9 = vector.extract_strided_slice %7 {offsets = [0, 0], sizes = [1, 64], strides = [1, 1]} : vector<4x64xf32> to vector<1x64xf32>
    %10 = vector.broadcast %8 : vector<16x1xf32> to vector<16x64xf32>
    %11 = vector.broadcast %9 : vector<1x64xf32> to vector<16x64xf32>
    %12 = arith.mulf %10, %11 : vector<16x64xf32>
    %13 = vector.extract_strided_slice %5 {offsets = [0, 1], sizes = [16, 1], strides = [1, 1]} : vector<16x4xf32> to vector<16x1xf32>
    %14 = vector.extract_strided_slice %7 {offsets = [1, 0], sizes = [1, 64], strides = [1, 1]} : vector<4x64xf32> to vector<1x64xf32>
    %15 = vector.broadcast %13 : vector<16x1xf32> to vector<16x64xf32>
    %16 = vector.broadcast %14 : vector<1x64xf32> to vector<16x64xf32>
    %17 = arith.mulf %15, %16 : vector<16x64xf32>
    %18 = arith.addf %12, %17 : vector<16x64xf32>
    %19 = vector.extract_strided_slice %5 {offsets = [0, 2], sizes = [16, 1], strides = [1, 1]} : vector<16x4xf32> to vector<16x1xf32>
    %20 = vector.extract_strided_slice %7 {offsets = [2, 0], sizes = [1, 64], strides = [1, 1]} : vector<4x64xf32> to vector<1x64xf32>
    %21 = vector.broadcast %19 : vector<16x1xf32> to vector<16x64xf32>
    %22 = vector.broadcast %20 : vector<1x64xf32> to vector<16x64xf32>
    %23 = arith.mulf %21, %22 : vector<16x64xf32>
    %24 = arith.addf %18, %23 : vector<16x64xf32>
    %25 = vector.extract_strided_slice %5 {offsets = [0, 3], sizes = [16, 1], strides = [1, 1]} : vector<16x4xf32> to vector<16x1xf32>
    %26 = vector.extract_strided_slice %7 {offsets = [3, 0], sizes = [1, 64], strides = [1, 1]} : vector<4x64xf32> to vector<1x64xf32>
    %27 = vector.broadcast %25 : vector<16x1xf32> to vector<16x64xf32>
    %28 = vector.broadcast %26 : vector<1x64xf32> to vector<16x64xf32>
    %29 = arith.mulf %27, %28 : vector<16x64xf32>
    %30 = arith.addf %24, %29 : vector<16x64xf32>
    %c0_5 = arith.constant 0 : index
    %c0_6 = arith.constant 0 : index
    %31 = vector.load %arg4[%c0_5, %c0_6] : memref<1x64xf32, #tpu.memory_space<vmem>>, vector<1x64xf32>
    %32 = vector.broadcast %31 : vector<1x64xf32> to vector<16x64xf32>
    %33 = arith.addf %30, %32 : vector<16x64xf32>
    %cst = arith.constant 0.000000e+00 : f32
    %34 = vector.broadcast %cst : f32 to vector<16x64xf32>
    %35 = arith.maximumf %33, %34 : vector<16x64xf32>
    %36 = arith.truncf %35 : vector<16x64xf32> to vector<16x64xbf16>
    %c0_7 = arith.constant 0 : index
    %c0_8 = arith.constant 0 : index
    %37 = vector.load %arg5[%c0_7, %c0_8] : memref<64x128xbf16, #tpu.memory_space<vmem>>, vector<64x128xbf16>
    %cst_9 = arith.constant dense<0.000000e+00> : vector<16x128xf32>
    %38 = tpu.matmul %36, %37, %cst_9 {dimension_numbers = #tpu.dot_dimension_numbers<[1], [0], [0], [1], [0, 0, 1, 1], [], []>} : vector<16x64xbf16>, vector<64x128xbf16>, vector<16x128xf32> -> vector<16x128xf32>
    %c0_10 = arith.constant 0 : index
    %c0_11 = arith.constant 0 : index
    %39 = vector.load %arg6[%c0_10, %c0_11] : memref<1x128xf32, #tpu.memory_space<vmem>>, vector<1x128xf32>
    %40 = vector.broadcast %39 : vector<1x128xf32> to vector<16x128xf32>
    %41 = arith.addf %38, %40 : vector<16x128xf32>
    %cst_12 = arith.constant 0.000000e+00 : f32
    %42 = vector.broadcast %cst_12 : f32 to vector<16x128xf32>
    %43 = arith.maximumf %41, %42 : vector<16x128xf32>
    %44 = arith.truncf %43 : vector<16x128xf32> to vector<16x128xbf16>
    %c0_13 = arith.constant 0 : index
    %c0_14 = arith.constant 0 : index
    %45 = vector.load %arg7[%c0_13, %c0_14] : memref<128x1024xbf16, #tpu.memory_space<vmem>>, vector<128x1024xbf16>
    %cst_15 = arith.constant dense<0.000000e+00> : vector<16x1024xf32>
    %46 = tpu.matmul %44, %45, %cst_15 {dimension_numbers = #tpu.dot_dimension_numbers<[1], [0], [0], [1], [0, 0, 1, 1], [], []>} : vector<16x128xbf16>, vector<128x1024xbf16>, vector<16x1024xf32> -> vector<16x1024xf32>
    %c0_16 = arith.constant 0 : index
    %c0_17 = arith.constant 0 : index
    %47 = vector.load %arg8[%c0_16, %c0_17] : memref<1x1024xf32, #tpu.memory_space<vmem>>, vector<1x1024xf32>
    %48 = vector.broadcast %47 : vector<1x1024xf32> to vector<16x1024xf32>
    %49 = arith.addf %46, %48 : vector<16x1024xf32>
    %cst_18 = arith.constant 0.000000e+00 : f32
    %50 = vector.broadcast %cst_18 : f32 to vector<16x1024xf32>
    %51 = arith.maximumf %49, %50 : vector<16x1024xf32>
    %c0_19 = arith.constant 0 : index
    %c0_20 = arith.constant 0 : index
    %52 = vector.load %arg16[%c0_19, %c0_20] : memref<1x1024xf32, #tpu.memory_space<vmem>>, vector<1x1024xf32>
    %cst_21 = arith.constant dense<0xFF800000> : vector<1024xf32>
    %53 = vector.multi_reduction <maximumf>, %51, %cst_21 [0] : vector<16x1024xf32> to vector<1024xf32>
    %54 = vector.shape_cast %53 : vector<1024xf32> to vector<1x1024xf32>
    %55 = arith.maximumf %52, %54 : vector<1x1024xf32>
    %c0_22 = arith.constant 0 : index
    %c0_23 = arith.constant 0 : index
    %56 = vector.load %arg16[%c0_22, %c0_23] : memref<1x1024xf32, #tpu.memory_space<vmem>>, vector<1x1024xf32>
    tpu.vector_store %arg16[%c0_22, %c0_23], %55 {strides = array<i32>} : memref<1x1024xf32, #tpu.memory_space<vmem>>, vector<1x1024xf32>,
    %c0_i32_24 = arith.constant 0 : i32
    %57 = arith.cmpi eq, %arg1, %c0_i32_24 : i32
    %58 = arith.extui %57 : i1 to i32
    %c0_i32_25 = arith.constant 0 : i32
    %59 = arith.cmpi ne, %58, %c0_i32_25 : i32
    scf.if %59 {
      %c0_26 = arith.constant 0 : index
      %c0_27 = arith.constant 0 : index
      %60 = vector.load %arg16[%c0_26, %c0_27] : memref<1x1024xf32, #tpu.memory_space<vmem>>, vector<1x1024xf32>
      %61 = arith.truncf %60 : vector<1x1024xf32> to vector<1x1024xbf16>
      %c0_28 = arith.constant 0 : index
      %c0_29 = arith.constant 0 : index
      %62 = vector.load %arg9[%c0_28, %c0_29] : memref<1024x512xbf16, #tpu.memory_space<vmem>>, vector<1024x512xbf16>
      %cst_30 = arith.constant dense<0.000000e+00> : vector<1x512xf32>
      %63 = tpu.matmul %61, %62, %cst_30 {dimension_numbers = #tpu.dot_dimension_numbers<[1], [0], [0], [1], [0, 0, 1, 1], [], []>} : vector<1x1024xbf16>, vector<1024x512xbf16>, vector<1x512xf32> -> vector<1x512xf32>
      %c0_31 = arith.constant 0 : index
      %c0_32 = arith.constant 0 : index
      %64 = vector.load %arg10[%c0_31, %c0_32] : memref<1x512xf32, #tpu.memory_space<vmem>>, vector<1x512xf32>
      %65 = arith.addf %63, %64 : vector<1x512xf32>
      %cst_33 = arith.constant 0.000000e+00 : f32
      %66 = vector.broadcast %cst_33 : f32 to vector<1x512xf32>
      %67 = arith.maximumf %65, %66 : vector<1x512xf32>
      %68 = arith.truncf %67 : vector<1x512xf32> to vector<1x512xbf16>
      %c0_34 = arith.constant 0 : index
      %c0_35 = arith.constant 0 : index
      %69 = vector.load %arg11[%c0_34, %c0_35] : memref<512x256xbf16, #tpu.memory_space<vmem>>, vector<512x256xbf16>
      %cst_36 = arith.constant dense<0.000000e+00> : vector<1x256xf32>
      %70 = tpu.matmul %68, %69, %cst_36 {dimension_numbers = #tpu.dot_dimension_numbers<[1], [0], [0], [1], [0, 0, 1, 1], [], []>} : vector<1x512xbf16>, vector<512x256xbf16>, vector<1x256xf32> -> vector<1x256xf32>
      %c0_37 = arith.constant 0 : index
      %c0_38 = arith.constant 0 : index
      %71 = vector.load %arg12[%c0_37, %c0_38] : memref<1x256xf32, #tpu.memory_space<vmem>>, vector<1x256xf32>
      %72 = arith.addf %70, %71 : vector<1x256xf32>
      %cst_39 = arith.constant 0.000000e+00 : f32
      %73 = vector.broadcast %cst_39 : f32 to vector<1x256xf32>
      %74 = arith.maximumf %72, %73 : vector<1x256xf32>
      %75 = arith.truncf %74 : vector<1x256xf32> to vector<1x256xbf16>
      %c0_40 = arith.constant 0 : index
      %c0_41 = arith.constant 0 : index
      %76 = vector.load %arg13[%c0_40, %c0_41] : memref<256x16xbf16, #tpu.memory_space<vmem>>, vector<256x16xbf16>
      %cst_42 = arith.constant dense<0.000000e+00> : vector<1x16xf32>
      %77 = tpu.matmul %75, %76, %cst_42 {dimension_numbers = #tpu.dot_dimension_numbers<[1], [0], [0], [1], [0, 0, 1, 1], [], []>} : vector<1x256xbf16>, vector<256x16xbf16>, vector<1x16xf32> -> vector<1x16xf32>
      %c0_43 = arith.constant 0 : index
      %c0_44 = arith.constant 0 : index
      %78 = vector.load %arg14[%c0_43, %c0_44] : memref<1x16xf32, #tpu.memory_space<vmem>>, vector<1x16xf32>
      %79 = arith.addf %77, %78 : vector<1x16xf32>
      %c0_45 = arith.constant 0 : index
      %c0_46 = arith.constant 0 : index
      %c0_47 = arith.constant 0 : index
      %80 = vector.load %arg15[%c0_45, %c0_46, %c0_47] : memref<1x1x16xf32, #tpu.memory_space<vmem>>, vector<1x1x16xf32>
      %81 = vector.shape_cast %80 : vector<1x1x16xf32> to vector<1x16xf32>
      %82 = vector.shape_cast %79 : vector<1x16xf32> to vector<1x1x16xf32>
      tpu.vector_store %arg15[%c0_45, %c0_46, %c0_47], %82 {strides = array<i32>} : memref<1x1x16xf32, #tpu.memory_space<vmem>>, vector<1x1x16xf32>,
    } else {
    }
    return
  }
  func.func @transform_0(%arg0: i32, %arg1: i32) -> (i32, i32, i32) {
    %c0_i32 = arith.constant 0 : i32
    %c0_i32_0 = arith.constant 0 : i32
    return %arg0, %c0_i32, %arg1 : i32, i32, i32
  }
  func.func @transform_1(%arg0: i32, %arg1: i32) -> (i32, i32) {
    %c0_i32 = arith.constant 0 : i32
    %c0_i32_0 = arith.constant 0 : i32
    %c0_i32_1 = arith.constant 0 : i32
    return %c0_i32, %c0_i32_0 : i32, i32
  }
  func.func @transform_2(%arg0: i32, %arg1: i32) -> (i32, i32) {
    %c0_i32 = arith.constant 0 : i32
    %c0_i32_0 = arith.constant 0 : i32
    %c0_i32_1 = arith.constant 0 : i32
    return %c0_i32, %c0_i32_0 : i32, i32
  }
  func.func @transform_3(%arg0: i32, %arg1: i32) -> (i32, i32) {
    %c0_i32 = arith.constant 0 : i32
    %c0_i32_0 = arith.constant 0 : i32
    %c0_i32_1 = arith.constant 0 : i32
    return %c0_i32, %c0_i32_0 : i32, i32
  }
  func.func @transform_4(%arg0: i32, %arg1: i32) -> (i32, i32) {
    %c0_i32 = arith.constant 0 : i32
    %c0_i32_0 = arith.constant 0 : i32
    %c0_i32_1 = arith.constant 0 : i32
    return %c0_i32, %c0_i32_0 : i32, i32
  }
  func.func @transform_5(%arg0: i32, %arg1: i32) -> (i32, i32) {
    %c0_i32 = arith.constant 0 : i32
    %c0_i32_0 = arith.constant 0 : i32
    %c0_i32_1 = arith.constant 0 : i32
    return %c0_i32, %c0_i32_0 : i32, i32
  }
  func.func @transform_6(%arg0: i32, %arg1: i32) -> (i32, i32) {
    %c0_i32 = arith.constant 0 : i32
    %c0_i32_0 = arith.constant 0 : i32
    %c0_i32_1 = arith.constant 0 : i32
    return %c0_i32, %c0_i32_0 : i32, i32
  }
  func.func @transform_7(%arg0: i32, %arg1: i32) -> (i32, i32) {
    %c0_i32 = arith.constant 0 : i32
    %c0_i32_0 = arith.constant 0 : i32
    %c0_i32_1 = arith.constant 0 : i32
    return %c0_i32, %c0_i32_0 : i32, i32
  }
  func.func @transform_8(%arg0: i32, %arg1: i32) -> (i32, i32) {
    %c0_i32 = arith.constant 0 : i32
    %c0_i32_0 = arith.constant 0 : i32
    %c0_i32_1 = arith.constant 0 : i32
    return %c0_i32, %c0_i32_0 : i32, i32
  }
  func.func @transform_9(%arg0: i32, %arg1: i32) -> (i32, i32) {
    %c0_i32 = arith.constant 0 : i32
    %c0_i32_0 = arith.constant 0 : i32
    %c0_i32_1 = arith.constant 0 : i32
    return %c0_i32, %c0_i32_0 : i32, i32
  }
  func.func @transform_10(%arg0: i32, %arg1: i32) -> (i32, i32) {
    %c0_i32 = arith.constant 0 : i32
    %c0_i32_0 = arith.constant 0 : i32
    %c0_i32_1 = arith.constant 0 : i32
    return %c0_i32, %c0_i32_0 : i32, i32
  }
  func.func @transform_11(%arg0: i32, %arg1: i32) -> (i32, i32) {
    %c0_i32 = arith.constant 0 : i32
    %c0_i32_0 = arith.constant 0 : i32
    %c0_i32_1 = arith.constant 0 : i32
    return %c0_i32, %c0_i32_0 : i32, i32
  }
  func.func @transform_12(%arg0: i32, %arg1: i32) -> (i32, i32) {
    %c0_i32 = arith.constant 0 : i32
    %c0_i32_0 = arith.constant 0 : i32
    %c0_i32_1 = arith.constant 0 : i32
    return %c0_i32, %c0_i32_0 : i32, i32
  }
  func.func @transform_13(%arg0: i32, %arg1: i32) -> (i32, i32, i32) {
    %c0_i32 = arith.constant 0 : i32
    %c0_i32_0 = arith.constant 0 : i32
    %c0_i32_1 = arith.constant 0 : i32
    return %arg0, %c0_i32, %c0_i32_0 : i32, i32, i32
  }
}

</mosaic_0001>

<bundles_post_ra>
// kernel: tpu_custom_call.1
= control target key start
LH: loop header
LB: loop body
LE: loop exit
PB: predicated region body
PF: predicated region fallthrough
CT: control target
= control target key end

     0   :  { %s6815_s0 = inlined_call_operand.vmem [shape: f32[2,4,16], index: 0, kind: input, shape index: {}]   ;;  %s6816_s1 = inlined_call_operand.vmem [shape: bf16[4,64], index: 1, kind: input, shape index: {}]   ;;  %s6817_s2 = inlined_call_operand.vmem [shape: f32[1,64], index: 2, kind: input, shape index: {}]   ;;  %s6818_s3 = inlined_call_operand.vmem [shape: bf16[64,128], index: 3, kind: input, shape index: {}]   ;;  %s6819_s4 = inlined_call_operand.vmem [shape: f32[1,128], index: 4, kind: input, shape index: {}]   ;;  %s6820_s5 = inlined_call_operand.hbm [shape: bf16[128,1024], index: 5, kind: input, shape index: {}]   ;;  %s6821_s6 = inlined_call_operand.vmem [shape: f32[1,1024], index: 6, kind: input, shape index: {}]   ;;  %s6822_s7 = inlined_call_operand.hbm [shape: bf16[1024,512], index: 7, kind: input, shape index: {}]   ;;  %s6823_s8 = inlined_call_operand.vmem [shape: f32[1,512], index: 8, kind: input, shape index: {}]   ;;  %s6824_s9 = inlined_call_operand.hbm [shape: bf16[512,256], index: 9, kind: input, shape index: {}]   ;;  %s6825_s10 = inlined_call_operand.vmem [shape: f32[1,256], index: 10, kind: input, shape index: {}]   ;;  %s6826_s11 = inlined_call_operand.vmem [shape: bf16[256,16], index: 11, kind: input, shape index: {}]   ;;  %s6827_s12 = inlined_call_operand.vmem [shape: f32[1,16], index: 12, kind: input, shape index: {}]   ;;  %s6828_s13 = inlined_call_operand.hbm [shape: f32[2,1,16], index: 13, kind: output, shape index: {}]  }
   0x1   :  { %6839 = sst [smem:[#allocation21_spill]] %s6822_s7 }
   0x2   :  { %6840 = sst [smem:[#allocation22_spill]] %s6827_s12 }
   0x3   :  { %6841 = sst [smem:[#allocation23_spill]] %s6828_s13 }
   0x4   :  { %18 = vsyncpa [#allocation4], 0 }
   0x5   :  { %19 = vsyncpa [#allocation7], 0 }
   0x6   :  { %20 = vsyncpa [#allocation5], 0 }
   0x7   :  { %22 = vsyncpa [#allocation5 + $0x1], 0  ;;  %s6455_s25 = smov 0   ;;  %s6457_s26 = smov 0  }
   0x8   :  { %s6459_s27 = smov 0   ;;  %s6461_s28 = smov 0  }
   0x9   :  { %s6463_s29 = smov 0   ;;  %s6465_s30 = smov 0  }
   0xa LB: > { %6842 = sst [smem:[#allocation13_spill]] %s6350_s25  ;;  %s4050_s14 = sadd.s32 4294967295, %s6370_s30   ;;  %s6370_s30 = sphi %s6465_s30, %s28_s30   ;;  %s6366_s29 = sphi %s6463_s29, %s6865_s29   ;;  %s6362_s28 = sphi %s6461_s28, %s6864_s28   ;;  %s6358_s27 = sphi %s6459_s27, %s6863_s27   ;;  %s6354_s26 = sphi %s6457_s26, %s6867_s26   ;;  %s6350_s25 = sphi %s6455_s25, %s6866_s25  }
   0xb   : > { %6843 = sst [smem:[#allocation14_spill]] %s6358_s27  ;;  %s4051_s15 = sadd.s32 4294967294, %s6370_s30  }
   0xc   : > { %6844 = sst [smem:[#allocation15_spill]] %s6366_s29  ;;  %s40_s16 = sadd.s32 1, %s6366_s29 }
   0xd   : > { %6845 = sst [smem:[#allocation16_spill]] %s6370_s30  ;;  %s327_s17 = sadd.s32 1, %s6358_s27 }
   0xe   : > { %p42_p0 = scmp.ge.s32.totalorder %s40_s16, 2  ;;  %p337_p1 = scmp.ne.s32.totalorder %s6358_s27, %s6354_s26 }
   0xf   : > { %p338_p2 = scmp.eq.s32.totalorder %s4050_s14, 1  ;;  %p343_p3 = scmp.ne.s32.totalorder %s6354_s26, %s6350_s25 }
  0x10   : > { %s6869_s16 = smov (%p42_p0, %s40_s16), 0  ;;  %p344_p5 = scmp.eq.s32.totalorder %s4051_s15, 1 }
  0x11   : > { %6846 = sst [smem:[#allocation17_spill]] %s6869_s16  ;;  %p6495_p4 = por %p338_p2, %p337_p1 }
  0x12   : > { %s324_s19 = ssub.s32 %s6366_s29, %s6869_s16  ;;  %p4052_p6 = scmp.ge.s32.totalorder %s6370_s30, 1 }
  0x13   : > { %s6847_s18 = scalar_select %p6495_p4, 1, 0 }
  0x14   : > { %p325_p7 = scmp.eq.s32.totalorder %s324_s19, 0  ;;  %p6502_p8 = por %p344_p5, %p343_p3 }
  0x15   : > { %6848 = sst [smem:[#allocation18_spill]] %s6847_s18  ;;  %p351_p9 = scmp.lt.s32.totalorder %s6370_s30, 3 }
  0x16   : > { %s6849_s20 = scalar_select %p6502_p8, 1, 0 }
  0x17   : > { %s6508_s21 = scalar_select %p325_p7, %s6358_s27, %s327_s17  }
  0x18   : > { %6850 = sst [smem:[#allocation19_spill]] %s6849_s20  ;;  %p6510_p10 = pnand %p4052_p6, %p351_p9 }
  0x19   : > { %6851 = sst [smem:[#allocation20_spill]] %s6508_s21  ;;  %p6514_p11 = scmp.eq.s32.totalorder %s4050_s14, 0 }
  0x1a   : > { %s6854_s7 = sld [smem:[#allocation21_spill]]  ;;  %p6099_p12 = pneg %p6510_p10 }
  0x1b   : > { %s6372_s16 = smov [#allocation6]   ;;  %s6373_s14 = smov 256  }
  0x1c   : > { %s393_s17 = sshll.u32 %s6372_s16, 4  ;;  %p6525_p13 = pnand %p6514_p11, %p6099_p12  ;;  %s394_s17 = int_to_ptr.vmem [resolvable:$true] %s393_s17 }
  0x1d   : > { %s6374_s21 = smov 16   ;;  %s6375_s27 = smov [#allocation3]  }
  0x1e   : > { %s376_s16 = sshll.u32 %s6375_s27, 4  ;;  %s408_s30 = sshll.u32 %s6824_s9, 4  ;;  %s377_s16 = int_to_ptr.vmem [resolvable:$true] %s376_s16  ;;  %s409_s30 = int_to_ptr.hbm [resolvable:$true] %s408_s30 }
  0x1f   : > { %s6376_s18 = smov 512   ;;  %s6377_s12 = smov 32  }
  0x20   : > { %s391_s19 = sshll.u32 %s6854_s7, 4  ;;  %s374_s7 = sshll.u32 %s6820_s5, 4  ;;  %s392_s19 = int_to_ptr.hbm [resolvable:$true] %s391_s19  ;;  %s375_s7 = int_to_ptr.hbm [resolvable:$true] %s374_s7 }
  0x21   : > { %6105 = dma.hbm_to_vmem [thread:$0]  (!%p6525_p13), %s392_s19, 32768, %s394_s17, [#allocation7], %s6373_s14, %s6373_s14, %s6374_s21  }
  0x22   : > { %6102 = dma.hbm_to_vmem [thread:$0]  (!%p6525_p13), %s375_s7, 8192, %s377_s16, [#allocation4], %s6376_s18, %s6376_s18, %s6377_s12  }
  0x23   : > { %s6378_s13 = smov [#allocation8]   ;;  %s6379_s19 = smov 128  }
  0x24   : > { %s410_s21 = sshll.u32 %s6378_s13, 4  ;;  %s6380_s17 = smov 8   ;;  %s411_s21 = int_to_ptr.vmem [resolvable:$true] %s410_s21 }
  0x25   : > { %6108 = dma.hbm_to_vmem [thread:$0]  (!%p6525_p13), %s409_s30, 8192, %s411_s21, [#allocation7], %s6379_s19, %s6379_s19, %s6380_s17  }
  0x26   : > { %445 = sbr.rel (%p6510_p10) target bundleno = 1317 (0x525), region = 72 }
  0x2b   : > { %6337 = dma.done.wait (%p6514_p11), [#allocation4], 8192  }
  0x2c   : > { %6339 = vsyncadd (%p6514_p11), [#allocation4], 4294959104 }
  0x2d   : > { %6341 = dma.done.wait (%p6514_p11), [#allocation7], 40960  }
  0x2e   : > { %6343 = vsyncadd (%p6514_p11), [#allocation7], 4294926336  ;;  %p501_p0 = scmp.lt.s32.totalorder %s6362_s28, 1  ;;  %v6381_v0 = vmov 2   ;;  %v6382_v1 = vmov 1   ;;  %v6383_v3 = vmov 0  }
  0x2f   : > { %6184 = vset.pattern.permute.xlu2 %v6381_v0  ;;  %6183 = vset.pattern.permute.xlu1 %v6382_v1  ;;  %v6384_v6 = vmov 3   ;;  %v5684_v7 = vld [vmem:[%s6818_s3 + $0x18] sm:$0xff]  ;;  %v5683_v8 = vld [vmem:[%s6818_s3 + $0x10] sm:$0xff]  ;;  %v5682_v9 = vld [vmem:[%s6818_s3 + $0x8] sm:$0xff]  ;;  %vm646_vm0 = vcmask 523264   ;;  %vm1269_vm1 = vcmask 1040384  }
  0x30   : > { %s502_s7 = scalar_select %p501_p0, %s6362_s28, 1  ;;  %654 = vmatpush.bf16.msra.mxu0 %v5684_v7  ;;  %v547_v10 = vld [vmem:[%s6816_s1] sm:$0x3]  ;;  %v5741_v19 = vld [vmem:[#allocation3 + $0x1c4] sm:$0xf]  ;;  %vm1271_vm2 = vcmask 1042434  }
  0x31   : > { %v5681_v13 = vld [vmem:[%s6818_s3] sm:$0xff]  ;;  %v6573_v14 = vunpack.c.l.bf16 %v547_v10  ;;  %v4313_v22 = vld [vmem:[#allocation3 + $0x1c8] sm:$0xf]  ;;  %v5742_v26 = vld [vmem:[#allocation3 + $0x1cc] sm:$0xf]  ;;  %vm1273_vm3 = vcmask 1041408  }
  0x32   : > { %s4061_s12 = sshll.u32 %s502_s7, 2  ;;  %v4305_v17 = vld [vmem:[#allocation3 + $0x1c0] sm:$0xf]  ;;  %v4307_v21 = vld [vmem:[#allocation3 + $0x1e0] sm:$0xf0]  ;;  %vm1275_vm4 = vcmask 1044484  }
  0x33   : > { %s507_s27 = scalar_lea.vmem %s6815_s0, %s4061_s12  ;;  %v570_v15 = vperm.slane %v6573_v14, 1  ;;  %v559_v16 = vperm.slane %v6573_v14, 0  ;;  %v5745_v18 = vld [vmem:[#allocation3 + $0x1dc] sm:$0xf0]  ;;  %v5746_v23 = vld [vmem:[#allocation3 + $0x1e4] sm:$0xf0]  ;;  %v4310_v24 = vor.u32 %v5741_v19, %v4307_v21 }
  0x34   : > { %v514_v2 = vld [vmem:[%s507_s27] sm:$0xf]  ;;  %655 = vmatpush.bf16.msra.mxu0 %v5683_v8  ;;  %v4306_v20 = vor.u32 %v5745_v18, %v4305_v17  ;;  %v4314_v25 = vor.u32 %v5746_v23, %v4313_v22  ;;  %v4315_v27 = vld [vmem:[#allocation3 + $0x1e8] sm:$0xf0]  ;;  %v5733_v32 = vld [vmem:[#allocation3 + $0x184] sm:$0xf] }
  0x35   : > { %515 = vxpose.xlu0.b32.start.end [1/1] (short) (narrow) %v514_v2, 16  ;;  %v4273_v28 = vld [vmem:[#allocation3 + $0x180] sm:$0xf]  ;;  %v4318_v30 = vor.u32 %v5742_v26, %v4315_v27  ;;  %v4275_v33 = vld [vmem:[#allocation3 + $0x1a0] sm:$0xf0]  ;;  %1083 = vmatpush.bf16.msra.mxu2 %v4310_v24  ;;  %v583_v45 = vperm.slane %v6573_v14, 2 }
  0x36   : > { %1069 = vmatpush.bf16.msra.mxu1 %v4306_v20  ;;  %v5737_v31 = vld [vmem:[#allocation3 + $0x19c] sm:$0xf0]  ;;  %1097 = vmatpush.bf16.msra.mxu3 %v4314_v25  ;;  %v4281_v37 = vld [vmem:[#allocation3 + $0x188] sm:$0xf]  ;;  %v5734_v39 = vld [vmem:[#allocation3 + $0x18c] sm:$0xf]  ;;  %v4278_v40 = vor.u32 %v5733_v32, %v4275_v33 }
  0x37   : > { %v4274_v36 = vor.u32 %v5737_v31, %v4273_v28  ;;  %v5738_v38 = vld [vmem:[#allocation3 + $0x1a4] sm:$0xf0]  ;;  %v4283_v42 = vld [vmem:[#allocation3 + $0x1a8] sm:$0xf0]  ;;  %v4241_v43 = vld [vmem:[#allocation3 + $0x140] sm:$0xf] }
  0x38   : > { %656 = vmatpush.bf16.msra.mxu0 %v5682_v9  ;;  %v4282_v41 = vor.u32 %v5738_v38, %v4281_v37  ;;  %v5729_v44 = vld [vmem:[#allocation3 + $0x15c] sm:$0xf0]  ;;  %v4286_v46 = vor.u32 %v5734_v39, %v4283_v42  ;;  %v5725_v47 = vld [vmem:[#allocation3 + $0x144] sm:$0xf]  ;;  %v4249_v52 = vld [vmem:[#allocation3 + $0x148] sm:$0xf] }
  0x39   : > { %v4243_v48 = vld [vmem:[#allocation3 + $0x160] sm:$0xf0]  ;;  %v4242_v51 = vor.u32 %v5729_v44, %v4241_v43  ;;  %v5730_v53 = vld [vmem:[#allocation3 + $0x164] sm:$0xf0]  ;;  %v5726_v54 = vld [vmem:[#allocation3 + $0x14c] sm:$0xf]  ;;  %1084 = vmatpush.bf16.msra.mxu2 %v4278_v40 }
  0x3a   : > { %1070 = vmatpush.bf16.msra.mxu1 %v4274_v36  ;;  %1098 = vmatpush.bf16.msra.mxu3 %v4282_v41  ;;  %v4246_v55 = vor.u32 %v5725_v47, %v4243_v48  ;;  %v4250_v56 = vor.u32 %v5730_v53, %v4249_v52  ;;  %v4251_v57 = vld [vmem:[#allocation3 + $0x168] sm:$0xf0]  ;;  %v4209_v58 = vld [vmem:[#allocation3 + $0x100] sm:$0xf]  ;;  %v5717_v61 = vld [vmem:[#allocation3 + $0x104] sm:$0xf] }
  0x3b   : > { %v5721_v59 = vld [vmem:[#allocation3 + $0x11c] sm:$0xf0]  ;;  %v4254_v60 = vor.u32 %v5726_v54, %v4251_v57  ;;  %v4211_v62 = vld [vmem:[#allocation3 + $0x120] sm:$0xf0]  ;;  %v4217_v63 = vld [vmem:[#allocation3 + $0x108] sm:$0xf] }
  0x3c   : > { %657 = vmatpush.bf16.msra.mxu0 %v5681_v13  ;;  %v4219_v2 = vld [vmem:[#allocation3 + $0x128] sm:$0xf0]  ;;  %v4214_v7 = vor.u32 %v5717_v61, %v4211_v62  ;;  %v4177_v9 = vld [vmem:[#allocation3 + $0xc0] sm:$0xf]  ;;  %v4179_v18 = vld [vmem:[#allocation3 + $0xe0] sm:$0xf0] }
  0x3d   : > { %1085 = vmatpush.bf16.msra.mxu2 %v4246_v55  ;;  %v5713_v10 = vld [vmem:[#allocation3 + $0xdc] sm:$0xf0]  ;;  %v4185_v19 = vld [vmem:[#allocation3 + $0xc8] sm:$0xf]  ;;  %v5710_v22 = vld [vmem:[#allocation3 + $0xcc] sm:$0xf] }
  0x3e   : > { %1071 = vmatpush.bf16.msra.mxu1 %v4242_v51  ;;  %1099 = vmatpush.bf16.msra.mxu3 %v4250_v56  ;;  %v5714_v20 = vld [vmem:[#allocation3 + $0xe4] sm:$0xf0]  ;;  %v4187_v23 = vld [vmem:[#allocation3 + $0xe8] sm:$0xf0]  ;;  %v4178_v25 = vor.u32 %v5713_v10, %v4177_v9  ;;  %v5701_v31 = vld [vmem:[#allocation3 + $0x84] sm:$0xf] }
  0x3f   : > { %v4186_v28 = vor.u32 %v5714_v20, %v4185_v19  ;;  %v4190_v33 = vor.u32 %v5710_v22, %v4187_v23  ;;  %v4153_v36 = vld [vmem:[#allocation3 + $0x88] sm:$0xf]  ;;  %v4155_v39 = vld [vmem:[#allocation3 + $0xa8] sm:$0xf0]  ;;  %v6191_v41 = vld [vmem:[%s6817_s2] ss:$0 sm:$0xff] }
  0x40   : > { %1111 = vmatpush.bf16.msrb.mxu0 %v4318_v30  ;;  %v5705_v30 = vld [vmem:[#allocation3 + $0x9c] sm:$0xf0]  ;;  %v5706_v37 = vld [vmem:[#allocation3 + $0xa4] sm:$0xf0]  ;;  %v5694_v53 = vld [vmem:[#allocation3 + $0x4c] sm:$0xf] }
  0x41   : > { %1086 = vmatpush.bf16.msra.mxu2 %v4214_v7  ;;  %v4113_v47 = vld [vmem:[#allocation3 + $0x40] sm:$0xf]  ;;  %v4123_v54 = vld [vmem:[#allocation3 + $0x68] sm:$0xf0]  ;;  %v5743_v19 = vld [vmem:[#allocation3 + $0x1d4] sm:$0xf] }
  0x42   : > { %v5697_v48 = vld [vmem:[#allocation3 + $0x5c] sm:$0xf0]  ;;  %v4126_v62 = vor.u32 %v5694_v53, %v4123_v54  ;;  %v4329_v22 = vld [vmem:[#allocation3 + $0x1d8] sm:$0xf]  ;;  %v4227_v53 = vld [vmem:[#allocation3 + $0x130] sm:$0xf0] }
  0x43   : > { %v4114_v56 = vor.u32 %v5697_v48, %v4113_v47  ;;  %v5689_v61 = vld [vmem:[#allocation3 + $0x1c] sm:$0xf0]  ;;  %v5748_v23 = vld [vmem:[#allocation3 + $0x1f4] sm:$0xf0]  ;;  %vm1277_vm5 = vcmask 1046534   ;;  %vm1279_vm6 = vcmask 1045508  }
  0x44   : > { %1112 = vmatpush.bf16.msrb.mxu0 %v4286_v46  ;;  %v4154_v46 = vor.u32 %v5706_v37, %v4153_v36  ;;  %v5740_v36 = vld [vmem:[#allocation3 + $0x1b4] sm:$0xf0]  ;;  %vm1281_vm7 = vcmask 1043456   ;;  %s499_s29 = sand.u32 1, %s6354_s26   ;;  %s6856_s20 = sld [smem:[#allocation23_spill]]  ;;  %vm3938_vm8 = vcmask 122880  }
  0x45   : > { %v5732_v47 = vld [vmem:[#allocation3 + $0x174] sm:$0xf0]  ;;  %s6857_s24 = sld [smem:[#allocation22_spill]]  ;;  %s500_s16 = scalar_lea.vmem [#allocation9], %s499_s29 }
  0x46   : > { %v4233_v54 = vld [vmem:[#allocation3 + $0x118] sm:$0xf]  ;;  %s3951_s21 = sshll.u32 %s500_s16, 4  ;;  %s3941_s17 = scalar_lea.sflag [#allocation5], %s499_s29  ;;  %s3952_s21 = int_to_ptr.vmem [resolvable:$true] %s3951_s21 }
  0x48   : > { %1113 = vmatpush.bf16.msrb.mxu0 %v4254_v60  ;;  %v4081_v60 = vld [vmem:[#allocation3] sm:$0xf] }
  0x4a   : > { %s3949_s22 = scalar_lea.hbm %s6856_s20, %s6362_s28  ;;  %s6304_s25 = scalar_lea.hbm %s6856_s20, 2 }
  0x4b   : > { %s3953_s19 = sshll.u32 %s3949_s22, 4  ;;  %s3954_s19 = int_to_ptr.hbm [resolvable:$true] %s3953_s19 }
  0x4c   : > { %s6298_s7 = sshra.s32 %s3954_s19, 4  ;;  %s6299_s7 = int_to_ptr.hbm [resolvable:$true] %s6298_s7 }
  0x4d   : > { %s6300_s12 = scalar_lea.hbm %s6299_s7, 1  ;;  %p6305_p5 = scmp.lt.s32.totalorder %s6299_s7, %s6856_s20 }
  0x4e   : > { %p6301_p1 = scmp.ne.s32.totalorder %s6299_s7, %s6300_s12  ;;  %p6306_p6 = scmp.lt.s32.totalorder %s6304_s25, %s6300_s12 }
  0x50   : > { %p6302_p2 = pnand %p6301_p1, %p6495_p4  ;;  %p6307_p7 = por %p6306_p6, %p6305_p5 }
  0x52   : > { %p6303_p3 = pneg %p6302_p2 }
  0x54   : > { %p6308_p9 = pnand %p6307_p7, %p6303_p3 }
  0x9c   : > { %6182 = vset.pattern.permute.xlu0 %v6383_v3 }
  0xd9   : > { %v531_v4 = vpop.trf.xlu0 }
  0xda   : > { %576 = vperm.xlu2 %6184, %v531_v4   ;;  %563 = vperm.xlu1 %6183, %v531_v4  }
  0xdb   : > { %551 = vperm.xlu0 %6182, %v531_v4  }
  0xe1   : > { %v532_v5 = vpop.trf.xlu0 }
  0xe2   : > { %6186 = vset.pattern.permute.xlu2 %v6382_v1  ;;  %6185 = vset.pattern.permute.xlu1 %v6383_v3  ;;  %v5718_v1 = vld [vmem:[#allocation3 + $0x10c] sm:$0xf]  ;;  %v596_v3 = vperm.slane %v6573_v14, 3 }
  0xe3   : > { %567 = vperm.xlu2 %6186, %v532_v5   ;;  %556 = vperm.xlu1 %6185, %v532_v5   ;;  %v4222_v17 = vor.u32 %v5718_v1, %v4219_v2  ;;  %v4089_v1 = vld [vmem:[#allocation3 + $0x8] sm:$0xf] }
  0xe4   : > { %6190 = vset.pattern.permute.xlu0 %v6384_v6 }
  0xe5   : > { %1114 = vmatpush.bf16.msrb.mxu0 %v4222_v17  ;;  %v4321_v17 = vld [vmem:[#allocation3 + $0x1d0] sm:$0xf] }
  0xe9   : > { %1115 = vmatpush.bf16.msrb.mxu0 %v4190_v33  ;;  %v4291_v33 = vld [vmem:[#allocation3 + $0x1b0] sm:$0xf0] }
  0xeb   : > { %6188 = vset.pattern.permute.xlu2 %v6384_v6  ;;  %6187 = vset.pattern.permute.xlu1 %v6381_v0  ;;  %v5722_v0 = vld [vmem:[#allocation3 + $0x124] sm:$0xf0] }
  0xec   : > { %589 = vperm.xlu2 %6188, %v531_v4   ;;  %580 = vperm.xlu1 %6187, %v532_v5   ;;  %v4218_v8 = vor.u32 %v5722_v0, %v4217_v63  ;;  %v5685_v63 = vld [vmem:[#allocation3 + $0x4] sm:$0xf] }
  0xed   : > { %v4083_v0 = vld [vmem:[#allocation3 + $0x20] sm:$0xf0] }
  0xee   : > { %1100 = vmatpush.bf16.msra.mxu3 %v4218_v8  ;;  %v4086_v9 = vor.u32 %v5685_v63, %v4083_v0  ;;  %v5711_v63 = vld [vmem:[#allocation3 + $0xd4] sm:$0xf] }
  0xf2   : > { %1101 = vmatpush.bf16.msra.mxu3 %v4186_v28 }
  0xf4   : > { %6189 = vset.pattern.permute.xlu1 %v6384_v6 }
  0xf5   : > { %593 = vperm.xlu1 %6189, %v532_v5   ;;  %v4210_v5 = vor.u32 %v5721_v59, %v4209_v58 }
  0xf6   : > { %1102 = vmatpush.bf16.msra.mxu3 %v4154_v46  ;;  %v4265_v46 = vld [vmem:[#allocation3 + $0x158] sm:$0xf] }
  0xf7   : > { %1072 = vmatpush.bf16.msra.mxu1 %v4210_v5  ;;  %v4091_v5 = vld [vmem:[#allocation3 + $0x28] sm:$0xf0] }
  0xfb   : > { %1073 = vmatpush.bf16.msra.mxu1 %v4178_v25  ;;  %v4330_v25 = vor.u32 %v5748_v23, %v4329_v22  ;;  %v4171_v23 = vld [vmem:[#allocation3 + $0xb8] sm:$0xf0] }
 0x134   : > { %v6568_v11 = vpop.permute.xlu2 %576 }
 0x135   : > { %v584_v13 = vmul.f32 %v583_v45, %v6568_v11  ;;  %v4145_v11 = vld [vmem:[#allocation3 + $0x80] sm:$0xf] }
 0x136   : > { %v4146_v42 = vor.u32 %v5705_v30, %v4145_v11  ;;  %v4289_v11 = vld [vmem:[#allocation3 + $0x190] sm:$0xf] }
 0x137   : > { %v5739_v30 = vld [vmem:[#allocation3 + $0x1ac] sm:$0xf0] }
 0x138   : > { %1074 = vmatpush.bf16.msra.mxu1 %v4146_v42  ;;  %v5727_v42 = vld [vmem:[#allocation3 + $0x154] sm:$0xf] }
 0x13c   : > { %1075 = vmatpush.bf16.msra.mxu1 %v4114_v56 }
 0x13d   : > { %v6579_v34 = vpop.permute.xlu2 %567 }
 0x13e   : > { %v572_v38 = vmul.f32 %v570_v15, %v6579_v34 }
 0x146   : > { %v590_v21 = vpop.permute.xlu2 %589 }
 0x147   : > { %v597_v32 = vmul.f32 %v596_v3, %v590_v21  ;;  %v4323_v21 = vld [vmem:[#allocation3 + $0x1f0] sm:$0xf0] }
 0x14c   : > { %v564_v12 = vpop.permute.xlu1 %563 }
 0x14d   : > { %v552_v35 = vpop.permute.xlu0 %551  ;;  %v571_v49 = vmul.f32 %v570_v15, %v564_v12  ;;  %v5709_v12 = vld [vmem:[#allocation3 + $0xc4] sm:$0xf] }
 0x14e   : > { %v560_v50 = vmul.f32 %v559_v16, %v552_v35  ;;  %v4182_v27 = vor.u32 %v5709_v12, %v4179_v18  ;;  %v4147_v35 = vld [vmem:[#allocation3 + $0xa0] sm:$0xf0]  ;;  %v5747_v18 = vld [vmem:[#allocation3 + $0x1ec] sm:$0xf0] }
 0x14f   : > { %v4150_v44 = vor.u32 %v5701_v31, %v4147_v35  ;;  %v5693_v15 = vld [vmem:[#allocation3 + $0x44] sm:$0xf]  ;;  %v4322_v20 = vor.u32 %v5747_v18, %v4321_v17  ;;  %v5735_v31 = vld [vmem:[#allocation3 + $0x194] sm:$0xf]  ;;  %v4297_v35 = vld [vmem:[#allocation3 + $0x198] sm:$0xf] }
 0x150   : > { %v573_v4 = vadd.f32 %v571_v49, %v560_v50  ;;  %1087 = vmatpush.bf16.msra.mxu2 %v4182_v27  ;;  %v4121_v49 = vld [vmem:[#allocation3 + $0x48] sm:$0xf]  ;;  %v4331_v27 = vld [vmem:[#allocation3 + $0x1f8] sm:$0xf0]  ;;  %v4294_v37 = vor.u32 %v5735_v31, %v4291_v33  ;;  %v5700_v31 = vld [vmem:[#allocation3 + $0x74] sm:$0xf0] }
 0x151   : > { %v5698_v50 = vld [vmem:[#allocation3 + $0x64] sm:$0xf0]  ;;  %v4139_v33 = vld [vmem:[#allocation3 + $0x78] sm:$0xf0] }
 0x152   : > { %v586_v24 = vadd.f32 %v584_v13, %v573_v4  ;;  %v4122_v59 = vor.u32 %v5698_v50, %v4121_v49  ;;  %v5690_v4 = vld [vmem:[#allocation3 + $0x24] sm:$0xf0]  ;;  %v4225_v49 = vld [vmem:[#allocation3 + $0x110] sm:$0xf] }
 0x153   : > { %v4090_v10 = vor.u32 %v5690_v4, %v4089_v1  ;;  %v5723_v50 = vld [vmem:[#allocation3 + $0x12c] sm:$0xf0]  ;;  %v4195_v1 = vld [vmem:[#allocation3 + $0xf0] sm:$0xf0]  ;;  %v5716_v4 = vld [vmem:[#allocation3 + $0xf4] sm:$0xf0] }
 0x154   : > { %v599_v40 = vadd.f32 %v597_v32, %v586_v24  ;;  %1088 = vmatpush.bf16.msra.mxu2 %v4150_v44  ;;  %1103 = vmatpush.bf16.msra.mxu3 %v4122_v59  ;;  %v4326_v24 = vor.u32 %v5743_v19, %v4323_v21  ;;  %v4290_v32 = vor.u32 %v5739_v30, %v4289_v11  ;;  %v4259_v44 = vld [vmem:[#allocation3 + $0x170] sm:$0xf0]  ;;  %v4235_v59 = vld [vmem:[#allocation3 + $0x138] sm:$0xf0]  ;;  %v4169_v19 = vld [vmem:[#allocation3 + $0x98] sm:$0xf] }
 0x155   : > { %v6577_v29 = vpop.permute.xlu1 %556  ;;  %v4262_v48 = vor.u32 %v5727_v42, %v4259_v44  ;;  %v5704_v21 = vld [vmem:[#allocation3 + $0x9c] sm:$0xf]  ;;  %v4137_v11 = vld [vmem:[#allocation3 + $0x58] sm:$0xf] }
 0x156   : > { %v561_v26 = vmul.f32 %v559_v16, %v6577_v29  ;;  %v5702_v29 = vld [vmem:[#allocation3 + $0x8c] sm:$0xf]  ;;  %v605_v55 = vadd.f32 %v6191_v41, %v599_v40  ;;  %v4257_v40 = vld [vmem:[#allocation3 + $0x150] sm:$0xf]  ;;  %v5688_v42 = vld [vmem:[#allocation3 + $0x1c] sm:$0xf] }
 0x157   : > { %v4158_v14 = vor.u32 %v5702_v29, %v4155_v39  ;;  %v4299_v29 = vld [vmem:[#allocation3 + $0x1b8] sm:$0xf0] }
 0x158   : > { %v574_v43 = vadd.f32 %v572_v38, %v561_v26  ;;  %v607_v8 = vmax.f32 %v605_v55, 0.0  ;;  %1104 = vmatpush.bf16.msra.mxu3 %v4090_v10  ;;  %v5744_v26 = vld [vmem:[#allocation3 + $0x1dc] sm:$0xf]  ;;  %v4298_v38 = vor.u32 %v5740_v36, %v4297_v35  ;;  %v5724_v55 = vld [vmem:[#allocation3 + $0x134] sm:$0xf0]  ;;  %v4138_v36 = vor.u32 %v5700_v31, %v4137_v11 }
 0x159   : > { %1116 = vmatpush.bf16.msrb.mxu0 %v4158_v14  ;;  %v4334_v28 = vor.u32 %v5744_v26, %v4331_v27  ;;  %v4267_v14 = vld [vmem:[#allocation3 + $0x178] sm:$0xf0]  ;;  %v5707_v10 = vld [vmem:[#allocation3 + $0xac] sm:$0xf0]  ;;  %v4174_v26 = vor.u32 %v5704_v21, %v4171_v23  ;;  %v5695_v27 = vld [vmem:[#allocation3 + $0x54] sm:$0xf] }
 0x15a   : > { %v5803_v21 = vld [vmem:[#allocation6 + $0x1ac] sm:$0xf0]  ;;  %v4401_v11 = vld [vmem:[#allocation6 + $0x80] sm:$0xf] }
 0x15b   : > { %v4529_v31 = vld [vmem:[#allocation6 + $0x180] sm:$0xf] }
 0x15c   : > { %1153 = vmatpush.bf16.msrb.mxu3 %v4330_v25  ;;  %v5699_v25 = vld [vmem:[#allocation3 + $0x6c] sm:$0xf0] }
 0x15d   : > { %1117 = vmatpush.bf16.msrb.mxu0 %v4126_v62  ;;  %v5715_v62 = vld [vmem:[#allocation3 + $0xec] sm:$0xf0] }
 0x15e   : > { %v581_v6 = vpop.permute.xlu1 %580 }
 0x15f   : > { %v585_v16 = vmul.f32 %v583_v45, %v581_v6  ;;  %v4115_v45 = vld [vmem:[#allocation3 + $0x60] sm:$0xf0]  ;;  %v4082_v6 = vor.u32 %v5689_v61, %v4081_v60  ;;  %v4193_v61 = vld [vmem:[#allocation3 + $0xd0] sm:$0xf] }
 0x160   : > { %v4118_v58 = vor.u32 %v5693_v15, %v4115_v45  ;;  %1154 = vmatpush.bf16.msrb.mxu3 %v4298_v38  ;;  %v4266_v15 = vor.u32 %v5732_v47, %v4265_v46  ;;  %v4194_v0 = vor.u32 %v5715_v62, %v4193_v61  ;;  %v5691_v38 = vld [vmem:[#allocation3 + $0x2c] sm:$0xf0]  ;;  %v4833_v62 = vld [vmem:[#allocation6 + $0x3e0] sm:$0xf] }
 0x161   : > { %v587_v51 = vadd.f32 %v585_v16, %v574_v43  ;;  %1076 = vmatpush.bf16.msra.mxu1 %v4082_v6  ;;  %v5736_v16 = vld [vmem:[#allocation3 + $0x19c] sm:$0xf] }
 0x162   : > { %1089 = vmatpush.bf16.msra.mxu2 %v4118_v58  ;;  %v4302_v39 = vor.u32 %v5736_v16, %v4299_v29  ;;  %v5720_v58 = vld [vmem:[#allocation3 + $0x11c] sm:$0xf]  ;;  %v5687_v16 = vld [vmem:[#allocation3 + $0x14] sm:$0xf] }
 0x163   : > { %v4238_v60 = vor.u32 %v5720_v58, %v4235_v59  ;;  %v5712_v6 = vld [vmem:[#allocation3 + $0xdc] sm:$0xf]  ;;  %v4705_v58 = vld [vmem:[#allocation6 + $0x2e0] sm:$0xf]  ;;  %v5843_v59 = vld [vmem:[#allocation6 + $0x2ec] sm:$0xf0] }
 0x164   : > { %1155 = vmatpush.bf16.msrb.mxu3 %v4266_v15  ;;  %v4706_v61 = vor.u32 %v5843_v59, %v4705_v58  ;;  %v4753_v58 = vld [vmem:[#allocation6 + $0x340] sm:$0xf]  ;;  %v5855_v59 = vld [vmem:[#allocation6 + $0x34c] sm:$0xf0] }
 0x165   : > { %1125 = vmatpush.bf16.msrb.mxu1 %v4322_v20  ;;  %v5708_v20 = vld [vmem:[#allocation3 + $0xb4] sm:$0xf0] }
 0x166   : > { %1090 = vmatpush.bf16.msra.mxu2 %v4086_v9  ;;  %v4170_v22 = vor.u32 %v5708_v20, %v4169_v19  ;;  %v4545_v20 = vld [vmem:[#allocation6 + $0x1a0] sm:$0xf] }
 0x167   : > { %v594_v34 = vpop.permute.xlu1 %593  ;;  %v4546_v23 = vor.u32 %v5803_v21, %v4545_v20 }
 0x168   : > { %v598_v52 = vmul.f32 %v596_v3, %v594_v34  ;;  %v5686_v3 = vld [vmem:[#allocation3 + $0xc] sm:$0xf]  ;;  %v5728_v34 = vld [vmem:[#allocation3 + $0x15c] sm:$0xf] }
 0x169   : > { %v4094_v12 = vor.u32 %v5686_v3, %v4091_v5  ;;  %1126 = vmatpush.bf16.msrb.mxu1 %v4290_v32  ;;  %v4270_v45 = vor.u32 %v5728_v34, %v4267_v14  ;;  %v4198_v3 = vor.u32 %v5711_v63, %v4195_v1  ;;  %v5696_v32 = vld [vmem:[#allocation3 + $0x5c] sm:$0xf]  ;;  %v6192_v34 = vld [vmem:[%s6819_s4] ss:$0 sm:$0xff]  ;;  %v5875_v63 = vld [vmem:[#allocation6 + $0x3ec] sm:$0xf0] }
 0x16a   : > { %v600_v57 = vadd.f32 %v598_v52, %v587_v51  ;;  %1139 = vmatpush.bf16.msrb.mxu2 %v4326_v24  ;;  %v5719_v51 = vld [vmem:[#allocation3 + $0x114] sm:$0xf]  ;;  %v4226_v52 = vor.u32 %v5723_v50, %v4225_v49  ;;  %v4129_v24 = vld [vmem:[#allocation3 + $0x50] sm:$0xf]  ;;  %v4142_v29 = vor.u32 %v5696_v32, %v4139_v33  ;;  %v4433_v1 = vld [vmem:[#allocation6 + $0xc0] sm:$0xf] }
 0x16b   : > { %1118 = vmatpush.bf16.msrb.mxu0 %v4094_v12  ;;  %v4230_v56 = vor.u32 %v5719_v51, %v4227_v53  ;;  %v5703_v12 = vld [vmem:[#allocation3 + $0x94] sm:$0xf]  ;;  %v4130_v30 = vor.u32 %v5699_v25, %v4129_v24  ;;  %v4449_v53 = vld [vmem:[#allocation6 + $0xe0] sm:$0xf]  ;;  %v5835_v24 = vld [vmem:[#allocation6 + $0x2ac] sm:$0xf0] }
 0x16c   : > { %v606_v2 = vadd.f32 %v6191_v41, %v600_v57  ;;  %v5731_v41 = vld [vmem:[#allocation3 + $0x16c] sm:$0xf0]  ;;  %v4234_v57 = vor.u32 %v5724_v55, %v4233_v54  ;;  %v4577_v55 = vld [vmem:[#allocation6 + $0x1e0] sm:$0xf] }
 0x16d   : > { %v4258_v43 = vor.u32 %v5731_v41, %v4257_v40  ;;  %v4105_v40 = vld [vmem:[#allocation3 + $0x18] sm:$0xf]  ;;  %v5779_v54 = vld [vmem:[#allocation6 + $0xec] sm:$0xf0]  ;;  %v4801_v25 = vld [vmem:[#allocation6 + $0x3a0] sm:$0xf] }
 0x16e   : > { %v608_v7 = vmax.f32 %v606_v2, 0.0  ;;  %1140 = vmatpush.bf16.msrb.mxu2 %v4294_v37  ;;  %1156 = vmatpush.bf16.msrb.mxu3 %v4234_v57  ;;  %v4201_v2 = vld [vmem:[#allocation3 + $0xd8] sm:$0xf]  ;;  %v4097_v37 = vld [vmem:[#allocation3 + $0x10] sm:$0xf] }
 0x16f   : > { %1127 = vmatpush.bf16.msrb.mxu1 %v4258_v43  ;;  %v4202_v5 = vor.u32 %v5716_v4, %v4201_v2  ;;  %v5692_v41 = vld [vmem:[#allocation3 + $0x34] sm:$0xf0]  ;;  %v4107_v43 = vld [vmem:[#allocation3 + $0x38] sm:$0xf0]  ;;  %v4098_v44 = vor.u32 %v5691_v38, %v4097_v37  ;;  %v5811_v57 = vld [vmem:[#allocation6 + $0x1ec] sm:$0xf0] }
 0x170   : > { %v609_v13 = vpack.c.bf16 %v608_v7, %v607_v8  ;;  %v4203_v7 = vld [vmem:[#allocation3 + $0xf8] sm:$0xf0]  ;;  %v4161_v8 = vld [vmem:[#allocation3 + $0x90] sm:$0xf]  ;;  %v4106_v47 = vor.u32 %v5692_v41, %v4105_v40  ;;  %v4561_v4 = vld [vmem:[#allocation6 + $0x1c0] sm:$0xf] }
 0x171   : > { %v4206_v9 = vor.u32 %v5712_v6, %v4203_v7  ;;  %v4162_v17 = vor.u32 %v5707_v10, %v4161_v8  ;;  %v5775_v2 = vld [vmem:[#allocation6 + $0xcc] sm:$0xf0]  ;;  %v4689_v6 = vld [vmem:[#allocation6 + $0x2c0] sm:$0xf] }
 0x172   : > { %4078 = vmatmul.msk.bf16.vlgmr.msra.gmra.mxu0 %vm646_vm0, %v609_v13  ;;  %1141 = vmatpush.bf16.msrb.mxu2 %v4262_v48  ;;  %v4163_v13 = vld [vmem:[#allocation3 + $0xb0] sm:$0xf0]  ;;  %v4110_v48 = vor.u32 %v5688_v42, %v4107_v43  ;;  %v5839_v7 = vld [vmem:[#allocation6 + $0x2cc] sm:$0xf0]  ;;  %v4817_v10 = vld [vmem:[#allocation6 + $0x3c0] sm:$0xf] }
 0x173   : > { %1167 = vmatpush.bf16.msra.mxu0 %v4334_v28  ;;  %1128 = vmatpush.bf16.msrb.mxu1 %v4226_v52  ;;  %v4166_v18 = vor.u32 %v5703_v12, %v4163_v13  ;;  %v4131_v28 = vld [vmem:[#allocation3 + $0x70] sm:$0xf0]  ;;  %v5871_v12 = vld [vmem:[#allocation6 + $0x3cc] sm:$0xf0]  ;;  %v4385_v40 = vld [vmem:[#allocation6 + $0x60] sm:$0xf] }
 0x174   : > { %1157 = vmatpush.bf16.msrb.mxu3 %v4202_v5  ;;  %v4134_v35 = vor.u32 %v5695_v27, %v4131_v28  ;;  %v5807_v5 = vld [vmem:[#allocation6 + $0x1cc] sm:$0xf0]  ;;  %v4818_v13 = vor.u32 %v5871_v12, %v4817_v10  ;;  %v4513_v42 = vld [vmem:[#allocation6 + $0x160] sm:$0xf] }
 0x175   : > { %v4562_v8 = vor.u32 %v5807_v5, %v4561_v4  ;;  %v5799_v33 = vld [vmem:[#allocation6 + $0x18c] sm:$0xf0]  ;;  %v4737_v5 = vld [vmem:[#allocation6 + $0x320] sm:$0xf] }
 0x176   : > { %1142 = vmatpush.bf16.msrb.mxu2 %v4230_v56  ;;  %v4450_v56 = vor.u32 %v5779_v54, %v4449_v53  ;;  %v4530_v37 = vor.u32 %v5799_v33, %v4529_v31  ;;  %v5763_v41 = vld [vmem:[#allocation6 + $0x6c] sm:$0xf0]  ;;  %v4625_v54 = vld [vmem:[#allocation6 + $0x240] sm:$0xf] }
 0x177   : > { %1168 = vmatpush.bf16.msra.mxu0 %v4302_v39  ;;  %1129 = vmatpush.bf16.msrb.mxu1 %v4194_v0  ;;  %v4099_v39 = vld [vmem:[#allocation3 + $0x30] sm:$0xf0]  ;;  %v4834_v0 = vor.u32 %v5875_v63, %v4833_v62  ;;  %v4386_v43 = vor.u32 %v5763_v41, %v4385_v40  ;;  %v5791_v53 = vld [vmem:[#allocation6 + $0x14c] sm:$0xf0]  ;;  %v4465_v12 = vld [vmem:[#allocation6 + $0x100] sm:$0xf] }
 0x178   : > { %1158 = vmatpush.bf16.msrb.mxu3 %v4170_v22  ;;  %v4102_v46 = vor.u32 %v5687_v16, %v4099_v39  ;;  %v4673_v22 = vld [vmem:[#allocation6 + $0x2a0] sm:$0xf]  ;;  %v5755_v62 = vld [vmem:[#allocation6 + $0x2c] sm:$0xf0] }
 0x179   : > { %v4674_v27 = vor.u32 %v5835_v24, %v4673_v22  ;;  %v4785_v16 = vld [vmem:[#allocation6 + $0x380] sm:$0xf]  ;;  %v5751_v10 = vld [vmem:[#allocation6 + $0xc] sm:$0xf0] }
 0x17a   : > { %1143 = vmatpush.bf16.msrb.mxu2 %v4198_v3  ;;  %v4434_v3 = vor.u32 %v5775_v2, %v4433_v1  ;;  %v5787_v1 = vld [vmem:[#allocation6 + $0x12c] sm:$0xf0]  ;;  %v4609_v2 = vld [vmem:[#allocation6 + $0x220] sm:$0xf] }
 0x17b   : > { %1169 = vmatpush.bf16.msra.mxu0 %v4270_v45  ;;  %1130 = vmatpush.bf16.msrb.mxu1 %v4162_v17  ;;  %v4417_v17 = vld [vmem:[#allocation6 + $0xa0] sm:$0xf]  ;;  %v5935_v41 = vld [vmem:[#allocation6 + $0x5cc] sm:$0xf0] }
 0x17c   : > { %1159 = vmatpush.bf16.msrb.mxu3 %v4138_v36  ;;  %v5831_v36 = vld [vmem:[#allocation6 + $0x28c] sm:$0xf0]  ;;  %v4721_v22 = vld [vmem:[#allocation6 + $0x300] sm:$0xf] }
 0x17d   : > { %v4961_v24 = vld [vmem:[#allocation6 + $0x4e0] sm:$0xf] }
 0x17e   : > { %1144 = vmatpush.bf16.msrb.mxu2 %v4166_v18  ;;  %v5771_v18 = vld [vmem:[#allocation6 + $0xac] sm:$0xf0]  ;;  %v5217_v31 = vld [vmem:[#allocation6 + $0x6e0] sm:$0xf] }
 0x17f   : > { %1170 = vmatpush.bf16.msra.mxu0 %v4238_v60  ;;  %1131 = vmatpush.bf16.msrb.mxu1 %v4130_v30  ;;  %v4578_v60 = vor.u32 %v5811_v57, %v4577_v55  ;;  %v4418_v19 = vor.u32 %v5771_v18, %v4417_v17  ;;  %v5767_v30 = vld [vmem:[#allocation6 + $0x8c] sm:$0xf0]  ;;  %v4593_v18 = vld [vmem:[#allocation6 + $0x200] sm:$0xf] }
 0x180   : > { %1160 = vmatpush.bf16.msrb.mxu3 %v4106_v47  ;;  %v4402_v32 = vor.u32 %v5767_v30, %v4401_v11  ;;  %v5827_v47 = vld [vmem:[#allocation6 + $0x26c] sm:$0xf0]  ;;  %v5345_v33 = vld [vmem:[#allocation6 + $0x7e0] sm:$0xf] }
 0x181   : > { %v5823_v55 = vld [vmem:[#allocation6 + $0x24c] sm:$0xf0]  ;;  %v5073_v40 = vld [vmem:[#allocation6 + $0x5c0] sm:$0xf] }
 0x182   : > { %1145 = vmatpush.bf16.msrb.mxu2 %v4134_v35  ;;  %v4657_v35 = vld [vmem:[#allocation6 + $0x280] sm:$0xf]  ;;  %v4626_v57 = vor.u32 %v5823_v55, %v4625_v54  ;;  %v5783_v17 = vld [vmem:[#allocation6 + $0x10c] sm:$0xf0] }
 0x183   : > { %1171 = vmatpush.bf16.msra.mxu0 %v4206_v9  ;;  %1132 = vmatpush.bf16.msrb.mxu1 %v4098_v44  ;;  %v4690_v9 = vor.u32 %v5839_v7, %v4689_v6  ;;  %v4658_v38 = vor.u32 %v5831_v36, %v4657_v35  ;;  %v5795_v44 = vld [vmem:[#allocation6 + $0x16c] sm:$0xf0]  ;;  %v4466_v20 = vor.u32 %v5783_v17, %v4465_v12  ;;  %v5185_v54 = vld [vmem:[#allocation6 + $0x6a0] sm:$0xf] }
 0x184   : > { %v5851_v6 = vld [vmem:[#allocation6 + $0x32c] sm:$0xf0] }
 0x185   : > { %v6003_v36 = vld [vmem:[#allocation6 + $0x7ec] sm:$0xf0] }
 0x186   : > { %1146 = vmatpush.bf16.msrb.mxu2 %v4102_v46  ;;  %v4641_v46 = vld [vmem:[#allocation6 + $0x260] sm:$0xf]  ;;  %v5963_v55 = vld [vmem:[#allocation6 + $0x6ac] sm:$0xf0] }
 0x187   : > { %1172 = vmatpush.bf16.msra.mxu0 %v4174_v26  ;;  %v5867_v26 = vld [vmem:[#allocation6 + $0x3ac] sm:$0xf0] }
 0x188   : > { %v4802_v28 = vor.u32 %v5867_v26, %v4801_v25  ;;  %v5907_v26 = vld [vmem:[#allocation6 + $0x4ec] sm:$0xf0] }
 0x189   : > { %v4962_v11 = vor.u32 %v5907_v26, %v4961_v24  ;;  %v5991_v17 = vld [vmem:[#allocation6 + $0x78c] sm:$0xf0] }
 0x18b   : > { %1173 = vmatpush.bf16.msra.mxu0 %v4142_v29  ;;  %v5863_v29 = vld [vmem:[#allocation6 + $0x38c] sm:$0xf0] }
 0x18c   : > { %v4786_v39 = vor.u32 %v5863_v29, %v4785_v16  ;;  %v5346_v29 = vor.u32 %v6003_v36, %v5345_v33  ;;  %v5955_v33 = vld [vmem:[#allocation6 + $0x66c] sm:$0xf0] }
 0x18f   : > { %1174 = vmatpush.bf16.msra.mxu0 %v4110_v48  ;;  %v4514_v48 = vor.u32 %v5795_v44, %v4513_v42  ;;  %v5201_v42 = vld [vmem:[#allocation6 + $0x6c0] sm:$0xf]  ;;  %v5074_v44 = vor.u32 %v5935_v41, %v5073_v40 }
 0x1ef   : > { %v659_v15 = vpop.f32.mrf.mxu0 }
 0x1f0   : > { %v660_v14 = vadd.f32 %v6192_v34, %v659_v15  ;;  %v4642_v15 = vor.u32 %v5827_v47, %v4641_v46  ;;  %v5967_v46 = vld [vmem:[#allocation6 + $0x6cc] sm:$0xf0]  ;;  %v5329_v47 = vld [vmem:[#allocation6 + $0x7c0] sm:$0xf] }
 0x1f2   : > { %v664_v50 = vmax.f32 %v660_v14, 0.0  ;;  %v5859_v14 = vld [vmem:[#allocation6 + $0x36c] sm:$0xf0] }
 0x1f7   : > { %v661_v45 = vpop.f32.mrf.mxu0 }
 0x1f8   : > { %v662_v49 = vadd.f32 %v6192_v34, %v661_v45  ;;  %v4769_v34 = vld [vmem:[#allocation6 + $0x360] sm:$0xf] }
 0x1f9   : > { %v4770_v45 = vor.u32 %v5859_v14, %v4769_v34  ;;  %v6607_v34 = vld [vmem:[%s6821_s6] sm:$0xff] }
 0x1fa   : > { %v665_v51 = vmax.f32 %v662_v49, 0.0  ;;  %v4369_v49 = vld [vmem:[#allocation6 + $0x40] sm:$0xf]  ;;  %v737_v41 = vperm.slane %v6607_v34, 4 }
 0x1fc   : > { %v666_v52 = vpack.c.bf16 %v665_v51, %v664_v50  ;;  %v5759_v50 = vld [vmem:[#allocation6 + $0x4c] sm:$0xf0]  ;;  %v4497_v51 = vld [vmem:[#allocation6 + $0x140] sm:$0xf] }
 0x1fe   : > { %1077 = vmatmul.bf16.vlgmr.msra.gmra.mxu1 %v666_v52  ;;  %1091 = vmatmul.bf16.vlgmr.msra.gmra.mxu2 %v666_v52 }
 0x1ff   : > { %1105 = vmatmul.bf16.vlgmr.msra.gmra.mxu3 %v666_v52  ;;  %1119 = vmatmul.bf16.vlgmr.msrb.gmra.mxu0 %v666_v52 }
 0x200   : > { %2861 = vmatpush.bf16.msra.mxu1 %v4450_v56  ;;  %2874 = vmatpush.bf16.msra.mxu2 %v4578_v60  ;;  %v4498_v56 = vor.u32 %v5791_v53, %v4497_v51  ;;  %v4754_v60 = vor.u32 %v5855_v59, %v4753_v58  ;;  %v5057_v51 = vld [vmem:[#allocation6 + $0x5a0] sm:$0xf]  ;;  %v736_v58 = vperm.slane %v6607_v34, 3 }
 0x201   : > { %2887 = vmatpush.bf16.msra.mxu3 %v4706_v61  ;;  %2900 = vmatpush.bf16.msrb.mxu0 %v4834_v0  ;;  %v4353_v61 = vld [vmem:[#allocation6 + $0x20] sm:$0xf] }
 0x202   : > { %v4354_v63 = vor.u32 %v5755_v62, %v4353_v61  ;;  %v4481_v0 = vld [vmem:[#allocation6 + $0x120] sm:$0xf]  ;;  %v5995_v61 = vld [vmem:[#allocation6 + $0x7ac] sm:$0xf0] }
 0x203   : > { %v4482_v4 = vor.u32 %v5787_v1, %v4481_v0  ;;  %v4913_v0 = vld [vmem:[#allocation6 + $0x480] sm:$0xf]  ;;  %v5895_v1 = vld [vmem:[#allocation6 + $0x48c] sm:$0xf0] }
 0x204   : > { %2862 = vmatpush.bf16.msra.mxu1 %v4434_v3  ;;  %2875 = vmatpush.bf16.msra.mxu2 %v4562_v8  ;;  %v5819_v3 = vld [vmem:[#allocation6 + $0x22c] sm:$0xf0]  ;;  %v4738_v8 = vor.u32 %v5851_v6, %v4737_v5  ;;  %v5169_v6 = vld [vmem:[#allocation6 + $0x680] sm:$0xf] }
 0x205   : > { %2888 = vmatpush.bf16.msra.mxu3 %v4690_v9  ;;  %2901 = vmatpush.bf16.msrb.mxu0 %v4818_v13  ;;  %v4610_v7 = vor.u32 %v5819_v3, %v4609_v2  ;;  %v4337_v9 = vld [vmem:[#allocation6] sm:$0xf]  ;;  %v4914_v3 = vor.u32 %v5895_v1, %v4913_v0  ;;  %v5927_v5 = vld [vmem:[#allocation6 + $0x58c] sm:$0xf0] }
 0x206   : > { %v4338_v13 = vor.u32 %v5751_v10, %v4337_v9  ;;  %v5041_v2 = vld [vmem:[#allocation6 + $0x580] sm:$0xf]  ;;  %v5883_v1 = vld [vmem:[#allocation6 + $0x42c] sm:$0xf0] }
 0x207   : > { %v5042_v10 = vor.u32 %v5927_v5, %v5041_v2 }
 0x208   : > { %2863 = vmatpush.bf16.msra.mxu1 %v4418_v19  ;;  %2876 = vmatpush.bf16.msra.mxu2 %v4546_v23  ;;  %v5815_v19 = vld [vmem:[#allocation6 + $0x20c] sm:$0xf0] }
 0x209   : > { %2889 = vmatpush.bf16.msra.mxu3 %v4674_v27  ;;  %2902 = vmatpush.bf16.msrb.mxu0 %v4802_v28  ;;  %v4594_v21 = vor.u32 %v5815_v19, %v4593_v18  ;;  %v5847_v23 = vld [vmem:[#allocation6 + $0x30c] sm:$0xf0]  ;;  %v5089_v27 = vld [vmem:[#allocation6 + $0x5e0] sm:$0xf]  ;;  %v735_v18 = vperm.slane %v6607_v34, 2 }
 0x20a   : > { %v4722_v25 = vor.u32 %v5847_v23, %v4721_v22  ;;  %v5939_v28 = vld [vmem:[#allocation6 + $0x5ec] sm:$0xf0]  ;;  %v4897_v22 = vld [vmem:[#allocation6 + $0x460] sm:$0xf] }
 0x20b   : > { %v5090_v30 = vor.u32 %v5939_v28, %v5089_v27  ;;  %v5891_v23 = vld [vmem:[#allocation6 + $0x46c] sm:$0xf0]  ;;  %v5025_v27 = vld [vmem:[#allocation6 + $0x560] sm:$0xf] }
 0x20c   : > { %2864 = vmatpush.bf16.msra.mxu1 %v4402_v32  ;;  %2877 = vmatpush.bf16.msra.mxu2 %v4530_v37  ;;  %v5971_v32 = vld [vmem:[#allocation6 + $0x6ec] sm:$0xf0]  ;;  %v4945_v37 = vld [vmem:[#allocation6 + $0x4c0] sm:$0xf]  ;;  %v4898_v26 = vor.u32 %v5891_v23, %v4897_v22 }
 0x20d   : > { %2890 = vmatpush.bf16.msra.mxu3 %v4658_v38  ;;  %2903 = vmatpush.bf16.msrb.mxu0 %v4786_v39  ;;  %v5218_v35 = vor.u32 %v5971_v32, %v5217_v31  ;;  %v5903_v38 = vld [vmem:[#allocation6 + $0x4cc] sm:$0xf0]  ;;  %v5153_v32 = vld [vmem:[#allocation6 + $0x660] sm:$0xf] }
 0x20e   : > { %1133 = vmatmul.bf16.vlgmr.msrb.gmra.mxu1 %v666_v52  ;;  %1147 = vmatmul.bf16.vlgmr.msrb.gmra.mxu2 %v666_v52  ;;  %v4946_v39 = vor.u32 %v5903_v38, %v4945_v37  ;;  %v5923_v28 = vld [vmem:[#allocation6 + $0x56c] sm:$0xf0]  ;;  %v5154_v38 = vor.u32 %v5955_v33, %v5153_v32 }
 0x20f   : > { %1161 = vmatmul.bf16.vlgmr.msrb.gmra.mxu3 %v666_v52  ;;  %1175 = vmatmul.bf16.vlgmr.msra.gmra.mxu0 %v666_v52  ;;  %v4370_v52 = vor.u32 %v5759_v50, %v4369_v49  ;;  %v5899_v49 = vld [vmem:[#allocation6 + $0x4ac] sm:$0xf0]  ;;  %v5026_v31 = vor.u32 %v5923_v28, %v5025_v27  ;;  %v4849_v28 = vld [vmem:[#allocation6 + $0x400] sm:$0xf] }
 0x210   : > { %2865 = vmatpush.bf16.msra.mxu1 %v4386_v43  ;;  %2878 = vmatpush.bf16.msra.mxu2 %v4514_v48  ;;  %v5202_v48 = vor.u32 %v5967_v46, %v5201_v42  ;;  %v5979_v27 = vld [vmem:[#allocation6 + $0x72c] sm:$0xf0] }
 0x211   : > { %2891 = vmatpush.bf16.msra.mxu3 %v4642_v15  ;;  %2904 = vmatpush.bf16.msrb.mxu0 %v4770_v45  ;;  %v5999_v15 = vld [vmem:[#allocation6 + $0x7cc] sm:$0xf0]  ;;  %v4929_v45 = vld [vmem:[#allocation6 + $0x4a0] sm:$0xf] }
 0x212   : > { %v5330_v14 = vor.u32 %v5999_v15, %v5329_v47  ;;  %v4930_v50 = vor.u32 %v5899_v49, %v4929_v45  ;;  %v740_v15 = vperm.slane %v6607_v34, 7  ;;  %v5009_v45 = vld [vmem:[#allocation6 + $0x540] sm:$0xf]  ;;  %v5919_v49 = vld [vmem:[#allocation6 + $0x54c] sm:$0xf0] }
 0x214   : > { %2866 = vmatpush.bf16.msra.mxu1 %v4370_v52  ;;  %2879 = vmatpush.bf16.msra.mxu2 %v4498_v56  ;;  %v5931_v52 = vld [vmem:[#allocation6 + $0x5ac] sm:$0xf0]  ;;  %v5313_v56 = vld [vmem:[#allocation6 + $0x7a0] sm:$0xf] }
 0x215   : > { %2892 = vmatpush.bf16.msra.mxu3 %v4626_v57  ;;  %2905 = vmatpush.bf16.msrb.mxu0 %v4754_v60  ;;  %v5058_v53 = vor.u32 %v5931_v52, %v5057_v51  ;;  %v733_v57 = vperm.slane %v6607_v34, 0  ;;  %v5186_v60 = vor.u32 %v5963_v55, %v5185_v54 }
 0x218   : > { %2867 = vmatpush.bf16.msra.mxu1 %v4354_v63  ;;  %2880 = vmatpush.bf16.msra.mxu2 %v4482_v4  ;;  %v5314_v63 = vor.u32 %v5995_v61, %v5313_v56  ;;  %v5265_v61 = vld [vmem:[#allocation6 + $0x740] sm:$0xf] }
 0x219   : > { %2893 = vmatpush.bf16.msra.mxu3 %v4610_v7  ;;  %2906 = vmatpush.bf16.msrb.mxu0 %v4738_v8  ;;  %v5959_v7 = vld [vmem:[#allocation6 + $0x68c] sm:$0xf0]  ;;  %v734_v8 = vperm.slane %v6607_v34, 1 }
 0x21a   : > { %v5170_v12 = vor.u32 %v5959_v7, %v5169_v6  ;;  %v4993_v6 = vld [vmem:[#allocation6 + $0x520] sm:$0xf]  ;;  %v5915_v7 = vld [vmem:[#allocation6 + $0x52c] sm:$0xf0] }
 0x21b   : > { %v4994_v23 = vor.u32 %v5915_v7, %v4993_v6 }
 0x21c   : > { %2868 = vmatpush.bf16.msra.mxu1 %v4338_v13  ;;  %2881 = vmatpush.bf16.msra.mxu2 %v4466_v20  ;;  %v5297_v13 = vld [vmem:[#allocation6 + $0x780] sm:$0xf] }
 0x21d   : > { %2894 = vmatpush.bf16.msra.mxu3 %v4594_v21  ;;  %2907 = vmatpush.bf16.msrb.mxu0 %v4722_v25  ;;  %v5298_v20 = vor.u32 %v5991_v17, %v5297_v13  ;;  %v5121_v17 = vld [vmem:[#allocation6 + $0x620] sm:$0xf] }
 0x220   : > { %2913 = vmatpush.bf16.msrb.mxu1 %v4962_v11  ;;  %2926 = vmatpush.bf16.msrb.mxu2 %v5090_v30 }
 0x221   : > { %2939 = vmatpush.bf16.msrb.mxu3 %v5218_v35  ;;  %2952 = vmatpush.bf16.msra.mxu0 %v5346_v29  ;;  %v5281_v35 = vld [vmem:[#allocation6 + $0x760] sm:$0xf]  ;;  %v5987_v29 = vld [vmem:[#allocation6 + $0x76c] sm:$0xf0] }
 0x222   : > { %v5282_v42 = vor.u32 %v5987_v29, %v5281_v35  ;;  %v4977_v35 = vld [vmem:[#allocation6 + $0x500] sm:$0xf] }
 0x224   : > { %2914 = vmatpush.bf16.msrb.mxu1 %v4946_v39  ;;  %2927 = vmatpush.bf16.msrb.mxu2 %v5074_v44  ;;  %v5887_v44 = vld [vmem:[#allocation6 + $0x44c] sm:$0xf0] }
 0x225   : > { %2940 = vmatpush.bf16.msrb.mxu3 %v5202_v48  ;;  %2953 = vmatpush.bf16.msra.mxu0 %v5330_v14 }
 0x228   : > { %2915 = vmatpush.bf16.msrb.mxu1 %v4930_v50  ;;  %2928 = vmatpush.bf16.msrb.mxu2 %v5058_v53 }
 0x229   : > { %2941 = vmatpush.bf16.msrb.mxu3 %v5186_v60  ;;  %2954 = vmatpush.bf16.msra.mxu0 %v5314_v63  ;;  %v4865_v63 = vld [vmem:[#allocation6 + $0x420] sm:$0xf] }
 0x22a   : > { %v4866_v13 = vor.u32 %v5883_v1, %v4865_v63 }
 0x22c   : > { %2916 = vmatpush.bf16.msrb.mxu1 %v4914_v3  ;;  %2929 = vmatpush.bf16.msrb.mxu2 %v5042_v10 }
 0x22d   : > { %2942 = vmatpush.bf16.msrb.mxu3 %v5170_v12  ;;  %2955 = vmatpush.bf16.msra.mxu0 %v5298_v20  ;;  %v738_v20 = vperm.slane %v6607_v34, 5 }
 0x230   : > { %2917 = vmatpush.bf16.msrb.mxu1 %v4898_v26  ;;  %2930 = vmatpush.bf16.msrb.mxu2 %v5026_v31 }
 0x231   : > { %2943 = vmatpush.bf16.msrb.mxu3 %v5154_v38  ;;  %2956 = vmatpush.bf16.msra.mxu0 %v5282_v42 }
 0x27b   : > { %v1078_v16 = vpop.f32.mrf.mxu1 }
 0x27c   : > { %v1120_v43 = vpop.f32.mrf.mxu0  ;;  %v1079_v24 = vadd.f32 %v1078_v16, %v733_v57 }
 0x27d   : > { %v1121_v21 = vadd.f32 %v1120_v43, %v736_v58  ;;  %v4881_v43 = vld [vmem:[#allocation6 + $0x440] sm:$0xf] }
 0x27e   : > { %v1181_v46 = vmax.f32 %v1079_v24, 0.0  ;;  %v4882_v14 = vor.u32 %v5887_v44, %v4881_v43  ;;  %v5249_v24 = vld [vmem:[#allocation6 + $0x720] sm:$0xf] }
 0x27f   : > { %v1184_v39 = vmax.f32 %v1121_v21, 0.0  ;;  %v739_v21 = vperm.slane %v6607_v34, 6  ;;  %v5250_v44 = vor.u32 %v5979_v27, %v5249_v24 }
 0x280   : > { %2918 = vmatpush.bf16.msrb.mxu1 %v4882_v14 }
 0x281   : > { %v1092_v59 = vpop.f32.mrf.mxu2 }
 0x282   : > { %v1106_v62 = vpop.f32.mrf.mxu3  ;;  %v1093_v11 = vadd.f32 %v1092_v59, %v734_v8  ;;  %v5951_v59 = vld [vmem:[#allocation6 + $0x64c] sm:$0xf0] }
 0x283   : > { %v1080_v4 = vpop.f32.mrf.mxu1  ;;  %v1107_v36 = vadd.f32 %v1106_v62, %v735_v18  ;;  %v5983_v62 = vld [vmem:[#allocation6 + $0x74c] sm:$0xf0] }
 0x284   : > { %v1122_v9 = vpop.f32.mrf.mxu0  ;;  %v1081_v30 = vadd.f32 %v1080_v4, %v733_v57  ;;  %v1182_v50 = vmax.f32 %v1093_v11, 0.0  ;;  %v5010_v57 = vor.u32 %v5919_v49, %v5009_v45  ;;  %v5266_v12 = vor.u32 %v5983_v62, %v5265_v61  ;;  %2919 = vmatpush.bf16.msrb.mxu1 %v4866_v13  ;;  %v5879_v11 = vld [vmem:[#allocation6 + $0x40c] sm:$0xf0] }
 0x285   : > { %v1123_v19 = vadd.f32 %v1122_v9, %v736_v58  ;;  %v1183_v55 = vmax.f32 %v1107_v36, 0.0  ;;  %v5137_v58 = vld [vmem:[#allocation6 + $0x640] sm:$0xf]  ;;  %v5911_v36 = vld [vmem:[#allocation6 + $0x50c] sm:$0xf0] }
 0x286   : > { %v1189_v51 = vmax.f32 %v1081_v30, 0.0  ;;  %2931 = vmatpush.bf16.msrb.mxu2 %v5010_v57  ;;  %v5138_v5 = vor.u32 %v5951_v59, %v5137_v58  ;;  %2957 = vmatpush.bf16.msra.mxu0 %v5266_v12  ;;  %v4978_v49 = vor.u32 %v5911_v36, %v4977_v35 }
 0x287   : > { %v1192_v25 = vmax.f32 %v1123_v19, 0.0 }
 0x288   : > { %v6615_v2 = vmax.f32 %v1181_v46, %v1189_v51  ;;  %2944 = vmatpush.bf16.msrb.mxu3 %v5138_v5  ;;  %v4850_v46 = vor.u32 %v5879_v11, %v4849_v28 }
 0x289   : > { %v1094_v37 = vpop.f32.mrf.mxu2  ;;  %v1219_v52 = vmax.f32 %v1184_v39, %v1192_v25 }
 0x28a   : > { %v1095_v16 = vadd.f32 %v1094_v37, %v734_v8  ;;  %v1108_v40 = vpop.f32.mrf.mxu3  ;;  %v1199_v30 = vrot.slane %v6615_v2, 4  ;;  %2932 = vmatpush.bf16.msrb.mxu2 %v4994_v23  ;;  %2958 = vmatpush.bf16.msra.mxu0 %v5250_v44 }
 0x28b   : > { %v1109_v47 = vadd.f32 %v1108_v40, %v735_v18  ;;  %v1134_v48 = vpop.f32.mrf.mxu1  ;;  %v1220_v4 = vrot.slane %v1219_v52, 4  ;;  %v5947_v18 = vld [vmem:[#allocation6 + $0x62c] sm:$0xf0]  ;;  %2920 = vmatpush.bf16.msrb.mxu1 %v4850_v46 }
 0x28c   : > { %v1190_v53 = vmax.f32 %v1095_v16, 0.0  ;;  %v1176_v54 = vpop.f32.mrf.mxu0  ;;  %v1135_v3 = vadd.f32 %v1134_v48, %v737_v41  ;;  %v5122_v26 = vor.u32 %v5947_v18, %v5121_v17  ;;  %v5105_v16 = vld [vmem:[#allocation6 + $0x600] sm:$0xf]  ;;  %v5943_v40 = vld [vmem:[#allocation6 + $0x60c] sm:$0xf0]  ;;  %v1200_v58 = vmax.f32 %v6615_v2, %v1199_v30 }
 0x28d   : > { %v1191_v56 = vmax.f32 %v1109_v47, 0.0  ;;  %v1177_v19 = vadd.f32 %v1176_v54, %v740_v15  ;;  %v1221_v31 = vmax.f32 %v1219_v52, %v1220_v4  ;;  %v5233_v47 = vld [vmem:[#allocation6 + $0x700] sm:$0xf]  ;;  %v5975_v48 = vld [vmem:[#allocation6 + $0x70c] sm:$0xf0]  ;;  %v5106_v51 = vor.u32 %v5943_v40, %v5105_v16 }
 0x28e   : > { %v1205_v60 = vmax.f32 %v1182_v50, %v1190_v53  ;;  %v1185_v29 = vmax.f32 %v1135_v3, 0.0  ;;  %2945 = vmatpush.bf16.msrb.mxu3 %v5122_v26  ;;  %v5234_v52 = vor.u32 %v5975_v48, %v5233_v47  ;;  %2933 = vmatpush.bf16.msrb.mxu2 %v4978_v49 }
 0x28f   : > { %v1212_v0 = vmax.f32 %v1183_v55, %v1191_v56  ;;  %v1188_v42 = vmax.f32 %v1177_v19, 0.0  ;;  %v1222_v59 = vrot.slane %v1221_v31, 2 }
 0x290   : > { %v1206_v8 = vrot.slane %v1205_v60, 4  ;;  %2959 = vmatpush.bf16.msra.mxu0 %v5234_v52  ;;  %v5777_v52 = vld [vmem:[#allocation6 + $0xe4] sm:$0xf] }
 0x291   : > { %v1213_v9 = vrot.slane %v1212_v0, 4  ;;  %v1148_v10 = vpop.f32.mrf.mxu2 }
 0x292   : > { %v1162_v22 = vpop.f32.mrf.mxu3  ;;  %v1207_v37 = vmax.f32 %v1205_v60, %v1206_v8  ;;  %2946 = vmatpush.bf16.msrb.mxu3 %v5106_v51 }
 0x293   : > { %v1136_v25 = vpop.f32.mrf.mxu1  ;;  %v1214_v38 = vmax.f32 %v1212_v0, %v1213_v9  ;;  %v1163_v14 = vadd.f32 %v1162_v22, %v739_v21  ;;  %v1201_v9 = vrot.slane %v1200_v58, 2 }
 0x294   : > { %v1137_v32 = vadd.f32 %v1136_v25, %v737_v41  ;;  %v1178_v33 = vpop.f32.mrf.mxu0  ;;  %v1149_v41 = vadd.f32 %v1148_v10, %v738_v20  ;;  %v1208_v34 = vrot.slane %v1207_v37, 2  ;;  %v1223_v10 = vmax.f32 %v1221_v31, %v1222_v59  ;;  %v5873_v59 = vld [vmem:[#allocation6 + $0x3e4] sm:$0xf] }
 0x295   : > { %v1179_v39 = vadd.f32 %v1178_v33, %v740_v15  ;;  %v1215_v15 = vrot.slane %v1214_v38, 2  ;;  %v1187_v63 = vmax.f32 %v1163_v14, 0.0  ;;  %v1202_v23 = vmax.f32 %v1200_v58, %v1201_v9  ;;  %v4707_v58 = vld [vmem:[#allocation6 + $0x2f0] sm:$0xf0] }
 0x296   : > { %v1193_v43 = vmax.f32 %v1137_v32, 0.0  ;;  %v1186_v62 = vmax.f32 %v1149_v41, 0.0  ;;  %v1209_v4 = vmax.f32 %v1207_v37, %v1208_v34  ;;  %v1224_v24 = vrot.slane %v1223_v10, 1  ;;  %v4435_v9 = vld [vmem:[#allocation6 + $0xd0] sm:$0xf0] }
 0x297   : > { %v1196_v45 = vmax.f32 %v1179_v39, 0.0  ;;  %v1216_v3 = vmax.f32 %v1214_v38, %v1215_v15  ;;  %v1203_v31 = vrot.slane %v1202_v23, 1 }
 0x298   : > { %v1226_v50 = vmax.f32 %v1185_v29, %v1193_v43  ;;  %v1210_v18 = vrot.slane %v1209_v4, 1  ;;  %v1225_v35 = vmax.f32 %v1223_v10, %v1224_v24  ;;  %v4419_v24 = vld [vmem:[#allocation6 + $0xb0] sm:$0xf0] }
 0x299   : > { %v1247_v53 = vmax.f32 %v1188_v42, %v1196_v45  ;;  %v1150_v54 = vpop.f32.mrf.mxu2  ;;  %v1217_v19 = vrot.slane %v1216_v3, 1  ;;  %v1204_v43 = vmax.f32 %v1202_v23, %v1203_v31  ;;  %v5769_v23 = vld [vmem:[#allocation6 + $0xa4] sm:$0xf] }
 0x29a   : > { %v1227_v55 = vrot.slane %v1226_v50, 4  ;;  %v1151_v56 = vadd.f32 %v1150_v54, %v738_v20  ;;  %v1164_v57 = vpop.f32.mrf.mxu3  ;;  %v1211_v28 = vmax.f32 %v1209_v4, %v1210_v18  ;;  %v1264_v44 = vrot.slane %v1225_v35, 5  ;;  %v5809_v54 = vld [vmem:[#allocation6 + $0x1e4] sm:$0xf]  ;;  %v4691_v18 = vld [vmem:[#allocation6 + $0x2d0] sm:$0xf0] }
 0x29b   : > { %v1248_v60 = vrot.slane %v1247_v53, 4  ;;  %v1165_v61 = vadd.f32 %v1164_v57, %v739_v21  ;;  %v1218_v11 = vmax.f32 %v1216_v3, %v1217_v19  ;;  %v5841_v57 = vld [vmem:[#allocation6 + $0x2e4] sm:$0xf]  ;;  %v4422_v31 = vor.u32 %v5769_v23, %v4419_v24  ;;  %v4483_v24 = vld [vmem:[#allocation6 + $0x130] sm:$0xf0] }
 0x29c   : > { %v1228_v0 = vmax.f32 %v1226_v50, %v1227_v55  ;;  %v1194_v1 = vmax.f32 %v1151_v56, 0.0  ;;  %v1262_v29 = vrot.slane %v1211_v28, 7  ;;  %v4579_v55 = vld [vmem:[#allocation6 + $0x1f0] sm:$0xf0]  ;;  %v4710_v10 = vor.u32 %v5841_v57, %v4707_v58  ;;  %v5869_v19 = vld [vmem:[#allocation6 + $0x3c4] sm:$0xf] }
 0x29d   : > { %v1249_v5 = vmax.f32 %v1247_v53, %v1248_v60  ;;  %v1195_v6 = vmax.f32 %v1165_v61, 0.0  ;;  %v1263_v39 = vrot.slane %v1218_v11, 6  ;;  %v4451_v53 = vld [vmem:[#allocation6 + $0xf0] sm:$0xf0]  ;;  %v4582_v4 = vor.u32 %v5809_v54, %v4579_v55  ;;  %v5833_v11 = vld [vmem:[#allocation6 + $0x2a4] sm:$0xf] }
 0x29e   : > { %v1229_v7 = vrot.slane %v1228_v0, 2  ;;  %v1233_v8 = vmax.f32 %v1186_v62, %v1194_v1  ;;  %v1270_v41 = vsel %vm1269_vm1, %v1204_v43, %v1262_v29  ;;  %v4454_v1 = vor.u32 %v5777_v52, %v4451_v53  ;;  %v4547_v28 = vld [vmem:[#allocation6 + $0x1b0] sm:$0xf0]  ;;  %v5861_v43 = vld [vmem:[#allocation6 + $0x384] sm:$0xf] }
 0x29f   : > { %v1250_v12 = vrot.slane %v1249_v5, 2  ;;  %v1240_v13 = vmax.f32 %v1187_v63, %v1195_v6  ;;  %v1272_v14 = vsel %vm1271_vm2, %v1263_v39, %v1264_v44  ;;  %v5797_v39 = vld [vmem:[#allocation6 + $0x184] sm:$0xf]  ;;  %v4787_v44 = vld [vmem:[#allocation6 + $0x390] sm:$0xf0] }
 0x2a0   : > { %v1230_v17 = vmax.f32 %v1228_v0, %v1229_v7  ;;  %v1234_v2 = vrot.slane %v1233_v8, 4  ;;  %v1274_v34 = vsel %vm1273_vm3, %v1270_v41, %v1272_v14  ;;  %v4835_v0 = vld [vmem:[#allocation6 + $0x3f0] sm:$0xf0]  ;;  %v4790_v52 = vor.u32 %v5861_v43, %v4787_v44  ;;  %v5825_v53 = vld [vmem:[#allocation6 + $0x264] sm:$0xf] }
 0x2a1   : > { %v1251_v20 = vmax.f32 %v1249_v5, %v1250_v12  ;;  %v1241_v21 = vrot.slane %v1240_v13, 4  ;;  %v4838_v12 = vor.u32 %v5873_v59, %v4835_v0  ;;  %v4643_v54 = vld [vmem:[#allocation6 + $0x270] sm:$0xf0]  ;;  %v5857_v55 = vld [vmem:[#allocation6 + $0x364] sm:$0xf] }
 0x2a2   : > { %v1235_v22 = vmax.f32 %v1233_v8, %v1234_v2  ;;  %v1231_v26 = vrot.slane %v1230_v17, 1  ;;  %v5773_v8 = vld [vmem:[#allocation6 + $0xc4] sm:$0xf]  ;;  %v4771_v57 = vld [vmem:[#allocation6 + $0x370] sm:$0xf0] }
 0x2a3   : > { %v1242_v25 = vmax.f32 %v1240_v13, %v1241_v21  ;;  %v1252_v30 = vrot.slane %v1251_v20, 1  ;;  %v5805_v13 = vld [vmem:[#allocation6 + $0x1c4] sm:$0xf]  ;;  %v4438_v21 = vor.u32 %v5773_v8, %v4435_v9  ;;  %v4371_v0 = vld [vmem:[#allocation6 + $0x50] sm:$0xf0] }
 0x2a4   : > { %v1236_v27 = vrot.slane %v1235_v22, 2  ;;  %v1232_v37 = vmax.f32 %v1230_v17, %v1231_v26  ;;  %v4563_v17 = vld [vmem:[#allocation6 + $0x1d0] sm:$0xf0]  ;;  %v5837_v2 = vld [vmem:[#allocation6 + $0x2c4] sm:$0xf] }
 0x2a5   : > { %v1243_v32 = vrot.slane %v1242_v25, 2  ;;  %v1253_v16 = vmax.f32 %v1251_v20, %v1252_v30  ;;  %v4819_v20 = vld [vmem:[#allocation6 + $0x3d0] sm:$0xf0]  ;;  %v5789_v8 = vld [vmem:[#allocation6 + $0x144] sm:$0xf] }
 0x2a6   : > { %v1237_v33 = vmax.f32 %v1235_v22, %v1236_v27  ;;  %v1265_v47 = vrot.slane %v1232_v37, 4  ;;  %v4566_v22 = vor.u32 %v5805_v13, %v4563_v17  ;;  %v4822_v26 = vor.u32 %v5869_v19, %v4819_v20  ;;  %v5801_v27 = vld [vmem:[#allocation6 + $0x1a4] sm:$0xf]  ;;  %v4675_v30 = vld [vmem:[#allocation6 + $0x2b0] sm:$0xf0] }
 0x2a7   : > { %v1244_v36 = vmax.f32 %v1242_v25, %v1243_v32  ;;  %v1268_v45 = vrot.slane %v1253_v16, 1  ;;  %v4694_v25 = vor.u32 %v5837_v2, %v4691_v18  ;;  %v5865_v32 = vld [vmem:[#allocation6 + $0x3a4] sm:$0xf]  ;;  %v4550_v35 = vor.u32 %v5801_v27, %v4547_v28  ;;  %v4403_v37 = vld [vmem:[#allocation6 + $0x90] sm:$0xf0] }
 0x2a8   : > { %v1238_v38 = vrot.slane %v1237_v33, 1  ;;  %v4531_v16 = vld [vmem:[#allocation6 + $0x190] sm:$0xf0]  ;;  %v5853_v13 = vld [vmem:[#allocation6 + $0x344] sm:$0xf] }
 0x2a9   : > { %v1245_v40 = vrot.slane %v1244_v36, 1  ;;  %v4534_v41 = vor.u32 %v5797_v39, %v4531_v16  ;;  %v4499_v9 = vld [vmem:[#allocation6 + $0x150] sm:$0xf0]  ;;  %v5753_v19 = vld [vmem:[#allocation6 + $0x24] sm:$0xf] }
 0x2aa   : > { %v1239_v42 = vmax.f32 %v1237_v33, %v1238_v38  ;;  %v4803_v33 = vld [vmem:[#allocation6 + $0x3b0] sm:$0xf0]  ;;  %v4678_v38 = vor.u32 %v5833_v11, %v4675_v30  ;;  %v4502_v18 = vor.u32 %v5789_v8, %v4499_v9  ;;  %v5785_v23 = vld [vmem:[#allocation6 + $0x124] sm:$0xf] }
 0x2ab   : > { %v1246_v46 = vmax.f32 %v1244_v36, %v1245_v40  ;;  %v5765_v36 = vld [vmem:[#allocation6 + $0x84] sm:$0xf]  ;;  %v4806_v29 = vor.u32 %v5865_v32, %v4803_v33  ;;  %v4755_v17 = vld [vmem:[#allocation6 + $0x350] sm:$0xf0]  ;;  %v4486_v32 = vor.u32 %v5785_v23, %v4483_v24 }
 0x2ac   : > { %v1266_v48 = vrot.slane %v1239_v42, 3  ;;  %v5829_v40 = vld [vmem:[#allocation6 + $0x284] sm:$0xf]  ;;  %v4659_v42 = vld [vmem:[#allocation6 + $0x290] sm:$0xf0] }
 0x2ad   : > { %v1267_v49 = vrot.slane %v1246_v46, 2  ;;  %v5761_v46 = vld [vmem:[#allocation6 + $0x64] sm:$0xf]  ;;  %v4355_v20 = vld [vmem:[#allocation6 + $0x30] sm:$0xf0] }
 0x2ae   : > { %v1276_v50 = vsel %vm1275_vm4, %v1265_v47, %v1266_v48  ;;  %v4387_v47 = vld [vmem:[#allocation6 + $0x70] sm:$0xf0]  ;;  %v4406_v48 = vor.u32 %v5765_v36, %v4403_v37  ;;  %v5849_v27 = vld [vmem:[#allocation6 + $0x324] sm:$0xf]  ;;  %v4358_v30 = vor.u32 %v5753_v19, %v4355_v20 }
 0x2af   : > { %v1278_v51 = vsel %vm1277_vm5, %v1267_v49, %v1268_v45  ;;  %v5793_v49 = vld [vmem:[#allocation6 + $0x164] sm:$0xf]  ;;  %v4390_v58 = vor.u32 %v5761_v46, %v4387_v47  ;;  %v4739_v28 = vld [vmem:[#allocation6 + $0x330] sm:$0xf0] }
 0x2b0   : > { %v1280_v15 = vsel %vm1279_vm6, %v1276_v50, %v1278_v51  ;;  %v4515_v50 = vld [vmem:[#allocation6 + $0x170] sm:$0xf0]  ;;  %v4662_v51 = vor.u32 %v5829_v40, %v4659_v42  ;;  %v5749_v11 = vld [vmem:[#allocation6 + $0x4] sm:$0xf]  ;;  %v4742_v37 = vor.u32 %v5849_v27, %v4739_v28 }
 0x2b1   : > { %v6626_v56 = vsel %vm1281_vm7, %v1274_v34, %v1280_v15  ;;  %v4518_v59 = vor.u32 %v5793_v49, %v4515_v50  ;;  %v4339_v33 = vld [vmem:[#allocation6 + $0x10] sm:$0xf0]  ;;  %v5845_v39 = vld [vmem:[#allocation6 + $0x304] sm:$0xf] }
 0x2b2   : > { %v1291_v60 = vperm.slane %v6626_v56, 0  ;;  %v1292_v61 = vperm.slane %v6626_v56, 1  ;;  %v1293_v62 = vperm.slane %v6626_v56, 2  ;;  %v1294_v63 = vperm.slane %v6626_v56, 3  ;;  %v4723_v16 = vld [vmem:[#allocation6 + $0x310] sm:$0xf0] }
 0x2b3   : > { %v1295_v14 = vperm.slane %v6626_v56, 4  ;;  %v1296_v45 = vperm.slane %v6626_v56, 5  ;;  %v1297_v34 = vperm.slane %v6626_v56, 6  ;;  %v1298_v15 = vperm.slane %v6626_v56, 7  ;;  %v5905_v40 = vld [vmem:[#allocation6 + $0x4e4] sm:$0xf] }
 0x2b4   : > { %v6632_v3 = vpack.c.bf16 %v1291_v60, %v1291_v60  ;;  %v6634_v5 = vpack.c.bf16 %v1292_v61, %v1292_v61  ;;  %v6636_v6 = vpack.c.bf16 %v1293_v62, %v1293_v62  ;;  %v6638_v7 = vpack.c.bf16 %v1294_v63, %v1294_v63  ;;  %v5757_v63 = vld [vmem:[#allocation6 + $0x44] sm:$0xf]  ;;  %v4963_v42 = vld [vmem:[#allocation6 + $0x4f0] sm:$0xf0] }
 0x2b5   : > { %v6648_v60 = vpack.c.bf16 %v1295_v14, %v1295_v14  ;;  %v6650_v61 = vpack.c.bf16 %v1296_v45, %v1296_v45  ;;  %v4646_v62 = vor.u32 %v5825_v53, %v4643_v54  ;;  %v6654_v56 = vpack.c.bf16 %v1298_v15, %v1298_v15  ;;  %v5937_v43 = vld [vmem:[#allocation6 + $0x5e4] sm:$0xf]  ;;  %v5091_v44 = vld [vmem:[#allocation6 + $0x5f0] sm:$0xf0] }
 0x2b6   : > { %2869 = vmatmul.bf16.vlgmr.msra.gmra.mxu1 %v6632_v3  ;;  %2882 = vmatmul.bf16.vlgmr.msra.gmra.mxu2 %v6634_v5  ;;  %v4374_v2 = vor.u32 %v5757_v63, %v4371_v0  ;;  %v5969_v46 = vld [vmem:[#allocation6 + $0x6e4] sm:$0xf]  ;;  %v4342_v47 = vor.u32 %v5749_v11, %v4339_v33  ;;  %v5347_v45 = vld [vmem:[#allocation6 + $0x7f0] sm:$0xf0]  ;;  %v4726_v50 = vor.u32 %v5845_v39, %v4723_v16 }
 0x2b7   : > { %2895 = vmatmul.bf16.vlgmr.msra.gmra.mxu3 %v6636_v6  ;;  %2908 = vmatmul.bf16.vlgmr.msrb.gmra.mxu0 %v6638_v7  ;;  %v6001_v14 = vld [vmem:[#allocation6 + $0x7e4] sm:$0xf]  ;;  %v4947_v15 = vld [vmem:[#allocation6 + $0x4d0] sm:$0xf0] }
 0x2b8   : > { %2965 = vmatpush.bf16.msra.mxu1 %v4454_v1  ;;  %2978 = vmatpush.bf16.msra.mxu2 %v4582_v4  ;;  %v6652_v1 = vpack.c.bf16 %v1297_v34, %v1297_v34  ;;  %v4774_v4 = vor.u32 %v5857_v55, %v4771_v57  ;;  %v5901_v34 = vld [vmem:[#allocation6 + $0x4c4] sm:$0xf]  ;;  %v5350_v54 = vor.u32 %v6001_v14, %v5347_v45  ;;  %v5075_v57 = vld [vmem:[#allocation6 + $0x5d0] sm:$0xf0] }
 0x2b9   : > { %2991 = vmatpush.bf16.msra.mxu3 %v4710_v10  ;;  %3004 = vmatpush.bf16.msrb.mxu0 %v4838_v12  ;;  %v5821_v10 = vld [vmem:[#allocation6 + $0x244] sm:$0xf]  ;;  %v4627_v12 = vld [vmem:[#allocation6 + $0x250] sm:$0xf0]  ;;  %v4950_v0 = vor.u32 %v5901_v34, %v4947_v15 }
 0x2ba   : > { %v5933_v55 = vld [vmem:[#allocation6 + $0x5c4] sm:$0xf]  ;;  %v5331_v63 = vld [vmem:[#allocation6 + $0x7d0] sm:$0xf0] }
 0x2bb   : > { %v5897_v8 = vld [vmem:[#allocation6 + $0x4a4] sm:$0xf]  ;;  %v4931_v9 = vld [vmem:[#allocation6 + $0x4b0] sm:$0xf0] }
 0x2bc   : > { %2966 = vmatpush.bf16.msra.mxu1 %v4438_v21  ;;  %2979 = vmatpush.bf16.msra.mxu2 %v4566_v22  ;;  %v4630_v21 = vor.u32 %v5821_v10, %v4627_v12  ;;  %v4758_v22 = vor.u32 %v5853_v13, %v4755_v17  ;;  %v5929_v13 = vld [vmem:[#allocation6 + $0x5a4] sm:$0xf]  ;;  %v5059_v17 = vld [vmem:[#allocation6 + $0x5b0] sm:$0xf0] }
 0x2bd   : > { %2992 = vmatpush.bf16.msra.mxu3 %v4694_v25  ;;  %3005 = vmatpush.bf16.msrb.mxu0 %v4822_v26  ;;  %v5817_v25 = vld [vmem:[#allocation6 + $0x224] sm:$0xf]  ;;  %v4611_v26 = vld [vmem:[#allocation6 + $0x230] sm:$0xf0] }
 0x2be   : > { %v4614_v36 = vor.u32 %v5817_v25, %v4611_v26  ;;  %v5993_v19 = vld [vmem:[#allocation6 + $0x7a4] sm:$0xf]  ;;  %v5315_v20 = vld [vmem:[#allocation6 + $0x7b0] sm:$0xf0] }
 0x2bf   : > { %v5893_v23 = vld [vmem:[#allocation6 + $0x484] sm:$0xf]  ;;  %v4915_v24 = vld [vmem:[#allocation6 + $0x490] sm:$0xf0]  ;;  %v5318_v26 = vor.u32 %v5993_v19, %v5315_v20 }
 0x2c0   : > { %2967 = vmatpush.bf16.msra.mxu1 %v4422_v31  ;;  %2980 = vmatpush.bf16.msra.mxu2 %v4550_v35  ;;  %v5781_v31 = vld [vmem:[#allocation6 + $0x104] sm:$0xf]  ;;  %v4467_v35 = vld [vmem:[#allocation6 + $0x110] sm:$0xf0] }
 0x2c1   : > { %2993 = vmatpush.bf16.msra.mxu3 %v4678_v38  ;;  %3006 = vmatpush.bf16.msrb.mxu0 %v4806_v29  ;;  %v5813_v38 = vld [vmem:[#allocation6 + $0x204] sm:$0xf]  ;;  %v4595_v29 = vld [vmem:[#allocation6 + $0x210] sm:$0xf0] }
 0x2c2   : > { %v4598_v49 = vor.u32 %v5813_v38, %v4595_v29  ;;  %v5925_v27 = vld [vmem:[#allocation6 + $0x584] sm:$0xf]  ;;  %v5043_v28 = vld [vmem:[#allocation6 + $0x590] sm:$0xf0] }
 0x2c3   : > { %v5957_v11 = vld [vmem:[#allocation6 + $0x684] sm:$0xf]  ;;  %v5299_v33 = vld [vmem:[#allocation6 + $0x790] sm:$0xf0] }
 0x2c4   : > { %2968 = vmatpush.bf16.msra.mxu1 %v4406_v48  ;;  %2981 = vmatpush.bf16.msra.mxu2 %v4534_v41  ;;  %v4470_v48 = vor.u32 %v5781_v31, %v4467_v35  ;;  %v5219_v41 = vld [vmem:[#allocation6 + $0x6f0] sm:$0xf0]  ;;  %v4918_v31 = vor.u32 %v5893_v23, %v4915_v24  ;;  %v5046_v35 = vor.u32 %v5925_v27, %v5043_v28  ;;  %v5921_v39 = vld [vmem:[#allocation6 + $0x564] sm:$0xf]  ;;  %v4585_v27 = vld [vmem:[#allocation6 + $0x1e8] sm:$0xf] }
 0x2c5   : > { %2994 = vmatpush.bf16.msra.mxu3 %v4662_v51  ;;  %3007 = vmatpush.bf16.msrb.mxu0 %v4790_v52  ;;  %v4966_v51 = vor.u32 %v5905_v40, %v4963_v42  ;;  %v5094_v52 = vor.u32 %v5937_v43, %v5091_v44  ;;  %v5222_v53 = vor.u32 %v5969_v46, %v5219_v41  ;;  %v5027_v16 = vld [vmem:[#allocation6 + $0x570] sm:$0xf0]  ;;  %v5953_v40 = vld [vmem:[#allocation6 + $0x664] sm:$0xf]  ;;  %v5812_v28 = vld [vmem:[#allocation6 + $0x1f4] sm:$0xf0] }
 0x2c6   : > { %2921 = vmatmul.bf16.vlgmr.msrb.gmra.mxu1 %v6648_v60  ;;  %2934 = vmatmul.bf16.vlgmr.msrb.gmra.mxu2 %v6650_v61  ;;  %v5155_v42 = vld [vmem:[#allocation6 + $0x670] sm:$0xf0]  ;;  %v5985_v43 = vld [vmem:[#allocation6 + $0x764] sm:$0xf] }
 0x2c7   : > { %2947 = vmatmul.bf16.vlgmr.msrb.gmra.mxu3 %v6652_v1  ;;  %2960 = vmatmul.bf16.vlgmr.msra.gmra.mxu0 %v6654_v56  ;;  %v5283_v44 = vld [vmem:[#allocation6 + $0x770] sm:$0xf0]  ;;  %v5158_v14 = vor.u32 %v5953_v40, %v5155_v42  ;;  %v5981_v34 = vld [vmem:[#allocation6 + $0x744] sm:$0xf] }
 0x2c8   : > { %2969 = vmatpush.bf16.msra.mxu1 %v4390_v58  ;;  %2982 = vmatpush.bf16.msra.mxu2 %v4518_v59  ;;  %v5965_v58 = vld [vmem:[#allocation6 + $0x6c4] sm:$0xf]  ;;  %v5203_v59 = vld [vmem:[#allocation6 + $0x6d0] sm:$0xf0]  ;;  %v5286_v45 = vor.u32 %v5985_v43, %v5283_v44  ;;  %v4569_v43 = vld [vmem:[#allocation6 + $0x1c8] sm:$0xf] }
 0x2c9   : > { %2995 = vmatpush.bf16.msra.mxu3 %v4646_v62  ;;  %3008 = vmatpush.bf16.msrb.mxu0 %v4774_v4  ;;  %v5997_v62 = vld [vmem:[#allocation6 + $0x7c4] sm:$0xf]  ;;  %v5078_v4 = vor.u32 %v5933_v55, %v5075_v57  ;;  %v5206_v10 = vor.u32 %v5965_v58, %v5203_v59  ;;  %v4883_v41 = vld [vmem:[#allocation6 + $0x450] sm:$0xf0]  ;;  %v5808_v44 = vld [vmem:[#allocation6 + $0x1d4] sm:$0xf0] }
 0x2ca   : > { %v5334_v12 = vor.u32 %v5997_v62, %v5331_v63  ;;  %v5267_v15 = vld [vmem:[#allocation6 + $0x750] sm:$0xf0]  ;;  %v5881_v55 = vld [vmem:[#allocation6 + $0x424] sm:$0xf] }
 0x2cb   : > { %v4867_v57 = vld [vmem:[#allocation6 + $0x430] sm:$0xf0]  ;;  %v5270_v59 = vor.u32 %v5981_v34, %v5267_v15  ;;  %v5913_v62 = vld [vmem:[#allocation6 + $0x524] sm:$0xf]  ;;  %v4553_v34 = vld [vmem:[#allocation6 + $0x1a8] sm:$0xf] }
 0x2cc   : > { %2970 = vmatpush.bf16.msra.mxu1 %v4374_v2  ;;  %2983 = vmatpush.bf16.msra.mxu2 %v4502_v18  ;;  %v5961_v2 = vld [vmem:[#allocation6 + $0x6a4] sm:$0xf]  ;;  %v5187_v18 = vld [vmem:[#allocation6 + $0x6b0] sm:$0xf0]  ;;  %v5804_v15 = vld [vmem:[#allocation6 + $0x1b4] sm:$0xf0] }
 0x2cd   : > { %2996 = vmatpush.bf16.msra.mxu3 %v4630_v21  ;;  %3009 = vmatpush.bf16.msrb.mxu0 %v4758_v22  ;;  %v4934_v21 = vor.u32 %v5897_v8, %v4931_v9  ;;  %v5062_v22 = vor.u32 %v5929_v13, %v5059_v17  ;;  %v5190_v25 = vor.u32 %v5961_v2, %v5187_v18  ;;  %v4995_v63 = vld [vmem:[#allocation6 + $0x530] sm:$0xf0]  ;;  %v5977_v8 = vld [vmem:[#allocation6 + $0x724] sm:$0xf] }
 0x2ce   : > { %v5251_v9 = vld [vmem:[#allocation6 + $0x730] sm:$0xf0]  ;;  %v4998_v13 = vor.u32 %v5913_v62, %v4995_v63  ;;  %v5909_v2 = vld [vmem:[#allocation6 + $0x504] sm:$0xf]  ;;  %v4409_v62 = vld [vmem:[#allocation6 + $0x88] sm:$0xf] }
 0x2cf   : > { %v4851_v17 = vld [vmem:[#allocation6 + $0x410] sm:$0xf0]  ;;  %v5254_v20 = vor.u32 %v5977_v8, %v5251_v9  ;;  %v5973_v23 = vld [vmem:[#allocation6 + $0x704] sm:$0xf]  ;;  %v5768_v63 = vld [vmem:[#allocation6 + $0x94] sm:$0xf0] }
 0x2d0   : > { %2971 = vmatpush.bf16.msra.mxu1 %v4358_v30  ;;  %2984 = vmatpush.bf16.msra.mxu2 %v4486_v32  ;;  %v5171_v30 = vld [vmem:[#allocation6 + $0x690] sm:$0xf0]  ;;  %v5989_v32 = vld [vmem:[#allocation6 + $0x784] sm:$0xf]  ;;  %v4537_v8 = vld [vmem:[#allocation6 + $0x188] sm:$0xf] }
 0x2d1   : > { %2997 = vmatpush.bf16.msra.mxu3 %v4614_v36  ;;  %3010 = vmatpush.bf16.msrb.mxu0 %v4742_v37  ;;  %v5889_v36 = vld [vmem:[#allocation6 + $0x464] sm:$0xf]  ;;  %v4899_v37 = vld [vmem:[#allocation6 + $0x470] sm:$0xf0]  ;;  %v5174_v38 = vor.u32 %v5957_v11, %v5171_v30  ;;  %v5302_v29 = vor.u32 %v5989_v32, %v5299_v33  ;;  %v4713_v11 = vld [vmem:[#allocation6 + $0x2e8] sm:$0xf] }
 0x2d2   : > { %v4902_v46 = vor.u32 %v5889_v36, %v4899_v37  ;;  %v4979_v18 = vld [vmem:[#allocation6 + $0x510] sm:$0xf0]  ;;  %v5844_v33 = vld [vmem:[#allocation6 + $0x2f4] sm:$0xf0] }
 0x2d3   : > { %v5235_v24 = vld [vmem:[#allocation6 + $0x710] sm:$0xf0]  ;;  %v4982_v32 = vor.u32 %v5909_v2, %v4979_v18  ;;  %v4714_v40 = vor.u32 %v5844_v33, %v4713_v11  ;;  %v5800_v9 = vld [vmem:[#allocation6 + $0x194] sm:$0xf0]  ;;  %v4410_v2 = vor.u32 %v5768_v63, %v4409_v62  ;;  %v4729_v62 = vld [vmem:[#allocation6 + $0x308] sm:$0xf] }
 0x2d4   : > { %2972 = vmatpush.bf16.msra.mxu1 %v4342_v47  ;;  %2985 = vmatpush.bf16.msra.mxu2 %v4470_v48  ;;  %v5030_v47 = vor.u32 %v5921_v39, %v5027_v16  ;;  %v5885_v48 = vld [vmem:[#allocation6 + $0x444] sm:$0xf]  ;;  %v5238_v37 = vor.u32 %v5973_v23, %v5235_v24  ;;  %v4441_v39 = vld [vmem:[#allocation6 + $0xc8] sm:$0xf]  ;;  %v5776_v16 = vld [vmem:[#allocation6 + $0xd4] sm:$0xf0]  ;;  %v4538_v18 = vor.u32 %v5800_v9, %v4537_v8 }
 0x2d5   : > { %2998 = vmatpush.bf16.msra.mxu3 %v4598_v49  ;;  %3011 = vmatpush.bf16.msrb.mxu0 %v4726_v50  ;;  %v5917_v49 = vld [vmem:[#allocation6 + $0x544] sm:$0xf]  ;;  %v5011_v50 = vld [vmem:[#allocation6 + $0x550] sm:$0xf0]  ;;  %v4521_v23 = vld [vmem:[#allocation6 + $0x168] sm:$0xf] }
 0x2d6   : > { %v5796_v24 = vld [vmem:[#allocation6 + $0x174] sm:$0xf0]  ;;  %v5097_v8 = vld [vmem:[#allocation6 + $0x5e8] sm:$0xf] }
 0x2d7   : > { %2973 = vmatmul.bf16.vlgmr.msra.gmra.mxu1 %v6632_v3  ;;  %2986 = vmatmul.bf16.vlgmr.msra.gmra.mxu2 %v6634_v5  ;;  %v5760_v33 = vld [vmem:[#allocation6 + $0x54] sm:$0xf0] }
 0x2d8   : > { %3017 = vmatpush.bf16.msrb.mxu1 %v4966_v51  ;;  %3030 = vmatpush.bf16.msrb.mxu2 %v5094_v52  ;;  %v5949_v51 = vld [vmem:[#allocation6 + $0x644] sm:$0xf]  ;;  %v5139_v52 = vld [vmem:[#allocation6 + $0x650] sm:$0xf0]  ;;  %v5848_v63 = vld [vmem:[#allocation6 + $0x314] sm:$0xf0] }
 0x2d9   : > { %3043 = vmatpush.bf16.msrb.mxu3 %v5222_v53  ;;  %3056 = vmatpush.bf16.msra.mxu0 %v5350_v54  ;;  %v4886_v53 = vor.u32 %v5885_v48, %v4883_v41  ;;  %v5014_v54 = vor.u32 %v5917_v49, %v5011_v50  ;;  %v5142_v58 = vor.u32 %v5949_v51, %v5139_v52  ;;  %v4825_v48 = vld [vmem:[#allocation6 + $0x3c8] sm:$0xf]  ;;  %v5872_v41 = vld [vmem:[#allocation6 + $0x3d4] sm:$0xf0] }
 0x2da   : > { %2999 = vmatmul.bf16.vlgmr.msra.gmra.mxu3 %v6636_v6  ;;  %3012 = vmatmul.bf16.vlgmr.msrb.gmra.mxu0 %v6638_v7  ;;  %v4425_v49 = vld [vmem:[#allocation6 + $0xa8] sm:$0xf]  ;;  %v5772_v50 = vld [vmem:[#allocation6 + $0xb4] sm:$0xf0]  ;;  %v4826_v52 = vor.u32 %v5872_v41, %v4825_v48 }
 0x2db   : > { %v4489_v48 = vld [vmem:[#allocation6 + $0x128] sm:$0xf]  ;;  %v5788_v41 = vld [vmem:[#allocation6 + $0x134] sm:$0xf0] }
 0x2dc   : > { %3018 = vmatpush.bf16.msrb.mxu1 %v4950_v0  ;;  %3031 = vmatpush.bf16.msrb.mxu2 %v5078_v4  ;;  %v5945_v0 = vld [vmem:[#allocation6 + $0x624] sm:$0xf]  ;;  %v5123_v4 = vld [vmem:[#allocation6 + $0x630] sm:$0xf0]  ;;  %v5940_v9 = vld [vmem:[#allocation6 + $0x5f4] sm:$0xf0] }
 0x2dd   : > { %3044 = vmatpush.bf16.msrb.mxu3 %v5206_v10  ;;  %3057 = vmatpush.bf16.msra.mxu0 %v5334_v12  ;;  %v5877_v10 = vld [vmem:[#allocation6 + $0x404] sm:$0xf]  ;;  %v4870_v12 = vor.u32 %v5881_v55, %v4867_v57  ;;  %v5126_v19 = vor.u32 %v5945_v0, %v5123_v4  ;;  %v4809_v55 = vld [vmem:[#allocation6 + $0x3a8] sm:$0xf]  ;;  %v5868_v57 = vld [vmem:[#allocation6 + $0x3b4] sm:$0xf0] }
 0x2de   : > { %v4854_v30 = vor.u32 %v5877_v10, %v4851_v17  ;;  %v4810_v4 = vor.u32 %v5868_v57, %v4809_v55  ;;  %v4665_v10 = vld [vmem:[#allocation6 + $0x288] sm:$0xf]  ;;  %v5864_v17 = vld [vmem:[#allocation6 + $0x394] sm:$0xf0] }
 0x2e0   : > { %3019 = vmatpush.bf16.msrb.mxu1 %v4934_v21  ;;  %3032 = vmatpush.bf16.msrb.mxu2 %v5062_v22  ;;  %v5941_v21 = vld [vmem:[#allocation6 + $0x604] sm:$0xf]  ;;  %v5107_v22 = vld [vmem:[#allocation6 + $0x610] sm:$0xf0] }
 0x2e1   : > { %3045 = vmatpush.bf16.msrb.mxu3 %v5190_v25  ;;  %3058 = vmatpush.bf16.msra.mxu0 %v5318_v26  ;;  %v4457_v25 = vld [vmem:[#allocation6 + $0xe8] sm:$0xf]  ;;  %v5780_v26 = vld [vmem:[#allocation6 + $0xf4] sm:$0xf0]  ;;  %v5110_v36 = vor.u32 %v5941_v21, %v5107_v22 }
 0x2e4   : > { %3020 = vmatpush.bf16.msrb.mxu1 %v4918_v31  ;;  %3033 = vmatpush.bf16.msrb.mxu2 %v5046_v35  ;;  %v4841_v31 = vld [vmem:[#allocation6 + $0x3e8] sm:$0xf]  ;;  %v5876_v35 = vld [vmem:[#allocation6 + $0x3f4] sm:$0xf0] }
 0x2e5   : > { %3046 = vmatpush.bf16.msrb.mxu3 %v5174_v38  ;;  %3059 = vmatpush.bf16.msra.mxu0 %v5302_v29  ;;  %v4458_v38 = vor.u32 %v5780_v26, %v4457_v25  ;;  %v4586_v29 = vor.u32 %v5812_v28, %v4585_v27  ;;  %v4842_v42 = vor.u32 %v5876_v35, %v4841_v31  ;;  %v4649_v25 = vld [vmem:[#allocation6 + $0x268] sm:$0xf]  ;;  %v5828_v26 = vld [vmem:[#allocation6 + $0x274] sm:$0xf0] }
 0x2e6   : > { %v4777_v27 = vld [vmem:[#allocation6 + $0x368] sm:$0xf]  ;;  %v5860_v28 = vld [vmem:[#allocation6 + $0x374] sm:$0xf0]  ;;  %v4650_v31 = vor.u32 %v5828_v26, %v4649_v25 }
 0x2e7   : > { %v4778_v35 = vor.u32 %v5860_v28, %v4777_v27  ;;  %v5081_v27 = vld [vmem:[#allocation6 + $0x5c8] sm:$0xf]  ;;  %v5936_v28 = vld [vmem:[#allocation6 + $0x5d4] sm:$0xf0] }
 0x2e8   : > { %3021 = vmatpush.bf16.msrb.mxu1 %v4902_v46  ;;  %3034 = vmatpush.bf16.msrb.mxu2 %v5030_v47  ;;  %v4697_v46 = vld [vmem:[#allocation6 + $0x2c8] sm:$0xf]  ;;  %v5840_v47 = vld [vmem:[#allocation6 + $0x2d4] sm:$0xf0] }
 0x2e9   : > { %3047 = vmatpush.bf16.msrb.mxu3 %v5158_v14  ;;  %3060 = vmatpush.bf16.msra.mxu0 %v5286_v45  ;;  %v4442_v14 = vor.u32 %v5776_v16, %v4441_v39  ;;  %v4570_v45 = vor.u32 %v5808_v44, %v4569_v43  ;;  %v4698_v51 = vor.u32 %v5840_v47, %v4697_v46  ;;  %v4761_v39 = vld [vmem:[#allocation6 + $0x348] sm:$0xf]  ;;  %v5856_v16 = vld [vmem:[#allocation6 + $0x354] sm:$0xf0] }
 0x2ea   : > { %v4361_v43 = vld [vmem:[#allocation6 + $0x28] sm:$0xf]  ;;  %v5756_v44 = vld [vmem:[#allocation6 + $0x34] sm:$0xf0]  ;;  %v4762_v47 = vor.u32 %v5856_v16, %v4761_v39 }
 0x2eb   : > { %v5065_v39 = vld [vmem:[#allocation6 + $0x5a8] sm:$0xf]  ;;  %v5932_v16 = vld [vmem:[#allocation6 + $0x5b4] sm:$0xf0] }
 0x2ec   : > { %3022 = vmatpush.bf16.msrb.mxu1 %v4886_v53  ;;  %3035 = vmatpush.bf16.msrb.mxu2 %v5014_v54  ;;  %v4681_v53 = vld [vmem:[#allocation6 + $0x2a8] sm:$0xf]  ;;  %v5836_v54 = vld [vmem:[#allocation6 + $0x2b4] sm:$0xf0] }
 0x2ed   : > { %3048 = vmatpush.bf16.msrb.mxu3 %v5142_v58  ;;  %3061 = vmatpush.bf16.msra.mxu0 %v5270_v59  ;;  %v4426_v58 = vor.u32 %v5772_v50, %v4425_v49  ;;  %v4554_v59 = vor.u32 %v5804_v15, %v4553_v34  ;;  %v4682_v0 = vor.u32 %v5836_v54, %v4681_v53  ;;  %v4745_v49 = vld [vmem:[#allocation6 + $0x328] sm:$0xf]  ;;  %v5852_v50 = vld [vmem:[#allocation6 + $0x334] sm:$0xf0] }
 0x2ee   : > { %v4490_v34 = vor.u32 %v5788_v41, %v4489_v48  ;;  %v5752_v15 = vld [vmem:[#allocation6 + $0x14] sm:$0xf0]  ;;  %v4473_v53 = vld [vmem:[#allocation6 + $0x108] sm:$0xf]  ;;  %v4746_v57 = vor.u32 %v5852_v50, %v4745_v49 }
 0x2ef   : > { %v5784_v54 = vld [vmem:[#allocation6 + $0x114] sm:$0xf0]  ;;  %v4921_v48 = vld [vmem:[#allocation6 + $0x488] sm:$0xf] }
 0x2f0   : > { %3023 = vmatpush.bf16.msrb.mxu1 %v4870_v12  ;;  %3036 = vmatpush.bf16.msrb.mxu2 %v4998_v13  ;;  %v5832_v12 = vld [vmem:[#allocation6 + $0x294] sm:$0xf0]  ;;  %v4793_v13 = vld [vmem:[#allocation6 + $0x388] sm:$0xf] }
 0x2f1   : > { %3049 = vmatpush.bf16.msrb.mxu3 %v5126_v19  ;;  %3062 = vmatpush.bf16.msra.mxu0 %v5254_v20  ;;  %v4393_v19 = vld [vmem:[#allocation6 + $0x68] sm:$0xf]  ;;  %v5764_v20 = vld [vmem:[#allocation6 + $0x74] sm:$0xf0]  ;;  %v4666_v21 = vor.u32 %v5832_v12, %v4665_v10  ;;  %v4794_v22 = vor.u32 %v5864_v17, %v4793_v13  ;;  %v4474_v13 = vor.u32 %v5784_v54, %v4473_v53 }
 0x2f2   : > { %v4394_v11 = vor.u32 %v5764_v20, %v4393_v19  ;;  %v5225_v10 = vld [vmem:[#allocation6 + $0x6e8] sm:$0xf]  ;;  %v5972_v17 = vld [vmem:[#allocation6 + $0x6f4] sm:$0xf0]  ;;  %v4730_v20 = vor.u32 %v5848_v63, %v4729_v62 }
 0x2f3   : > { %v5226_v25 = vor.u32 %v5972_v17, %v5225_v10  ;;  %v5896_v41 = vld [vmem:[#allocation6 + $0x494] sm:$0xf0]  ;;  %v5049_v49 = vld [vmem:[#allocation6 + $0x588] sm:$0xf] }
 0x2f4   : > { %3024 = vmatpush.bf16.msrb.mxu1 %v4854_v30  ;;  %3037 = vmatpush.bf16.msrb.mxu2 %v4982_v32  ;;  %v4522_v30 = vor.u32 %v5796_v24, %v4521_v23  ;;  %v4377_v32 = vld [vmem:[#allocation6 + $0x48] sm:$0xf]  ;;  %v5904_v24 = vld [vmem:[#allocation6 + $0x4d4] sm:$0xf0]  ;;  %v4922_v53 = vor.u32 %v5896_v41, %v4921_v48 }
 0x2f5   : > { %3050 = vmatpush.bf16.msrb.mxu3 %v5110_v36  ;;  %3063 = vmatpush.bf16.msra.mxu0 %v5238_v37  ;;  %v4505_v36 = vld [vmem:[#allocation6 + $0x148] sm:$0xf]  ;;  %v5792_v37 = vld [vmem:[#allocation6 + $0x154] sm:$0xf0] }
 0x2f6   : > { %v4953_v23 = vld [vmem:[#allocation6 + $0x4c8] sm:$0xf]  ;;  %v5928_v50 = vld [vmem:[#allocation6 + $0x594] sm:$0xf0] }
 0x2f7   : > { %3025 = vmatmul.bf16.vlgmr.msrb.gmra.mxu1 %v6648_v60  ;;  %3038 = vmatmul.bf16.vlgmr.msrb.gmra.mxu2 %v6650_v61  ;;  %v5050_v54 = vor.u32 %v5928_v50, %v5049_v49  ;;  %v5033_v62 = vld [vmem:[#allocation6 + $0x568] sm:$0xf]  ;;  %v5924_v63 = vld [vmem:[#allocation6 + $0x574] sm:$0xf0]  ;;  %v5810_v49 = vld [vmem:[#allocation6 + $0x1ec] sm:$0xf] }
 0x2f8   : > { %3069 = vmatpush.bf16.msra.mxu1 %v4458_v38  ;;  %3082 = vmatpush.bf16.msra.mxu2 %v4586_v29  ;;  %v4633_v38 = vld [vmem:[#allocation6 + $0x248] sm:$0xf]  ;;  %v5824_v29 = vld [vmem:[#allocation6 + $0x254] sm:$0xf0]  ;;  %v4587_v50 = vld [vmem:[#allocation6 + $0x1f8] sm:$0xf0] }
 0x2f9   : > { %3095 = vmatpush.bf16.msra.mxu3 %v4714_v40  ;;  %3108 = vmatpush.bf16.msrb.mxu0 %v4842_v42  ;;  %v4378_v40 = vor.u32 %v5760_v33, %v4377_v32  ;;  %v4506_v42 = vor.u32 %v5792_v37, %v4505_v36  ;;  %v4634_v46 = vor.u32 %v5824_v29, %v4633_v38  ;;  %v5337_v32 = vld [vmem:[#allocation6 + $0x7c8] sm:$0xf]  ;;  %v6000_v33 = vld [vmem:[#allocation6 + $0x7d4] sm:$0xf0] }
 0x2fa   : > { %3051 = vmatmul.bf16.vlgmr.msrb.gmra.mxu3 %v6652_v1  ;;  %3064 = vmatmul.bf16.vlgmr.msra.gmra.mxu0 %v6654_v56  ;;  %v4937_v36 = vld [vmem:[#allocation6 + $0x4a8] sm:$0xf]  ;;  %v5900_v37 = vld [vmem:[#allocation6 + $0x4b4] sm:$0xf0]  ;;  %v5338_v29 = vor.u32 %v6000_v33, %v5337_v32 }
 0x2fb   : > { %v5888_v17 = vld [vmem:[#allocation6 + $0x454] sm:$0xf0]  ;;  %v5001_v32 = vld [vmem:[#allocation6 + $0x528] sm:$0xf] }
 0x2fc   : > { %3070 = vmatpush.bf16.msra.mxu1 %v4442_v14  ;;  %3083 = vmatpush.bf16.msra.mxu2 %v4570_v45  ;;  %v4617_v14 = vld [vmem:[#allocation6 + $0x228] sm:$0xf]  ;;  %v5820_v45 = vld [vmem:[#allocation6 + $0x234] sm:$0xf0] }
 0x2fd   : > { %3096 = vmatpush.bf16.msra.mxu3 %v4698_v51  ;;  %3109 = vmatpush.bf16.msrb.mxu0 %v4826_v52  ;;  %v4345_v51 = vld [vmem:[#allocation6 + $0x8] sm:$0xf]  ;;  %v4362_v52 = vor.u32 %v5756_v44, %v4361_v43  ;;  %v4618_v55 = vor.u32 %v5820_v45, %v4617_v14  ;;  %v5996_v44 = vld [vmem:[#allocation6 + $0x7b4] sm:$0xf0] }
 0x2fe   : > { %v4346_v12 = vor.u32 %v5752_v15, %v4345_v51  ;;  %v5321_v43 = vld [vmem:[#allocation6 + $0x7a8] sm:$0xf]  ;;  %v5992_v15 = vld [vmem:[#allocation6 + $0x794] sm:$0xf0] }
 0x2ff   : > { %v5322_v45 = vor.u32 %v5996_v44, %v5321_v43  ;;  %v5177_v51 = vld [vmem:[#allocation6 + $0x688] sm:$0xf]  ;;  %v5916_v33 = vld [vmem:[#allocation6 + $0x534] sm:$0xf0] }
 0x300   : > { %3071 = vmatpush.bf16.msra.mxu1 %v4426_v58  ;;  %3084 = vmatpush.bf16.msra.mxu2 %v4554_v59  ;;  %v4601_v58 = vld [vmem:[#allocation6 + $0x208] sm:$0xf]  ;;  %v5816_v59 = vld [vmem:[#allocation6 + $0x214] sm:$0xf0] }
 0x301   : > { %3097 = vmatpush.bf16.msra.mxu3 %v4682_v0  ;;  %3110 = vmatpush.bf16.msrb.mxu0 %v4810_v4  ;;  %v4969_v0 = vld [vmem:[#allocation6 + $0x4e8] sm:$0xf]  ;;  %v5908_v4 = vld [vmem:[#allocation6 + $0x4f4] sm:$0xf0]  ;;  %v4602_v19 = vor.u32 %v5816_v59, %v4601_v58 }
 0x302   : > { %v5241_v48 = vld [vmem:[#allocation6 + $0x708] sm:$0xf]  ;;  %v5976_v41 = vld [vmem:[#allocation6 + $0x714] sm:$0xf0] }
 0x304   : > { %3072 = vmatpush.bf16.msra.mxu1 %v4410_v2  ;;  %3085 = vmatpush.bf16.msra.mxu2 %v4538_v18  ;;  %v5353_v2 = vld [vmem:[#allocation6 + $0x7e8] sm:$0xf]  ;;  %v6004_v18 = vld [vmem:[#allocation6 + $0x7f4] sm:$0xf0] }
 0x305   : > { %3098 = vmatpush.bf16.msra.mxu3 %v4666_v21  ;;  %3111 = vmatpush.bf16.msrb.mxu0 %v4794_v22  ;;  %v4970_v21 = vor.u32 %v5908_v4, %v4969_v0  ;;  %v5098_v22 = vor.u32 %v5940_v9, %v5097_v8  ;;  %v5354_v26 = vor.u32 %v6004_v18, %v5353_v2  ;;  %v5161_v0 = vld [vmem:[#allocation6 + $0x668] sm:$0xf]  ;;  %v5956_v4 = vld [vmem:[#allocation6 + $0x674] sm:$0xf0] }
 0x306   : > { %v5289_v8 = vld [vmem:[#allocation6 + $0x768] sm:$0xf]  ;;  %v5988_v9 = vld [vmem:[#allocation6 + $0x774] sm:$0xf0]  ;;  %v5162_v2 = vor.u32 %v5956_v4, %v5161_v0 }
 0x307   : > { %v5290_v18 = vor.u32 %v5988_v9, %v5289_v8  ;;  %v5806_v8 = vld [vmem:[#allocation6 + $0x1cc] sm:$0xf]  ;;  %v4571_v9 = vld [vmem:[#allocation6 + $0x1d8] sm:$0xf0] }
 0x308   : > { %3073 = vmatpush.bf16.msra.mxu1 %v4394_v11  ;;  %3086 = vmatpush.bf16.msra.mxu2 %v4522_v30  ;;  %v5209_v11 = vld [vmem:[#allocation6 + $0x6c8] sm:$0xf]  ;;  %v5968_v30 = vld [vmem:[#allocation6 + $0x6d4] sm:$0xf0] }
 0x309   : > { %3099 = vmatpush.bf16.msra.mxu3 %v4650_v31  ;;  %3112 = vmatpush.bf16.msrb.mxu0 %v4778_v35  ;;  %v4954_v31 = vor.u32 %v5904_v24, %v4953_v23  ;;  %v5082_v35 = vor.u32 %v5936_v28, %v5081_v27  ;;  %v5210_v38 = vor.u32 %v5968_v30, %v5209_v11  ;;  %v5273_v23 = vld [vmem:[#allocation6 + $0x748] sm:$0xf]  ;;  %v5984_v24 = vld [vmem:[#allocation6 + $0x754] sm:$0xf0] }
 0x30a   : > { %v4873_v27 = vld [vmem:[#allocation6 + $0x428] sm:$0xf]  ;;  %v5884_v28 = vld [vmem:[#allocation6 + $0x434] sm:$0xf0]  ;;  %v5274_v30 = vor.u32 %v5984_v24, %v5273_v23  ;;  %v4555_v24 = vld [vmem:[#allocation6 + $0x1b8] sm:$0xf0] }
 0x30c   : > { %3074 = vmatpush.bf16.msra.mxu1 %v4378_v40  ;;  %3087 = vmatpush.bf16.msra.mxu2 %v4506_v42  ;;  %v5193_v40 = vld [vmem:[#allocation6 + $0x6a8] sm:$0xf]  ;;  %v5964_v42 = vld [vmem:[#allocation6 + $0x6b4] sm:$0xf0] }
 0x30d   : > { %3100 = vmatpush.bf16.msra.mxu3 %v4634_v46  ;;  %3113 = vmatpush.bf16.msrb.mxu0 %v4762_v47  ;;  %v4938_v46 = vor.u32 %v5900_v37, %v4937_v36  ;;  %v5066_v47 = vor.u32 %v5932_v16, %v5065_v39  ;;  %v5194_v14 = vor.u32 %v5964_v42, %v5193_v40  ;;  %v5257_v36 = vld [vmem:[#allocation6 + $0x728] sm:$0xf]  ;;  %v5980_v37 = vld [vmem:[#allocation6 + $0x734] sm:$0xf0] }
 0x30e   : > { %v5002_v39 = vor.u32 %v5916_v33, %v5001_v32  ;;  %v5880_v16 = vld [vmem:[#allocation6 + $0x414] sm:$0xf0]  ;;  %v4985_v40 = vld [vmem:[#allocation6 + $0x508] sm:$0xf]  ;;  %v5258_v44 = vor.u32 %v5980_v37, %v5257_v36  ;;  %v5766_v36 = vld [vmem:[#allocation6 + $0x8c] sm:$0xf] }
 0x30f   : > { %v5912_v42 = vld [vmem:[#allocation6 + $0x514] sm:$0xf0]  ;;  %v4411_v37 = vld [vmem:[#allocation6 + $0x98] sm:$0xf0] }
 0x310   : > { %3075 = vmatpush.bf16.msra.mxu1 %v4362_v52  ;;  %3088 = vmatpush.bf16.msra.mxu2 %v4490_v34  ;;  %v5960_v52 = vld [vmem:[#allocation6 + $0x694] sm:$0xf0]  ;;  %v5305_v34 = vld [vmem:[#allocation6 + $0x788] sm:$0xf] }
 0x311   : > { %3101 = vmatpush.bf16.msra.mxu3 %v4618_v55  ;;  %3114 = vmatpush.bf16.msrb.mxu0 %v4746_v57  ;;  %v4905_v55 = vld [vmem:[#allocation6 + $0x468] sm:$0xf]  ;;  %v5892_v57 = vld [vmem:[#allocation6 + $0x474] sm:$0xf0]  ;;  %v5178_v58 = vor.u32 %v5960_v52, %v5177_v51  ;;  %v5306_v59 = vor.u32 %v5992_v15, %v5305_v34  ;;  %v5842_v51 = vld [vmem:[#allocation6 + $0x2ec] sm:$0xf]  ;;  %v4986_v34 = vor.u32 %v5912_v42, %v4985_v40 }
 0x312   : > { %v4906_v10 = vor.u32 %v5892_v57, %v4905_v55  ;;  %v4715_v15 = vld [vmem:[#allocation6 + $0x2f8] sm:$0xf0]  ;;  %v5242_v57 = vor.u32 %v5976_v41, %v5241_v48  ;;  %v5830_v40 = vld [vmem:[#allocation6 + $0x28c] sm:$0xf] }
 0x313   : > { %v4718_v0 = vor.u32 %v5842_v51, %v4715_v15  ;;  %v4667_v42 = vld [vmem:[#allocation6 + $0x298] sm:$0xf0]  ;;  %v5762_v41 = vld [vmem:[#allocation6 + $0x6c] sm:$0xf] }
 0x314   : > { %3076 = vmatpush.bf16.msra.mxu1 %v4346_v12  ;;  %3089 = vmatpush.bf16.msra.mxu2 %v4474_v13  ;;  %v5034_v12 = vor.u32 %v5924_v63, %v5033_v62  ;;  %v4889_v13 = vld [vmem:[#allocation6 + $0x448] sm:$0xf]  ;;  %v5774_v62 = vld [vmem:[#allocation6 + $0xcc] sm:$0xf]  ;;  %v4443_v63 = vld [vmem:[#allocation6 + $0xd8] sm:$0xf0] }
 0x315   : > { %3102 = vmatpush.bf16.msra.mxu3 %v4602_v19  ;;  %3115 = vmatpush.bf16.msrb.mxu0 %v4730_v20  ;;  %v5017_v19 = vld [vmem:[#allocation6 + $0x548] sm:$0xf]  ;;  %v5920_v20 = vld [vmem:[#allocation6 + $0x554] sm:$0xf0]  ;;  %v5794_v51 = vld [vmem:[#allocation6 + $0x16c] sm:$0xf] }
 0x317   : > { %3077 = vmatmul.bf16.vlgmr.msra.gmra.mxu1 %v6632_v3  ;;  %3090 = vmatmul.bf16.vlgmr.msra.gmra.mxu2 %v6634_v5 }
 0x318   : > { %3121 = vmatpush.bf16.msrb.mxu1 %v4970_v21  ;;  %3134 = vmatpush.bf16.msrb.mxu2 %v5098_v22  ;;  %v5145_v21 = vld [vmem:[#allocation6 + $0x648] sm:$0xf]  ;;  %v5952_v22 = vld [vmem:[#allocation6 + $0x654] sm:$0xf0] }
 0x319   : > { %3147 = vmatpush.bf16.msrb.mxu3 %v5226_v25  ;;  %3160 = vmatpush.bf16.msra.mxu0 %v5354_v26  ;;  %v4890_v25 = vor.u32 %v5888_v17, %v4889_v13  ;;  %v5018_v26 = vor.u32 %v5920_v20, %v5017_v19  ;;  %v5146_v11 = vor.u32 %v5952_v22, %v5145_v21  ;;  %v5870_v13 = vld [vmem:[#allocation6 + $0x3cc] sm:$0xf]  ;;  %v4827_v17 = vld [vmem:[#allocation6 + $0x3d8] sm:$0xf0] }
 0x31a   : > { %3103 = vmatmul.bf16.vlgmr.msra.gmra.mxu3 %v6636_v6  ;;  %3116 = vmatmul.bf16.vlgmr.msrb.gmra.mxu0 %v6638_v7  ;;  %v5770_v19 = vld [vmem:[#allocation6 + $0xac] sm:$0xf]  ;;  %v4427_v20 = vld [vmem:[#allocation6 + $0xb8] sm:$0xf0]  ;;  %v4830_v23 = vor.u32 %v5870_v13, %v4827_v17 }
 0x31b   : > { %v5802_v21 = vld [vmem:[#allocation6 + $0x1ac] sm:$0xf]  ;;  %v4430_v32 = vor.u32 %v5770_v19, %v4427_v20  ;;  %v4507_v13 = vld [vmem:[#allocation6 + $0x158] sm:$0xf0] }
 0x31c   : > { %3122 = vmatpush.bf16.msrb.mxu1 %v4954_v31  ;;  %3135 = vmatpush.bf16.msrb.mxu2 %v5082_v35  ;;  %v5129_v31 = vld [vmem:[#allocation6 + $0x628] sm:$0xf]  ;;  %v5948_v35 = vld [vmem:[#allocation6 + $0x634] sm:$0xf0]  ;;  %v4558_v33 = vor.u32 %v5802_v21, %v4555_v24  ;;  %v5822_v17 = vld [vmem:[#allocation6 + $0x24c] sm:$0xf] }
 0x31d   : > { %3148 = vmatpush.bf16.msrb.mxu3 %v5210_v38  ;;  %3161 = vmatpush.bf16.msra.mxu0 %v5338_v29  ;;  %v4857_v38 = vld [vmem:[#allocation6 + $0x408] sm:$0xf]  ;;  %v4874_v29 = vor.u32 %v5884_v28, %v4873_v27  ;;  %v5130_v43 = vor.u32 %v5948_v35, %v5129_v31  ;;  %v4683_v27 = vld [vmem:[#allocation6 + $0x2b8] sm:$0xf0]  ;;  %v5866_v28 = vld [vmem:[#allocation6 + $0x3ac] sm:$0xf] }
 0x31e   : > { %v4858_v52 = vor.u32 %v5880_v16, %v4857_v38  ;;  %v4539_v16 = vld [vmem:[#allocation6 + $0x198] sm:$0xf0] }
 0x31f   : > { %v4763_v19 = vld [vmem:[#allocation6 + $0x358] sm:$0xf0] }
 0x320   : > { %3123 = vmatpush.bf16.msrb.mxu1 %v4938_v46  ;;  %3136 = vmatpush.bf16.msrb.mxu2 %v5066_v47  ;;  %v5113_v46 = vld [vmem:[#allocation6 + $0x608] sm:$0xf]  ;;  %v5944_v47 = vld [vmem:[#allocation6 + $0x614] sm:$0xf0]  ;;  %v4363_v24 = vld [vmem:[#allocation6 + $0x38] sm:$0xf0] }
 0x321   : > { %3149 = vmatpush.bf16.msrb.mxu3 %v5194_v14  ;;  %3162 = vmatpush.bf16.msra.mxu0 %v5322_v45  ;;  %v5778_v14 = vld [vmem:[#allocation6 + $0xec] sm:$0xf]  ;;  %v4459_v45 = vld [vmem:[#allocation6 + $0xf8] sm:$0xf0]  ;;  %v5114_v55 = vor.u32 %v5944_v47, %v5113_v46  ;;  %v4414_v47 = vor.u32 %v5766_v36, %v4411_v37 }
 0x322   : > { %v5850_v36 = vld [vmem:[#allocation6 + $0x32c] sm:$0xf]  ;;  %v4747_v37 = vld [vmem:[#allocation6 + $0x338] sm:$0xf0] }
 0x324   : > { %3124 = vmatpush.bf16.msrb.mxu1 %v4922_v53  ;;  %3137 = vmatpush.bf16.msrb.mxu2 %v5050_v54  ;;  %v5874_v53 = vld [vmem:[#allocation6 + $0x3ec] sm:$0xf]  ;;  %v4843_v54 = vld [vmem:[#allocation6 + $0x3f8] sm:$0xf0] }
 0x325   : > { %3150 = vmatpush.bf16.msrb.mxu3 %v5178_v58  ;;  %3163 = vmatpush.bf16.msra.mxu0 %v5306_v59  ;;  %v4462_v58 = vor.u32 %v5778_v14, %v4459_v45  ;;  %v4590_v59 = vor.u32 %v5810_v49, %v4587_v50  ;;  %v4846_v4 = vor.u32 %v5874_v53, %v4843_v54  ;;  %v4395_v14 = vld [vmem:[#allocation6 + $0x78] sm:$0xf0] }
 0x326   : > { %v4670_v45 = vor.u32 %v5830_v40, %v4667_v42  ;;  %v4651_v54 = vld [vmem:[#allocation6 + $0x278] sm:$0xf0]  ;;  %v5782_v42 = vld [vmem:[#allocation6 + $0x10c] sm:$0xf] }
 0x327   : > { %v4347_v40 = vld [vmem:[#allocation6 + $0x18] sm:$0xf0] }
 0x328   : > { %3125 = vmatpush.bf16.msrb.mxu1 %v4906_v10  ;;  %3138 = vmatpush.bf16.msrb.mxu2 %v5034_v12  ;;  %v5838_v10 = vld [vmem:[#allocation6 + $0x2cc] sm:$0xf]  ;;  %v4699_v12 = vld [vmem:[#allocation6 + $0x2d8] sm:$0xf0] }
 0x329   : > { %3151 = vmatpush.bf16.msrb.mxu3 %v5162_v2  ;;  %3164 = vmatpush.bf16.msra.mxu0 %v5290_v18  ;;  %v4446_v2 = vor.u32 %v5774_v62, %v4443_v63  ;;  %v4574_v18 = vor.u32 %v5806_v8, %v4571_v9  ;;  %v4702_v22 = vor.u32 %v5838_v10, %v4699_v12  ;;  %v4379_v8 = vld [vmem:[#allocation6 + $0x58] sm:$0xf0]  ;;  %v5790_v12 = vld [vmem:[#allocation6 + $0x14c] sm:$0xf] }
 0x32a   : > { %v4398_v62 = vor.u32 %v5762_v41, %v4395_v14  ;;  %v5846_v41 = vld [vmem:[#allocation6 + $0x30c] sm:$0xf]  ;;  %v4731_v14 = vld [vmem:[#allocation6 + $0x318] sm:$0xf0] }
 0x32c   : > { %3126 = vmatpush.bf16.msrb.mxu1 %v4890_v25  ;;  %3139 = vmatpush.bf16.msrb.mxu2 %v5018_v26  ;;  %v5834_v25 = vld [vmem:[#allocation6 + $0x2ac] sm:$0xf]  ;;  %v6675_v26 = vld [vmem:[%s6823_s8] sm:$0xf] }
 0x32d   : > { %3152 = vmatpush.bf16.msrb.mxu3 %v5146_v11  ;;  %3165 = vmatpush.bf16.msra.mxu0 %v5274_v30  ;;  %v4811_v11 = vld [vmem:[#allocation6 + $0x3b8] sm:$0xf0]  ;;  %v2853_v31 = vperm.slane %v6675_v26, 0  ;;  %v4686_v38 = vor.u32 %v5834_v25, %v4683_v27 }
 0x330   : > { %3127 = vmatpush.bf16.msrb.mxu1 %v4874_v29  ;;  %3140 = vmatpush.bf16.msrb.mxu2 %v5002_v39  ;;  %v4814_v29 = vor.u32 %v5866_v28, %v4811_v11  ;;  %v5798_v39 = vld [vmem:[#allocation6 + $0x18c] sm:$0xf] }
 0x331   : > { %3153 = vmatpush.bf16.msrb.mxu3 %v5130_v43  ;;  %3166 = vmatpush.bf16.msra.mxu0 %v5258_v44  ;;  %v5862_v43 = vld [vmem:[#allocation6 + $0x38c] sm:$0xf]  ;;  %v4795_v44 = vld [vmem:[#allocation6 + $0x398] sm:$0xf0]  ;;  %v4542_v48 = vor.u32 %v5798_v39, %v4539_v16 }
 0x332   : > { %v4798_v49 = vor.u32 %v5862_v43, %v4795_v44  ;;  %v5786_v11 = vld [vmem:[#allocation6 + $0x12c] sm:$0xf]  ;;  %v4475_v43 = vld [vmem:[#allocation6 + $0x118] sm:$0xf0] }
 0x333   : > { %v2870_v30 = vpop.f32.mrf.mxu1 }
 0x334   : > { %3128 = vmatpush.bf16.msrb.mxu1 %v4858_v52  ;;  %3141 = vmatpush.bf16.msrb.mxu2 %v4986_v34  ;;  %v2909_v35 = vpop.f32.mrf.mxu0  ;;  %v2871_v46 = vadd.f32 %v2870_v30, %v2853_v31  ;;  %v4523_v52 = vld [vmem:[#allocation6 + $0x178] sm:$0xf0]  ;;  %v5826_v34 = vld [vmem:[#allocation6 + $0x26c] sm:$0xf] }
 0x335   : > { %3154 = vmatpush.bf16.msrb.mxu3 %v5114_v55  ;;  %3167 = vmatpush.bf16.msra.mxu0 %v5242_v57  ;;  %v5858_v55 = vld [vmem:[#allocation6 + $0x36c] sm:$0xf]  ;;  %v4779_v57 = vld [vmem:[#allocation6 + $0x378] sm:$0xf0]  ;;  %v4526_v63 = vor.u32 %v5794_v51, %v4523_v52  ;;  %v4654_v9 = vor.u32 %v5826_v34, %v4651_v54 }
 0x336   : > { %v4782_v10 = vor.u32 %v5858_v55, %v4779_v57  ;;  %v4491_v30 = vld [vmem:[#allocation6 + $0x138] sm:$0xf0]  ;;  %v5970_v52 = vld [vmem:[#allocation6 + $0x6ec] sm:$0xf] }
 0x337   : > { %3129 = vmatmul.bf16.vlgmr.msrb.gmra.mxu1 %v6648_v60  ;;  %3142 = vmatmul.bf16.vlgmr.msrb.gmra.mxu2 %v6650_v61  ;;  %v4619_v31 = vld [vmem:[#allocation6 + $0x238] sm:$0xf0]  ;;  %v4494_v39 = vor.u32 %v5786_v11, %v4491_v30  ;;  %v6002_v55 = vld [vmem:[#allocation6 + $0x7ec] sm:$0xf] }
 0x338   : > { %3173 = vmatpush.bf16.msra.mxu1 %v4462_v58  ;;  %3186 = vmatpush.bf16.msra.mxu2 %v4590_v59  ;;  %v5099_v51 = vld [vmem:[#allocation6 + $0x5f8] sm:$0xf0]  ;;  %v5898_v11 = vld [vmem:[#allocation6 + $0x4ac] sm:$0xf] }
 0x339   : > { %3199 = vmatpush.bf16.msra.mxu3 %v4718_v0  ;;  %3212 = vmatpush.bf16.msrb.mxu0 %v4846_v4  ;;  %v2883_v50 = vpop.f32.mrf.mxu2  ;;  %v5758_v4 = vld [vmem:[#allocation6 + $0x4c] sm:$0xf]  ;;  %v5227_v54 = vld [vmem:[#allocation6 + $0x6f8] sm:$0xf0] }
 0x33a   : > { %3155 = vmatmul.bf16.vlgmr.msrb.gmra.mxu3 %v6652_v1  ;;  %3168 = vmatmul.bf16.vlgmr.msra.gmra.mxu0 %v6654_v56  ;;  %v2884_v15 = vadd.f32 %v2883_v50, %v2871_v46  ;;  %v2896_v53 = vpop.f32.mrf.mxu3  ;;  %v4382_v21 = vor.u32 %v5758_v4, %v4379_v8  ;;  %v4750_v46 = vor.u32 %v5850_v36, %v4747_v37  ;;  %v5938_v50 = vld [vmem:[#allocation6 + $0x5ec] sm:$0xf]  ;;  %v5355_v57 = vld [vmem:[#allocation6 + $0x7f8] sm:$0xf0] }
 0x33b   : > { %v2872_v58 = vpop.f32.mrf.mxu1  ;;  %v4939_v30 = vld [vmem:[#allocation6 + $0x4b8] sm:$0xf0]  ;;  %v5962_v37 = vld [vmem:[#allocation6 + $0x6ac] sm:$0xf] }
 0x33c   : > { %3174 = vmatpush.bf16.msra.mxu1 %v4446_v2  ;;  %3187 = vmatpush.bf16.msra.mxu2 %v4574_v18  ;;  %v2897_v59 = vadd.f32 %v2896_v53, %v2884_v15  ;;  %v2911_v0 = vpop.f32.mrf.mxu0  ;;  %v4635_v2 = vld [vmem:[#allocation6 + $0x258] sm:$0xf0]  ;;  %v5854_v18 = vld [vmem:[#allocation6 + $0x34c] sm:$0xf]  ;;  %v4478_v53 = vor.u32 %v5782_v42, %v4475_v43 }
 0x33d   : > { %3200 = vmatpush.bf16.msra.mxu3 %v4702_v22  ;;  %3213 = vmatpush.bf16.msrb.mxu0 %v4830_v23  ;;  %v4510_v22 = vor.u32 %v5790_v12, %v4507_v13  ;;  %v5754_v23 = vld [vmem:[#allocation6 + $0x2c] sm:$0xf]  ;;  %v4638_v25 = vor.u32 %v5822_v17, %v4635_v2  ;;  %v4766_v27 = vor.u32 %v5854_v18, %v4763_v19  ;;  %v5083_v18 = vld [vmem:[#allocation6 + $0x5d8] sm:$0xf0] }
 0x33e   : > { %v2910_v20 = vadd.f32 %v2909_v35, %v2897_v59  ;;  %v5750_v35 = vld [vmem:[#allocation6 + $0xc] sm:$0xf]  ;;  %v4734_v59 = vor.u32 %v5846_v41, %v4731_v14  ;;  %v5102_v0 = vor.u32 %v5938_v50, %v5099_v51  ;;  %v5230_v12 = vor.u32 %v5970_v52, %v5227_v54  ;;  %v5067_v36 = vld [vmem:[#allocation6 + $0x5b8] sm:$0xf0] }
 0x33f   : > { %v4350_v15 = vor.u32 %v5750_v35, %v4347_v40  ;;  %v5358_v13 = vor.u32 %v6002_v55, %v5355_v57  ;;  %v5934_v2 = vld [vmem:[#allocation6 + $0x5cc] sm:$0xf]  ;;  %v5179_v41 = vld [vmem:[#allocation6 + $0x698] sm:$0xf0] }
 0x340   : > { %3175 = vmatpush.bf16.msra.mxu1 %v4430_v32  ;;  %3188 = vmatpush.bf16.msra.mxu2 %v4558_v33  ;;  %v5818_v32 = vld [vmem:[#allocation6 + $0x22c] sm:$0xf]  ;;  %v4907_v52 = vld [vmem:[#allocation6 + $0x478] sm:$0xf0] }
 0x341   : > { %3201 = vmatpush.bf16.msra.mxu3 %v4686_v38  ;;  %3214 = vmatpush.bf16.msrb.mxu0 %v4814_v29  ;;  %v2885_v28 = vpop.f32.mrf.mxu2  ;;  %v4366_v29 = vor.u32 %v5754_v23, %v4363_v24  ;;  %v4622_v44 = vor.u32 %v5818_v32, %v4619_v31  ;;  %v5966_v19 = vld [vmem:[#allocation6 + $0x6cc] sm:$0xf]  ;;  %v5339_v24 = vld [vmem:[#allocation6 + $0x7d8] sm:$0xf0] }
 0x342   : > { %v2898_v33 = vpop.f32.mrf.mxu3  ;;  %v5998_v23 = vld [vmem:[#allocation6 + $0x7cc] sm:$0xf]  ;;  %v5086_v28 = vor.u32 %v5934_v2, %v5083_v18  ;;  %v5035_v54 = vld [vmem:[#allocation6 + $0x578] sm:$0xf0] }
 0x343   : > { %v2922_v38 = vpop.f32.mrf.mxu1  ;;  %v5342_v33 = vor.u32 %v5998_v23, %v5339_v24  ;;  %v5930_v31 = vld [vmem:[#allocation6 + $0x5ac] sm:$0xf]  ;;  %v5163_v57 = vld [vmem:[#allocation6 + $0x678] sm:$0xf0] }
 0x344   : > { %3176 = vmatpush.bf16.msra.mxu1 %v4414_v47  ;;  %3189 = vmatpush.bf16.msra.mxu2 %v4542_v48  ;;  %v2961_v16 = vpop.f32.mrf.mxu0  ;;  %v5814_v47 = vld [vmem:[#allocation6 + $0x20c] sm:$0xf]  ;;  %v4603_v48 = vld [vmem:[#allocation6 + $0x218] sm:$0xf0]  ;;  %v2923_v34 = vadd.f32 %v2922_v38, %v2910_v20  ;;  %v5070_v40 = vor.u32 %v5930_v31, %v5067_v36 }
 0x345   : > { %3202 = vmatpush.bf16.msra.mxu3 %v4670_v45  ;;  %3215 = vmatpush.bf16.msrb.mxu0 %v4798_v49  ;;  %v5906_v45 = vld [vmem:[#allocation6 + $0x4ec] sm:$0xf]  ;;  %v4971_v49 = vld [vmem:[#allocation6 + $0x4f8] sm:$0xf0]  ;;  %v4606_v58 = vor.u32 %v5814_v47, %v4603_v48 }
 0x346   : > { %v5195_v38 = vld [vmem:[#allocation6 + $0x6b8] sm:$0xf0]  ;;  %v5994_v35 = vld [vmem:[#allocation6 + $0x7ac] sm:$0xf] }
 0x347   : > { %v5894_v43 = vld [vmem:[#allocation6 + $0x48c] sm:$0xf]  ;;  %v5051_v47 = vld [vmem:[#allocation6 + $0x598] sm:$0xf0] }
 0x348   : > { %3177 = vmatpush.bf16.msra.mxu1 %v4398_v62  ;;  %3190 = vmatpush.bf16.msra.mxu2 %v4526_v63  ;;  %v4974_v63 = vor.u32 %v5906_v45, %v4971_v49  ;;  %v5958_v48 = vld [vmem:[#allocation6 + $0x68c] sm:$0xf]  ;;  %v5147_v18 = vld [vmem:[#allocation6 + $0x658] sm:$0xf0] }
 0x349   : > { %3203 = vmatpush.bf16.msra.mxu3 %v4654_v9  ;;  %3216 = vmatpush.bf16.msrb.mxu0 %v4782_v10  ;;  %v2935_v62 = vpop.f32.mrf.mxu2  ;;  %v5902_v9 = vld [vmem:[#allocation6 + $0x4cc] sm:$0xf]  ;;  %v4955_v10 = vld [vmem:[#allocation6 + $0x4d8] sm:$0xf0] }
 0x34a   : > { %v2936_v4 = vadd.f32 %v2935_v62, %v2923_v34  ;;  %v2948_v8 = vpop.f32.mrf.mxu3  ;;  %v5990_v14 = vld [vmem:[#allocation6 + $0x78c] sm:$0xf]  ;;  %v5182_v34 = vor.u32 %v5958_v48, %v5179_v41  ;;  %v5131_v36 = vld [vmem:[#allocation6 + $0x638] sm:$0xf0] }
 0x34b   : > { %v2924_v17 = vpop.f32.mrf.mxu1  ;;  %v5890_v51 = vld [vmem:[#allocation6 + $0x46c] sm:$0xf]  ;;  %v5243_v41 = vld [vmem:[#allocation6 + $0x718] sm:$0xf0] }
 0x34c   : > { %3178 = vmatpush.bf16.msra.mxu1 %v4382_v21  ;;  %3191 = vmatpush.bf16.msra.mxu2 %v4510_v22  ;;  %v2949_v20 = vadd.f32 %v2948_v8, %v2936_v4  ;;  %v2963_v21 = vpop.f32.mrf.mxu0  ;;  %v5211_v22 = vld [vmem:[#allocation6 + $0x6d8] sm:$0xf0]  ;;  %v5954_v55 = vld [vmem:[#allocation6 + $0x66c] sm:$0xf]  ;;  %v4910_v62 = vor.u32 %v5890_v51, %v4907_v52 }
 0x34d   : > { %3204 = vmatpush.bf16.msra.mxu3 %v4638_v25  ;;  %3217 = vmatpush.bf16.msrb.mxu0 %v4766_v27  ;;  %v4958_v27 = vor.u32 %v5902_v9, %v4955_v10  ;;  %v5214_v32 = vor.u32 %v5966_v19, %v5211_v22  ;;  %v4891_v4 = vld [vmem:[#allocation6 + $0x458] sm:$0xf0]  ;;  %v5166_v8 = vor.u32 %v5954_v55, %v5163_v57  ;;  %v5950_v17 = vld [vmem:[#allocation6 + $0x64c] sm:$0xf]  ;;  %v5409_v57 = vld [vmem:[#allocation8 + $0x60] sm:$0xf] }
 0x34e   : > { %v6682_v25 = vadd.f32 %v2961_v16, %v2949_v20  ;;  %v4942_v16 = vor.u32 %v5898_v11, %v4939_v30  ;;  %v5982_v19 = vld [vmem:[#allocation6 + $0x74c] sm:$0xf]  ;;  %v5275_v20 = vld [vmem:[#allocation6 + $0x758] sm:$0xf0]  ;;  %v5150_v11 = vor.u32 %v5950_v17, %v5147_v18 }
 0x34f   : > { %v5278_v30 = vor.u32 %v5982_v19, %v5275_v20  ;;  %v5946_v31 = vld [vmem:[#allocation6 + $0x62c] sm:$0xf]  ;;  %v5393_v19 = vld [vmem:[#allocation8 + $0x40] sm:$0xf]  ;;  %v6014_v20 = vld [vmem:[#allocation8 + $0x44] sm:$0xf0] }
 0x350   : > { %3179 = vmatpush.bf16.msra.mxu1 %v4366_v29  ;;  %3192 = vmatpush.bf16.msra.mxu2 %v4494_v39  ;;  %v5323_v29 = vld [vmem:[#allocation6 + $0x7b8] sm:$0xf0]  ;;  %v5974_v48 = vld [vmem:[#allocation6 + $0x70c] sm:$0xf] }
 0x351   : > { %3205 = vmatpush.bf16.msra.mxu3 %v4622_v44  ;;  %3218 = vmatpush.bf16.msrb.mxu0 %v4750_v46  ;;  %v2937_v39 = vpop.f32.mrf.mxu2  ;;  %v4923_v44 = vld [vmem:[#allocation6 + $0x498] sm:$0xf0]  ;;  %v5326_v46 = vor.u32 %v5994_v35, %v5323_v29 }
 0x352   : > { %v2950_v42 = vpop.f32.mrf.mxu3  ;;  %v4926_v49 = vor.u32 %v5894_v43, %v4923_v44  ;;  %v5878_v39 = vld [vmem:[#allocation6 + $0x40c] sm:$0xf] }
 0x353   : > { %v5134_v42 = vor.u32 %v5946_v31, %v5131_v36  ;;  %v5537_v36 = vld [vmem:[#allocation8 + $0x160] sm:$0xf] }
 0x354   : > { %3180 = vmatpush.bf16.msra.mxu1 %v4350_v15  ;;  %3193 = vmatpush.bf16.msra.mxu2 %v4478_v53  ;;  %v6688_v45 = vpop.f32.mrf.mxu1  ;;  %v5922_v53 = vld [vmem:[#allocation6 + $0x56c] sm:$0xf] }
 0x355   : > { %3206 = vmatpush.bf16.msra.mxu3 %v4606_v58  ;;  %3219 = vmatpush.bf16.msrb.mxu0 %v4734_v59  ;;  %v5986_v58 = vld [vmem:[#allocation6 + $0x76c] sm:$0xf]  ;;  %v5291_v59 = vld [vmem:[#allocation6 + $0x778] sm:$0xf0] }
 0x356   : > { %v5294_v9 = vor.u32 %v5986_v58, %v5291_v59  ;;  %v6018_v58 = vld [vmem:[#allocation8 + $0x64] sm:$0xf0]  ;;  %v5473_v59 = vld [vmem:[#allocation8 + $0xe0] sm:$0xf] }
 0x357   : > { %3181 = vmatmul.bf16.vlgmr.msra.gmra.mxu1 %v6632_v3  ;;  %3194 = vmatmul.bf16.vlgmr.msra.gmra.mxu2 %v6634_v5  ;;  %v5198_v3 = vor.u32 %v5962_v37, %v5195_v38  ;;  %v5926_v5 = vld [vmem:[#allocation6 + $0x58c] sm:$0xf]  ;;  %v5259_v38 = vld [vmem:[#allocation6 + $0x738] sm:$0xf0] }
 0x358   : > { %3225 = vmatpush.bf16.msrb.mxu1 %v4974_v63  ;;  %3238 = vmatpush.bf16.msrb.mxu2 %v5102_v0  ;;  %v5054_v50 = vor.u32 %v5926_v5, %v5051_v47  ;;  %v5038_v63 = vor.u32 %v5922_v53, %v5035_v54  ;;  %v5886_v0 = vld [vmem:[#allocation6 + $0x44c] sm:$0xf]  ;;  %v5115_v5 = vld [vmem:[#allocation6 + $0x618] sm:$0xf0]  ;;  %v2854_v53 = vperm.slane %v6675_v26, 1 }
 0x359   : > { %3251 = vmatpush.bf16.msrb.mxu3 %v5230_v12  ;;  %3264 = vmatpush.bf16.msra.mxu0 %v5358_v13  ;;  %v5918_v12 = vld [vmem:[#allocation6 + $0x54c] sm:$0xf]  ;;  %v5019_v13 = vld [vmem:[#allocation6 + $0x558] sm:$0xf0]  ;;  %v4894_v23 = vor.u32 %v5886_v0, %v4891_v4  ;;  %v5410_v0 = vor.u32 %v6018_v58, %v5409_v57 }
 0x35a   : > { %3207 = vmatmul.bf16.vlgmr.msra.gmra.mxu3 %v6636_v6  ;;  %3220 = vmatmul.bf16.vlgmr.msrb.gmra.mxu0 %v6638_v7  ;;  %v5307_v6 = vld [vmem:[#allocation6 + $0x798] sm:$0xf0]  ;;  %v6690_v7 = vpop.f32.mrf.mxu0  ;;  %v6692_v10 = vpop.f32.mrf.mxu2  ;;  %v5022_v24 = vor.u32 %v5918_v12, %v5019_v13  ;;  %v5978_v37 = vld [vmem:[#allocation6 + $0x72c] sm:$0xf]  ;;  %v5465_v12 = vld [vmem:[#allocation8 + $0xd0] sm:$0xf] }
 0x35b   : > { %v5310_v15 = vor.u32 %v5990_v14, %v5307_v6  ;;  %v5262_v43 = vor.u32 %v5978_v37, %v5259_v38  ;;  %v5417_v14 = vld [vmem:[#allocation8 + $0x70] sm:$0xf]  ;;  %v6020_v6 = vld [vmem:[#allocation8 + $0x74] sm:$0xf0]  ;;  %v6050_v37 = vld [vmem:[#allocation8 + $0x164] sm:$0xf0] }
 0x35c   : > { %3226 = vmatpush.bf16.msrb.mxu1 %v4958_v27  ;;  %3239 = vmatpush.bf16.msrb.mxu2 %v5086_v28  ;;  %v2976_v21 = vpop.f32.mrf.mxu1  ;;  %v5882_v27 = vld [vmem:[#allocation6 + $0x42c] sm:$0xf]  ;;  %v4875_v28 = vld [vmem:[#allocation6 + $0x438] sm:$0xf0]  ;;  %v5418_v54 = vor.u32 %v6020_v6, %v5417_v14  ;;  %v6032_v13 = vld [vmem:[#allocation8 + $0xd4] sm:$0xf0] }
 0x35d   : > { %3252 = vmatpush.bf16.msrb.mxu3 %v5214_v32  ;;  %3265 = vmatpush.bf16.msra.mxu0 %v5342_v33  ;;  %v6694_v2 = vpop.f32.mrf.mxu3  ;;  %v5914_v32 = vld [vmem:[#allocation6 + $0x52c] sm:$0xf]  ;;  %v5003_v33 = vld [vmem:[#allocation6 + $0x538] sm:$0xf0]  ;;  %v4878_v35 = vor.u32 %v5882_v27, %v4875_v28  ;;  %v5466_v18 = vor.u32 %v6032_v13, %v5465_v12  ;;  %v5457_v21 = vld [vmem:[#allocation8 + $0xc0] sm:$0xf]  ;;  %v5394_v27 = vor.u32 %v6014_v20, %v5393_v19 }
 0x35e   : > { %v5006_v29 = vor.u32 %v5914_v32, %v5003_v33  ;;  %v5385_v28 = vld [vmem:[#allocation8 + $0x30] sm:$0xf]  ;;  %v6028_v32 = vld [vmem:[#allocation8 + $0xb4] sm:$0xf0]  ;;  %v5483_v12 = vld [vmem:[#allocation8 + $0xf8] sm:$0xf0] }
 0x35f   : > { %v5513_v13 = vld [vmem:[#allocation8 + $0x130] sm:$0xf] }
 0x360   : > { %3227 = vmatpush.bf16.msrb.mxu1 %v4942_v16  ;;  %3240 = vmatpush.bf16.msrb.mxu2 %v5070_v40  ;;  %v4859_v16 = vld [vmem:[#allocation6 + $0x418] sm:$0xf0]  ;;  %v5910_v40 = vld [vmem:[#allocation6 + $0x50c] sm:$0xf] }
 0x361   : > { %3253 = vmatpush.bf16.msrb.mxu3 %v5198_v3  ;;  %3266 = vmatpush.bf16.msra.mxu0 %v5326_v46  ;;  %v4987_v3 = vld [vmem:[#allocation6 + $0x518] sm:$0xf0]  ;;  %v5942_v46 = vld [vmem:[#allocation6 + $0x60c] sm:$0xf]  ;;  %v4862_v51 = vor.u32 %v5878_v39, %v4859_v16  ;;  %v6010_v16 = vld [vmem:[#allocation8 + $0x24] sm:$0xf0] }
 0x362   : > { %v3015_v22 = vpop.f32.mrf.mxu0  ;;  %v2989_v44 = vpop.f32.mrf.mxu2  ;;  %v4990_v52 = vor.u32 %v5910_v40, %v4987_v3  ;;  %v5441_v40 = vld [vmem:[#allocation8 + $0xa0] sm:$0xf] }
 0x363   : > { %v6030_v22 = vld [vmem:[#allocation8 + $0xc4] sm:$0xf0] }
 0x364   : > { %3228 = vmatpush.bf16.msrb.mxu1 %v4926_v49  ;;  %3241 = vmatpush.bf16.msrb.mxu2 %v5054_v50  ;;  %v5481_v49 = vld [vmem:[#allocation8 + $0xf0] sm:$0xf]  ;;  %v6036_v50 = vld [vmem:[#allocation8 + $0xf4] sm:$0xf0] }
 0x365   : > { %3254 = vmatpush.bf16.msrb.mxu3 %v5182_v34  ;;  %3267 = vmatpush.bf16.msra.mxu0 %v5310_v15  ;;  %v3002_v47 = vpop.f32.mrf.mxu3  ;;  %v5118_v34 = vor.u32 %v5942_v46, %v5115_v5  ;;  %v5246_v15 = vor.u32 %v5974_v48, %v5243_v41  ;;  %v5482_v55 = vor.u32 %v6036_v50, %v5481_v49  ;;  %v5529_v46 = vld [vmem:[#allocation8 + $0x150] sm:$0xf]  ;;  %v6008_v49 = vld [vmem:[#allocation8 + $0x14] sm:$0xf0] }
 0x366   : > { %v5369_v41 = vld [vmem:[#allocation8 + $0x10] sm:$0xf] }
 0x367   : > { %v5433_v50 = vld [vmem:[#allocation8 + $0x90] sm:$0xf] }
 0x368   : > { %3229 = vmatpush.bf16.msrb.mxu1 %v4910_v62  ;;  %3242 = vmatpush.bf16.msrb.mxu2 %v5038_v63  ;;  %v6034_v62 = vld [vmem:[#allocation8 + $0xe4] sm:$0xf0]  ;;  %v2975_v63 = vadd.f32 %v6688_v45, %v2854_v53 }
 0x369   : > { %3255 = vmatpush.bf16.msrb.mxu3 %v5166_v8  ;;  %3268 = vmatpush.bf16.msra.mxu0 %v5294_v9  ;;  %v5474_v4 = vor.u32 %v6034_v62, %v5473_v59  ;;  %v5401_v8 = vld [vmem:[#allocation8 + $0x50] sm:$0xf]  ;;  %v6016_v9 = vld [vmem:[#allocation8 + $0x54] sm:$0xf0]  ;;  %v5425_v62 = vld [vmem:[#allocation8 + $0x80] sm:$0xf] }
 0x36a   : > { %v2988_v17 = vadd.f32 %v6692_v10, %v2975_v63  ;;  %v5402_v45 = vor.u32 %v6016_v9, %v5401_v8  ;;  %v6022_v63 = vld [vmem:[#allocation8 + $0x84] sm:$0xf0]  ;;  %v5419_v8 = vld [vmem:[#allocation8 + $0x78] sm:$0xf0]  ;;  %v6035_v9 = vld [vmem:[#allocation8 + $0xf4] sm:$0xf] }
 0x36b   : > { %v5426_v19 = vor.u32 %v6022_v63, %v5425_v62 }
 0x36c   : > { %3230 = vmatpush.bf16.msrb.mxu1 %v4894_v23  ;;  %3243 = vmatpush.bf16.msrb.mxu2 %v5022_v24  ;;  %v5545_v23 = vld [vmem:[#allocation8 + $0x170] sm:$0xf]  ;;  %v6052_v24 = vld [vmem:[#allocation8 + $0x174] sm:$0xf0] }
 0x36d   : > { %3256 = vmatpush.bf16.msrb.mxu3 %v5150_v11  ;;  %3269 = vmatpush.bf16.msra.mxu0 %v5278_v30  ;;  %v5546_v11 = vor.u32 %v6052_v24, %v5545_v23  ;;  %v5449_v30 = vld [vmem:[#allocation8 + $0xb0] sm:$0xf]  ;;  %v5411_v23 = vld [vmem:[#allocation8 + $0x68] sm:$0xf0]  ;;  %v6033_v24 = vld [vmem:[#allocation8 + $0xe4] sm:$0xf] }
 0x36e   : > { %v5450_v38 = vor.u32 %v6028_v32, %v5449_v30 }
 0x370   : > { %3231 = vmatpush.bf16.msrb.mxu1 %v4878_v35  ;;  %3244 = vmatpush.bf16.msrb.mxu2 %v5006_v29  ;;  %v5377_v35 = vld [vmem:[#allocation8 + $0x20] sm:$0xf]  ;;  %v5538_v29 = vor.u32 %v6050_v37, %v5537_v36  ;;  %v5403_v36 = vld [vmem:[#allocation8 + $0x58] sm:$0xf0]  ;;  %v6031_v37 = vld [vmem:[#allocation8 + $0xd4] sm:$0xf] }
 0x371   : > { %3257 = vmatpush.bf16.msrb.mxu3 %v5134_v42  ;;  %3270 = vmatpush.bf16.msra.mxu0 %v5262_v43  ;;  %v6026_v42 = vld [vmem:[#allocation8 + $0xa4] sm:$0xf0]  ;;  %v5378_v47 = vor.u32 %v6010_v16, %v5377_v35  ;;  %v5395_v16 = vld [vmem:[#allocation8 + $0x48] sm:$0xf0] }
 0x372   : > { %v5442_v48 = vor.u32 %v6026_v42, %v5441_v40  ;;  %v6029_v40 = vld [vmem:[#allocation8 + $0xc4] sm:$0xf]  ;;  %v5459_v42 = vld [vmem:[#allocation8 + $0xc8] sm:$0xf0] }
 0x374   : > { %3232 = vmatpush.bf16.msrb.mxu1 %v4862_v51  ;;  %3245 = vmatpush.bf16.msrb.mxu2 %v4990_v52  ;;  %v6024_v51 = vld [vmem:[#allocation8 + $0x94] sm:$0xf0]  ;;  %v5521_v52 = vld [vmem:[#allocation8 + $0x140] sm:$0xf] }
 0x375   : > { %3258 = vmatpush.bf16.msrb.mxu3 %v5118_v34  ;;  %3271 = vmatpush.bf16.msra.mxu0 %v5246_v15  ;;  %v6046_v34 = vld [vmem:[#allocation8 + $0x144] sm:$0xf0]  ;;  %v5370_v15 = vor.u32 %v6008_v49, %v5369_v41  ;;  %v5434_v53 = vor.u32 %v6024_v51, %v5433_v50  ;;  %v6011_v41 = vld [vmem:[#allocation8 + $0x34] sm:$0xf]  ;;  %v5387_v49 = vld [vmem:[#allocation8 + $0x38] sm:$0xf0] }
 0x376   : > { %v5522_v57 = vor.u32 %v6046_v34, %v5521_v52  ;;  %v6027_v50 = vld [vmem:[#allocation8 + $0xb4] sm:$0xf]  ;;  %v5451_v51 = vld [vmem:[#allocation8 + $0xb8] sm:$0xf0]  ;;  %v6049_v52 = vld [vmem:[#allocation8 + $0x164] sm:$0xf] }
 0x377   : > { %3233 = vmatmul.bf16.vlgmr.msrb.gmra.mxu1 %v6648_v60  ;;  %3246 = vmatmul.bf16.vlgmr.msrb.gmra.mxu2 %v6650_v61  ;;  %v3001_v60 = vadd.f32 %v6694_v2, %v2988_v17  ;;  %v3026_v61 = vpop.f32.mrf.mxu1  ;;  %v3065_v10 = vpop.f32.mrf.mxu0  ;;  %v6044_v17 = vld [vmem:[#allocation8 + $0x134] sm:$0xf0]  ;;  %v5539_v34 = vld [vmem:[#allocation8 + $0x168] sm:$0xf0] }
 0x378   : > { %3675 = vmatpush.bf16.msra.mxu1 %v5418_v54  ;;  %3688 = vmatpush.bf16.msra.mxu2 %v5482_v55  ;;  %v5361_v54 = vld [vmem:[#allocation8] sm:$0xf]  ;;  %v6006_v55 = vld [vmem:[#allocation8 + $0x4] sm:$0xf0]  ;;  %v5514_v20 = vor.u32 %v6044_v17, %v5513_v13  ;;  %v6007_v13 = vld [vmem:[#allocation8 + $0x14] sm:$0xf] }
 0x379   : > { %3259 = vmatmul.bf16.vlgmr.msrb.gmra.mxu3 %v6652_v1  ;;  %3272 = vmatmul.bf16.vlgmr.msra.gmra.mxu0 %v6654_v56  ;;  %v5458_v1 = vor.u32 %v6030_v22, %v5457_v21  ;;  %v6012_v56 = vld [vmem:[#allocation8 + $0x34] sm:$0xf0]  ;;  %v3014_v33 = vadd.f32 %v6690_v7, %v3001_v60  ;;  %v5486_v60 = vor.u32 %v6035_v9, %v5483_v12 }
 0x37a   : > { %3701 = vmatpush.bf16.msra.mxu3 %v5546_v11  ;;  %v5386_v31 = vor.u32 %v6012_v56, %v5385_v28  ;;  %v3039_v39 = vpop.f32.mrf.mxu2  ;;  %v6048_v7 = vld [vmem:[#allocation8 + $0x154] sm:$0xf0]  ;;  %v5497_v56 = vld [vmem:[#allocation8 + $0x110] sm:$0xf] }
 0x37b   : > { %v3027_v2 = vadd.f32 %v3026_v61, %v3014_v33  ;;  %v5530_v14 = vor.u32 %v6048_v7, %v5529_v46  ;;  %v6017_v61 = vld [vmem:[#allocation8 + $0x64] sm:$0xf]  ;;  %v6040_v11 = vld [vmem:[#allocation8 + $0x114] sm:$0xf0]  ;;  %v6051_v46 = vld [vmem:[#allocation8 + $0x174] sm:$0xf] }
 0x37c   : > { %3676 = vmatpush.bf16.msra.mxu1 %v5410_v0  ;;  %3689 = vmatpush.bf16.msra.mxu2 %v5474_v4  ;;  %v6019_v0 = vld [vmem:[#allocation8 + $0x74] sm:$0xf]  ;;  %v5414_v32 = vor.u32 %v6017_v61, %v5411_v23  ;;  %v5547_v7 = vld [vmem:[#allocation8 + $0x178] sm:$0xf0]  ;;  %v6005_v23 = vld [vmem:[#allocation8 + $0x4] sm:$0xf] }
 0x37d   : > { %v3040_v43 = vadd.f32 %v3039_v39, %v3027_v2  ;;  %v3052_v44 = vpop.f32.mrf.mxu3  ;;  %v5422_v22 = vor.u32 %v6019_v0, %v5419_v8  ;;  %v5467_v2 = vld [vmem:[#allocation8 + $0xd8] sm:$0xf0]  ;;  %v6013_v39 = vld [vmem:[#allocation8 + $0x44] sm:$0xf]  ;;  %v6047_v0 = vld [vmem:[#allocation8 + $0x154] sm:$0xf] }
 0x37e   : > { %3702 = vmatpush.bf16.msra.mxu3 %v5538_v29  ;;  %v5470_v29 = vor.u32 %v6031_v37, %v5467_v2  ;;  %v5507_v2 = vld [vmem:[#allocation8 + $0x128] sm:$0xf0] }
 0x37f   : > { %v3028_v3 = vpop.f32.mrf.mxu1  ;;  %v3067_v5 = vpop.f32.mrf.mxu0  ;;  %v3053_v6 = vadd.f32 %v3052_v44, %v3040_v43  ;;  %v5489_v43 = vld [vmem:[#allocation8 + $0x100] sm:$0xf]  ;;  %v6038_v44 = vld [vmem:[#allocation8 + $0x104] sm:$0xf0] }
 0x380   : > { %3677 = vmatpush.bf16.msra.mxu1 %v5402_v45  ;;  %3690 = vmatpush.bf16.msra.mxu2 %v5466_v18  ;;  %v3277_v45 = vmax.f32 %v6682_v25, 0.0  ;;  %v5362_v18 = vor.u32 %v6006_v55, %v5361_v54  ;;  %v5490_v3 = vor.u32 %v6038_v44, %v5489_v43  ;;  %v6009_v54 = vld [vmem:[#allocation8 + $0x24] sm:$0xf]  ;;  %v5542_v55 = vor.u32 %v6049_v52, %v5539_v34  ;;  %v5491_v44 = vld [vmem:[#allocation8 + $0x108] sm:$0xf0] }
 0x381   : > { %v3066_v58 = vadd.f32 %v3065_v10, %v3053_v6  ;;  %v5475_v10 = vld [vmem:[#allocation8 + $0xe8] sm:$0xf0]  ;;  %v6037_v43 = vld [vmem:[#allocation8 + $0x104] sm:$0xf]  ;;  %v6064_v52 = vld [vmem:[#allocation8 + $0x1d4] sm:$0xf0] }
 0x382   : > { %3703 = vmatpush.bf16.msra.mxu3 %v5530_v14  ;;  %v3041_v59 = vpop.f32.mrf.mxu2  ;;  %v6706_v28 = vpack.c.bf16 %v3277_v45, %v3277_v45  ;;  %v5478_v33 = vor.u32 %v6033_v24, %v5475_v10  ;;  %v5550_v14 = vor.u32 %v6051_v46, %v5547_v7  ;;  %v5363_v10 = vld [vmem:[#allocation8 + $0x8] sm:$0xf0]  ;;  %v5609_v46 = vld [vmem:[#allocation8 + $0x1f0] sm:$0xf]  ;;  %v6068_v7 = vld [vmem:[#allocation8 + $0x1f4] sm:$0xf0] }
 0x383   : > { %v3278_v21 = vmax.f32 %v3066_v58, 0.0  ;;  %v6025_v58 = vld [vmem:[#allocation8 + $0xa4] sm:$0xf]  ;;  %v5443_v59 = vld [vmem:[#allocation8 + $0xa8] sm:$0xf0] }
 0x384   : > { %3678 = vmatpush.bf16.msra.mxu1 %v5394_v27  ;;  %3691 = vmatpush.bf16.msra.mxu2 %v5458_v1  ;;  %v5505_v27 = vld [vmem:[#allocation8 + $0x120] sm:$0xf]  ;;  %v6042_v1 = vld [vmem:[#allocation8 + $0x124] sm:$0xf0]  ;;  %v5446_v12 = vor.u32 %v6025_v58, %v5443_v59 }
 0x385   : > { %v3054_v4 = vpop.f32.mrf.mxu3  ;;  %v5506_v25 = vor.u32 %v6042_v1, %v5505_v27  ;;  %v6708_v30 = vpack.c.bf16 %v3278_v21, %v3278_v21  ;;  %v6045_v21 = vld [vmem:[#allocation8 + $0x144] sm:$0xf]  ;;  %v5427_v1 = vld [vmem:[#allocation8 + $0x88] sm:$0xf0]  ;;  %v5585_v58 = vld [vmem:[#allocation8 + $0x1c0] sm:$0xf] }
 0x386   : > { %3704 = vmatpush.bf16.msra.mxu3 %v5522_v57  ;;  %v5379_v57 = vld [vmem:[#allocation8 + $0x28] sm:$0xf0]  ;;  %v5531_v4 = vld [vmem:[#allocation8 + $0x158] sm:$0xf0]  ;;  %v6021_v27 = vld [vmem:[#allocation8 + $0x84] sm:$0xf] }
 0x387   : > { %v5382_v9 = vor.u32 %v6009_v54, %v5379_v57  ;;  %v5534_v17 = vor.u32 %v6047_v0, %v5531_v4  ;;  %v6062_v59 = vld [vmem:[#allocation8 + $0x1c4] sm:$0xf0]  ;;  %v6060_v4 = vld [vmem:[#allocation8 + $0x1b4] sm:$0xf0] }
 0x388   : > { %3679 = vmatpush.bf16.msra.mxu1 %v5386_v31  ;;  %3692 = vmatpush.bf16.msra.mxu2 %v5450_v38  ;;  %v6015_v31 = vld [vmem:[#allocation8 + $0x54] sm:$0xf]  ;;  %v5498_v38 = vor.u32 %v6040_v11, %v5497_v56 }
 0x389   : > { %v5406_v35 = vor.u32 %v6015_v31, %v5403_v36  ;;  %v6043_v11 = vld [vmem:[#allocation8 + $0x134] sm:$0xf]  ;;  %v5366_v31 = vor.u32 %v6005_v23, %v5363_v10  ;;  %v5430_v36 = vor.u32 %v6021_v27, %v5427_v1 }
 0x38a   : > { %3705 = vmatpush.bf16.msra.mxu3 %v5514_v20  ;;  %v5435_v20 = vld [vmem:[#allocation8 + $0x98] sm:$0xf0]  ;;  %v6067_v23 = vld [vmem:[#allocation8 + $0x1f4] sm:$0xf] }
 0x38c   : > { %3680 = vmatpush.bf16.msra.mxu1 %v5378_v47  ;;  %3693 = vmatpush.bf16.msra.mxu2 %v5442_v48  ;;  %v5398_v47 = vor.u32 %v6013_v39, %v5395_v16  ;;  %v5462_v48 = vor.u32 %v6029_v40, %v5459_v42  ;;  %v5499_v39 = vld [vmem:[#allocation8 + $0x118] sm:$0xf0] }
 0x38e   : > { %3706 = vmatpush.bf16.msra.mxu3 %v5506_v25 }
 0x390   : > { %3681 = vmatpush.bf16.msra.mxu1 %v5370_v15  ;;  %3694 = vmatpush.bf16.msra.mxu2 %v5434_v53  ;;  %v5390_v15 = vor.u32 %v6011_v41, %v5387_v49  ;;  %v5454_v53 = vor.u32 %v6027_v50, %v5451_v51  ;;  %v6066_v49 = vld [vmem:[#allocation8 + $0x1e4] sm:$0xf0]  ;;  %v5593_v51 = vld [vmem:[#allocation8 + $0x1d0] sm:$0xf] }
 0x392   : > { %3707 = vmatpush.bf16.msra.mxu3 %v5498_v38 }
 0x394   : > { %3682 = vmatpush.bf16.msra.mxu1 %v5362_v18  ;;  %3695 = vmatpush.bf16.msra.mxu2 %v5426_v19  ;;  %v6712_v5 = vpop.f32.mrf.mxu1  ;;  %v5371_v18 = vld [vmem:[#allocation8 + $0x18] sm:$0xf0]  ;;  %v6023_v19 = vld [vmem:[#allocation8 + $0x94] sm:$0xf] }
 0x395   : > { %v5438_v61 = vor.u32 %v6023_v19, %v5435_v20  ;;  %v5561_v19 = vld [vmem:[#allocation8 + $0x190] sm:$0xf]  ;;  %v6056_v20 = vld [vmem:[#allocation8 + $0x194] sm:$0xf0] }
 0x396   : > { %3708 = vmatpush.bf16.msra.mxu3 %v5490_v3  ;;  %v5494_v3 = vor.u32 %v6037_v43, %v5491_v44  ;;  %v6057_v44 = vld [vmem:[#allocation8 + $0x1a4] sm:$0xf] }
 0x397   : > { %3683 = vmatmul.bf16.vlgmr.msra.gmra.mxu1 %v6706_v28  ;;  %3696 = vmatmul.bf16.vlgmr.msra.gmra.mxu2 %v6708_v30  ;;  %v6714_v6 = vpop.f32.mrf.mxu0 }
 0x398   : > { %3727 = vmatpush.bf16.msrb.mxu1 %v5422_v22  ;;  %3740 = vmatpush.bf16.msrb.mxu2 %v5486_v60  ;;  %v5523_v22 = vld [vmem:[#allocation8 + $0x148] sm:$0xf0]  ;;  %v5374_v60 = vor.u32 %v6007_v13, %v5371_v18  ;;  %v6058_v13 = vld [vmem:[#allocation8 + $0x1a4] sm:$0xf0] }
 0x399   : > { %v5526_v24 = vor.u32 %v6045_v21, %v5523_v22  ;;  %v5562_v21 = vor.u32 %v6056_v20, %v5561_v19  ;;  %v5553_v22 = vld [vmem:[#allocation8 + $0x180] sm:$0xf] }
 0x39a   : > { %3753 = vmatpush.bf16.msrb.mxu3 %v5550_v14  ;;  %v3091_v62 = vpop.f32.mrf.mxu2  ;;  %v5601_v14 = vld [vmem:[#allocation8 + $0x1e0] sm:$0xf] }
 0x39c   : > { %3728 = vmatpush.bf16.msrb.mxu1 %v5414_v32  ;;  %3741 = vmatpush.bf16.msrb.mxu2 %v5478_v33  ;;  %v3080_v8 = vpop.f32.mrf.mxu1  ;;  %v5515_v32 = vld [vmem:[#allocation8 + $0x138] sm:$0xf0]  ;;  %v6041_v33 = vld [vmem:[#allocation8 + $0x124] sm:$0xf] }
 0x39d   : > { %v3104_v63 = vpop.f32.mrf.mxu3  ;;  %v5518_v37 = vor.u32 %v6043_v11, %v5515_v32  ;;  %v5510_v38 = vor.u32 %v6041_v33, %v5507_v2  ;;  %v6063_v32 = vld [vmem:[#allocation8 + $0x1d4] sm:$0xf]  ;;  %v5595_v33 = vld [vmem:[#allocation8 + $0x1d8] sm:$0xf0] }
 0x39e   : > { %3754 = vmatpush.bf16.msrb.mxu3 %v5542_v55 }
 0x39f   : > { %v3119_v45 = vpop.f32.mrf.mxu0 }
 0x3a0   : > { %3729 = vmatpush.bf16.msrb.mxu1 %v5406_v35  ;;  %3742 = vmatpush.bf16.msrb.mxu2 %v5470_v29  ;;  %v2855_v35 = vperm.slane %v6675_v26, 2  ;;  %v6039_v29 = vld [vmem:[#allocation8 + $0x114] sm:$0xf] }
 0x3a1   : > { %v5502_v16 = vor.u32 %v6039_v29, %v5499_v39  ;;  %v5587_v29 = vld [vmem:[#allocation8 + $0x1c8] sm:$0xf0] }
 0x3a2   : > { %3755 = vmatpush.bf16.msrb.mxu3 %v5534_v17  ;;  %v3093_v25 = vpop.f32.mrf.mxu2  ;;  %v3079_v40 = vadd.f32 %v6712_v5, %v2855_v35  ;;  %v6061_v35 = vld [vmem:[#allocation8 + $0x1c4] sm:$0xf] }
 0x3a3   : > { %v6065_v25 = vld [vmem:[#allocation8 + $0x1e4] sm:$0xf]  ;;  %v5590_v39 = vor.u32 %v6061_v35, %v5587_v29  ;;  %v6082_v35 = vld [vmem:[%s6826_s11 + $0x68] sm:$0xff] }
 0x3a4   : > { %3730 = vmatpush.bf16.msrb.mxu1 %v5398_v47  ;;  %3743 = vmatpush.bf16.msrb.mxu2 %v5462_v48  ;;  %v3092_v42 = vadd.f32 %v3091_v62, %v3079_v40  ;;  %v5610_v47 = vor.u32 %v6068_v7, %v5609_v46  ;;  %v5579_v40 = vld [vmem:[#allocation8 + $0x1b8] sm:$0xf0] }
 0x3a5   : > { %v3106_v56 = vpop.f32.mrf.mxu3 }
 0x3a6   : > { %3756 = vmatpush.bf16.msrb.mxu3 %v5526_v24  ;;  %v3105_v26 = vadd.f32 %v3104_v63, %v3092_v42  ;;  %3714 = vmatpush.bf16.msrb.mxu0 %v5610_v47  ;;  %v5586_v63 = vor.u32 %v6062_v59, %v5585_v58  ;;  %v5611_v24 = vld [vmem:[#allocation8 + $0x1f8] sm:$0xf0]  ;;  %v5603_v56 = vld [vmem:[#allocation8 + $0x1e8] sm:$0xf0] }
 0x3a7   : > { %v5614_v10 = vor.u32 %v6067_v23, %v5611_v24  ;;  %v5606_v11 = vor.u32 %v6065_v25, %v5603_v56  ;;  %v5563_v47 = vld [vmem:[#allocation8 + $0x198] sm:$0xf0]  ;;  %v6075_v25 = vld [vmem:[%s6826_s11 + $0x30] sm:$0xff] }
 0x3a8   : > { %3731 = vmatpush.bf16.msrb.mxu1 %v5390_v15  ;;  %3744 = vmatpush.bf16.msrb.mxu2 %v5454_v53  ;;  %v3118_v5 = vadd.f32 %v6714_v6, %v3105_v26  ;;  %v5594_v53 = vor.u32 %v6064_v52, %v5593_v51  ;;  %v5577_v6 = vld [vmem:[#allocation8 + $0x1b0] sm:$0xf]  ;;  %v6055_v26 = vld [vmem:[#allocation8 + $0x194] sm:$0xf] }
 0x3a9   : > { %v6083_v56 = vld [vmem:[%s6826_s11 + $0x70] sm:$0xff] }
 0x3aa   : > { %3757 = vmatpush.bf16.msrb.mxu3 %v5518_v37 }
 0x3ac   : > { %3732 = vmatpush.bf16.msrb.mxu1 %v5382_v9  ;;  %3745 = vmatpush.bf16.msrb.mxu2 %v5446_v12  ;;  %v5578_v9 = vor.u32 %v6060_v4, %v5577_v6  ;;  %v5569_v12 = vld [vmem:[#allocation8 + $0x1a0] sm:$0xf] }
 0x3ad   : > { %v5570_v18 = vor.u32 %v6058_v13, %v5569_v12 }
 0x3ae   : > { %3758 = vmatpush.bf16.msrb.mxu3 %v5510_v38 }
 0x3b0   : > { %3733 = vmatpush.bf16.msrb.mxu1 %v5374_v60  ;;  %3746 = vmatpush.bf16.msrb.mxu2 %v5438_v61  ;;  %v6054_v60 = vld [vmem:[#allocation8 + $0x184] sm:$0xf0] }
 0x3b1   : > { %v5554_v61 = vor.u32 %v6054_v60, %v5553_v22 }
 0x3b2   : > { %3759 = vmatpush.bf16.msrb.mxu3 %v5502_v16  ;;  %v6059_v16 = vld [vmem:[#allocation8 + $0x1b4] sm:$0xf] }
 0x3b3   : > { %v5582_v43 = vor.u32 %v6059_v16, %v5579_v40  ;;  %v6081_v16 = vld [vmem:[%s6826_s11 + $0x60] sm:$0xff]  ;;  %v6080_v40 = vld [vmem:[%s6826_s11 + $0x58] sm:$0xff] }
 0x3b4   : > { %3734 = vmatpush.bf16.msrb.mxu1 %v5366_v31  ;;  %3747 = vmatpush.bf16.msrb.mxu2 %v5430_v36  ;;  %v3130_v48 = vpop.f32.mrf.mxu1  ;;  %v5598_v36 = vor.u32 %v6063_v32, %v5595_v33  ;;  %v6073_v33 = vld [vmem:[%s6826_s11 + $0x20] sm:$0xff] }
 0x3b5   : > { %v3131_v50 = vadd.f32 %v3130_v48, %v3118_v5  ;;  %v6193_v48 = vld [vmem:[%s6823_s8] sm:$0xf] }
 0x3b6   : > { %3760 = vmatpush.bf16.msrb.mxu3 %v5494_v3  ;;  %v5571_v3 = vld [vmem:[#allocation8 + $0x1a8] sm:$0xf0] }
 0x3b7   : > { %3735 = vmatmul.bf16.vlgmr.msrb.gmra.mxu1 %v6706_v28  ;;  %3748 = vmatmul.bf16.vlgmr.msrb.gmra.mxu2 %v6708_v30  ;;  %v3169_v41 = vpop.f32.mrf.mxu0  ;;  %v5602_v28 = vor.u32 %v6066_v49, %v5601_v14  ;;  %v5574_v7 = vor.u32 %v6057_v44, %v5571_v3  ;;  %v5566_v14 = vor.u32 %v6055_v26, %v5563_v47  ;;  %v6077_v44 = vld [vmem:[%s6826_s11 + $0x40] sm:$0xff] }
 0x3b9   : > { %3715 = vmatpush.bf16.msrb.mxu0 %v5602_v28  ;;  %v6053_v28 = vld [vmem:[#allocation8 + $0x184] sm:$0xf] }
 0x3ba   : > { %v3143_v30 = vpop.f32.mrf.mxu2 }
 0x3bb   : > { %v3144_v34 = vadd.f32 %v3143_v30, %v3131_v50  ;;  %v5555_v50 = vld [vmem:[#allocation8 + $0x188] sm:$0xf0] }
 0x3bc   : > { %v3132_v54 = vpop.f32.mrf.mxu1  ;;  %v5558_v30 = vor.u32 %v6053_v28, %v5555_v50 }
 0x3bd   : > { %v3156_v15 = vpop.f32.mrf.mxu3  ;;  %3716 = vmatpush.bf16.msrb.mxu0 %v5594_v53 }
 0x3be   : > { %v3157_v55 = vadd.f32 %v3156_v15, %v3144_v34 }
 0x3bf   : > { %v3171_v57 = vpop.f32.mrf.mxu0 }
 0x3c0   : > { %v3170_v62 = vadd.f32 %v3169_v41, %v3157_v55  ;;  %v2856_v41 = vperm.slane %v6193_v48, 3 }
 0x3c1   : > { %3717 = vmatpush.bf16.msrb.mxu0 %v5586_v63 }
 0x3c2   : > { %v3279_v0 = vmax.f32 %v3170_v62, 0.0  ;;  %v3145_v8 = vpop.f32.mrf.mxu2 }
 0x3c4   : > { %v3283_v17 = vpack.c.bf16 %v3279_v0, %v3279_v0 }
 0x3c5   : > { %v3158_v45 = vpop.f32.mrf.mxu3  ;;  %3718 = vmatpush.bf16.msrb.mxu0 %v5578_v9  ;;  %v3349_v9 = vld [vmem:[%s6825_s10] sm:$0x3] }
 0x3c6   : > { %3709 = vmatmul.bf16.vlgmr.msra.gmra.mxu3 %v3283_v17  ;;  %v3671_v13 = vperm.slane %v3349_v9, 0  ;;  %v3672_v22 = vperm.slane %v3349_v9, 1 }
 0x3c9   : > { %3719 = vmatpush.bf16.msrb.mxu0 %v5570_v18 }
 0x3cd   : > { %3720 = vmatpush.bf16.msrb.mxu0 %v5562_v21 }
 0x3d1   : > { %3721 = vmatpush.bf16.msrb.mxu0 %v5554_v61 }
 0x3d4   : > { %v3182_v27 = vpop.f32.mrf.mxu1 }
 0x3d5   : > { %3766 = vmatpush.bf16.msra.mxu0 %v5614_v10  ;;  %v3183_v49 = vadd.f32 %v3182_v27, %v2856_v41  ;;  %v6076_v27 = vld [vmem:[%s6826_s11 + $0x38] sm:$0xff] }
 0x3d6   : > { %3761 = vmatmul.bf16.vlgmr.msrb.gmra.mxu3 %v3283_v17  ;;  %3912 = vmatpush.bf16.msra.mxu1 %v6076_v27 }
 0x3d7   : > { %v3221_v1 = vpop.f32.mrf.mxu0 }
 0x3d9   : > { %3767 = vmatpush.bf16.msra.mxu0 %v5606_v11  ;;  %v6074_v11 = vld [vmem:[%s6826_s11 + $0x28] sm:$0xff] }
 0x3da   : > { %v3195_v31 = vpop.f32.mrf.mxu2  ;;  %3913 = vmatpush.bf16.msra.mxu1 %v6075_v25 }
 0x3db   : > { %v3196_v5 = vadd.f32 %v3195_v31, %v3183_v49  ;;  %v6072_v31 = vld [vmem:[%s6826_s11 + $0x18] sm:$0xff] }
 0x3dc   : > { %v3184_v2 = vpop.f32.mrf.mxu1 }
 0x3dd   : > { %v3208_v37 = vpop.f32.mrf.mxu3  ;;  %3768 = vmatpush.bf16.msra.mxu0 %v5598_v36 }
 0x3de   : > { %v3209_v51 = vadd.f32 %v3208_v37, %v3196_v5  ;;  %3914 = vmatpush.bf16.msra.mxu1 %v6074_v11  ;;  %v6071_v37 = vld [vmem:[%s6826_s11 + $0x10] sm:$0xff] }
 0x3df   : > { %v3223_v38 = vpop.f32.mrf.mxu0 }
 0x3e0   : > { %v3222_v15 = vadd.f32 %v3221_v1, %v3209_v51  ;;  %v6084_v1 = vld [vmem:[%s6826_s11 + $0x78] sm:$0xff]  ;;  %v6070_v38 = vld [vmem:[%s6826_s11 + $0x8] sm:$0xff] }
 0x3e1   : > { %3769 = vmatpush.bf16.msra.mxu0 %v5590_v39  ;;  %3925 = vmatpush.bf16.msra.mxu2 %v6084_v1  ;;  %v6069_v39 = vld [vmem:[%s6826_s11] sm:$0xff] }
 0x3e2   : > { %v3197_v42 = vpop.f32.mrf.mxu2  ;;  %3915 = vmatpush.bf16.msra.mxu1 %v6073_v33 }
 0x3e3   : > { %v6079_v42 = vld [vmem:[%s6826_s11 + $0x50] sm:$0xff] }
 0x3e5   : > { %v3210_v46 = vpop.f32.mrf.mxu3  ;;  %3770 = vmatpush.bf16.msra.mxu0 %v5582_v43  ;;  %3926 = vmatpush.bf16.msra.mxu2 %v6083_v56  ;;  %v6078_v43 = vld [vmem:[%s6826_s11 + $0x48] sm:$0xff] }
 0x3e6   : > { %3916 = vmatpush.bf16.msra.mxu1 %v6072_v31 }
 0x3e9   : > { %3771 = vmatpush.bf16.msra.mxu0 %v5574_v7  ;;  %3927 = vmatpush.bf16.msra.mxu2 %v6082_v35 }
 0x3ea   : > { %3917 = vmatpush.bf16.msra.mxu1 %v6071_v37 }
 0x3ed   : > { %3772 = vmatpush.bf16.msra.mxu0 %v5566_v14  ;;  %3928 = vmatpush.bf16.msra.mxu2 %v6081_v16 }
 0x3ee   : > { %3918 = vmatpush.bf16.msra.mxu1 %v6070_v38 }
 0x3f1   : > { %3773 = vmatpush.bf16.msra.mxu0 %v5558_v30  ;;  %3929 = vmatpush.bf16.msra.mxu2 %v6080_v40 }
 0x3f2   : > { %3919 = vmatpush.bf16.msra.mxu1 %v6069_v39 }
 0x3f4   : > { %v3234_v52 = vpop.f32.mrf.mxu1 }
 0x3f5   : > { %v3235_v53 = vadd.f32 %v3234_v52, %v3222_v15  ;;  %3930 = vmatpush.bf16.msra.mxu2 %v6079_v42  ;;  %v3815_v52 = vld [vmem:[%s6857_s24] sm:$0x1] }
 0x3f6   : > { %v3273_v34 = vpop.f32.mrf.mxu0 }
 0x3f9   : > { %3931 = vmatpush.bf16.msra.mxu2 %v6078_v43 }
 0x3fa   : > { %v3247_v54 = vpop.f32.mrf.mxu2 }
 0x3fb   : > { %v3248_v55 = vadd.f32 %v3247_v54, %v3235_v53 }
 0x3fc   : > { %v3260_v57 = vpop.f32.mrf.mxu3  ;;  %v3236_v58 = vpop.f32.mrf.mxu1 }
 0x3fd   : > { %v3261_v59 = vadd.f32 %v3260_v57, %v3248_v55  ;;  %3932 = vmatpush.bf16.msra.mxu2 %v6077_v44 }
 0x3fe   : > { %v3275_v62 = vpop.f32.mrf.mxu0 }
 0x3ff   : > { %v3274_v63 = vadd.f32 %v3273_v34, %v3261_v59 }
 0x401   : > { %v3280_v0 = vmax.f32 %v3274_v63, 0.0 }
 0x402   : > { %v3249_v6 = vpop.f32.mrf.mxu2 }
 0x403   : > { %v3284_v4 = vpack.c.bf16 %v3280_v0, %v3280_v0 }
 0x404   : > { %v3262_v8 = vpop.f32.mrf.mxu3 }
 0x405   : > { %3722 = vmatmul.bf16.vlgmr.msrb.gmra.mxu0 %v3284_v4 }
 0x414   : > { %v3684_v12 = vpop.f32.mrf.mxu1 }
 0x415   : > { %3774 = vmatmul.bf16.vlgmr.msra.gmra.mxu0 %v3284_v4  ;;  %v3685_v17 = vadd.f32 %v3684_v12, %v3671_v13 }
 0x41a   : > { %v3697_v45 = vpop.f32.mrf.mxu2 }
 0x41b   : > { %v3698_v18 = vadd.f32 %v3697_v45, %v3685_v17 }
 0x41c   : > { %v3686_v19 = vpop.f32.mrf.mxu1 }
 0x422   : > { %v3699_v20 = vpop.f32.mrf.mxu2 }
 0x434   : > { %v3736_v21 = vpop.f32.mrf.mxu1 }
 0x435   : > { %v3737_v60 = vadd.f32 %v3736_v21, %v3672_v22 }
 0x43a   : > { %v3749_v61 = vpop.f32.mrf.mxu2 }
 0x43b   : > { %v3750_v23 = vadd.f32 %v3749_v61, %v3737_v60 }
 0x43c   : > { %v3738_v24 = vpop.f32.mrf.mxu1 }
 0x442   : > { %v3751_v10 = vpop.f32.mrf.mxu2 }
 0x449   : > { %v3710_v32 = vpop.f32.mrf.mxu3 }
 0x44a   : > { %v3711_v3 = vadd.f32 %v3710_v32, %v3698_v18 }
 0x451   : > { %v3712_v36 = vpop.f32.mrf.mxu3 }
 0x459   : > { %v3762_v2 = vpop.f32.mrf.mxu3 }
 0x45a   : > { %v3763_v41 = vadd.f32 %v3762_v2, %v3750_v23 }
 0x461   : > { %v3764_v29 = vpop.f32.mrf.mxu3 }
 0x482   : > { %v3723_v46 = vpop.f32.mrf.mxu0 }
 0x483   : > { %v3724_v7 = vadd.f32 %v3723_v46, %v3711_v3 }
 0x485   : > { %v3779_v26 = vmax.f32 %v3724_v7, 0.0 }
 0x487   : > { %v3781_v47 = vpack.c.bf16 %v3779_v26, %v3779_v26 }
 0x489   : > { %3920 = vmatmul.bf16.vlgmr.msra.gmra.mxu1 %v3781_v47 }
 0x48a   : > { %v3725_v48 = vpop.f32.mrf.mxu0 }
 0x492   : > { %v3775_v14 = vpop.f32.mrf.mxu0 }
 0x493   : > { %v3776_v49 = vadd.f32 %v3775_v14, %v3763_v41 }
 0x495   : > { %v3780_v5 = vmax.f32 %v3776_v49, 0.0 }
 0x497   : > { %v3782_v28 = vpack.c.bf16 %v3780_v5, %v3780_v5 }
 0x499   : > { %3933 = vmatmul.bf16.vlgmr.msra.gmra.mxu2 %v3782_v28 }
 0x49a   : > { %v3777_v50 = vpop.f32.mrf.mxu0 }
 0x506   : > { %v3921_v30 = vpop.f32.mrf.mxu1 }
 0x507   : > { %v3922_v34 = vadd.f32 %v3921_v30, %v3815_v52 }
 0x50e   : > { %v3923_v51 = vpop.f32.mrf.mxu1 }
 0x51c   : > { %v3934_v15 = vpop.f32.mrf.mxu2 }
 0x51d   : > { %v3935_v53 = vadd.f32 %v3934_v15, %v3922_v34 }
 0x51f   : > { %3939 = vst.msk [vmem:[%s500_s16] sm:$0x1] %vm3938_vm8, %v3935_v53 }
 0x520   : > { %6311 = shalt.err (!%p6308_p9)
}
 0x521   : > { %6097 = dma.vmem_to_hbm [thread:$0]  (%p6495_p4), %s3952_s21, 16, %s3954_s19, %s3941_s17  }
 0x524   : > { %v3936_v54 = vpop.f32.mrf.mxu2 }
 0x525 PF: > { %s6859_s29 = sld [smem:[#allocation16_spill]] }
 0x526   : > { %s6860_s18 = sld [smem:[#allocation13_spill]] }
 0x52b   : > { %p6119_p10 = scmp.ge.s32.totalorder %s6859_s29, 2 }
 0x52c   : > { %s3965_s23 = sand.u32 1, %s6860_s18  }
 0x52d   : > { %p6110_p11 = pnand %p6119_p10, %p6502_p8  ;;  %s3966_s14 = scalar_lea.sflag [#allocation5], %s3965_s23 }
 0x52f   : > { %p6111_p12 = pneg %p6110_p11 }
 0x531   : > { %6345 = dma.done.wait (%p6111_p12), %s3966_s14, 16  }
 0x532   : > { %6347 = vsyncadd (%p6111_p12), %s3966_s14, 4294967280  ;;  %s28_s30 = sadd.s32 1, %s6859_s29   ;;  %s6862_s24 = sld [smem:[#allocation14_spill]] }
 0x533   : > { %p25_p13 = scmp.ge.s32.totalorder %s28_s30, 4   ;;  %s6863_s27 = sld [smem:[#allocation20_spill]] }
 0x534   : > { %s6864_s28 = sld [smem:[#allocation15_spill]]  ;;  %s6866_s25 = smov %s6354_s26 }
 0x535   : > { %s6865_s29 = sld [smem:[#allocation17_spill]]  ;;  %27 = sbr.rel (!%p25_p13) target bundleno = 10 (0xa), region = 128 }
 0x538   : > { %s6867_s26 = smov %s6862_s24 }
 0x53a   :  { %3971 = vsyncpa [#allocation4], 1 }
 0x53b   :  { %3973 = vsyncpa [#allocation4 + $0x1], 1 }
 0x53c   :  { %3974 = vsyncpa [#allocation7], 1 }
 0x53d   :  { %3975 = vsyncpa [#allocation5], 1 }
 0x53e   :  { %3977 = vsyncpa [#allocation5 + $0x1], 1 }

</bundles_post_ra>
